<compile_context>
chip_gen: v6e
topology: v6e:2x2x1
jax: 0.10.0
libtpu: 0.0.40
codegen_flags: <defaults>
</compile_context>

<pallas_src>
import numpy as np

import jax
import jax.numpy as jnp
from jax.experimental import pallas as pl
from jax.experimental.pallas import tpu as pltpu


CPAD = 128             # channel padding -> lane-dense activations / MXU tiles
MAX_TK = 64 * 1024     # head K-tile cap (multiple of 512; keeps VMEM < ~16 MB)


# ----------------------------------------------------------------------------
# Pallas kernels
# ----------------------------------------------------------------------------
def conv_relu_kernel(x_ref, w_ref, b_ref, o_ref):
    """Valid cross-correlation (PyTorch Conv2d, stride=1) + bias + ReLU.

    One image per grid step.  The KW taps are fused into the matmul K
    dimension: per output row and per kh, one MXU matmul of shape
    (Wo, KW*Cin) x (KW*Cin, Cout), bf16 inputs, f32 accumulation.

    x_ref : (1, H, W, Cin)        bf16, NHWC
    w_ref : (KH, KW*Cin, Cout)    bf16, KW fused into K
    b_ref : (1, Cout)             f32
    o_ref : (1, Ho, Wo, Cout)     bf16
    """
    KH, KWC, Cout = w_ref.shape
    _, H, W, Cin = x_ref.shape
    _, Ho, Wo, _ = o_ref.shape
    KW = KWC // Cin
    bias = b_ref[...]                                     # (1, Cout) f32

    @pl.loop(0, Ho)
    def _row(ho):
        # Initialize the accumulator with the bias (saves a separate add pass).
        acc = jnp.broadcast_to(bias, (Wo, Cout))          # (Wo, Cout) f32
        for kh in range(KH):                              # static KH unroll
            # Load exactly one input row per tap-row: short live range.
            row = x_ref[0, pl.ds(ho + kh, 1), :, :][0]    # (W, Cin) bf16
            if KW == 1:
                patch = row                               # (Wo, Cin)
            else:
                # patch[:, kw*Cin + c] = row[wo + kw, c]  (matches weight pack)
                patch = jnp.concatenate(
                    [row[kw:kw + Wo, :] for kw in range(KW)], axis=1)
            acc = acc + jnp.dot(patch, w_ref[kh],
                                preferred_element_type=jnp.float32)
        o_ref[0, pl.ds(ho, 1), :, :] = (
            jnp.maximum(acc, 0.0).astype(o_ref.dtype)[None, :, :])


def head_kernel(x_ref, w_ref, b_ref, o_ref):
    """K-tiled Linear: y = x @ w.T + b, accumulated in the resident output.

    x_ref : (B, TK)  bf16   (NHWC-flattened conv features, K-tile)
    w_ref : (d, TK)  bf16   (weight stored d-major; long lane-dense DMA rows)
    b_ref : (1, d)   f32
    o_ref : (B, d)   f32    (same block for every k -> VMEM-resident acc)
    """
    k = pl.program_id(0)

    @pl.when(k == 0)
    def _init():
        # Fold the bias into the init: no separate finalize pass needed.
        o_ref[...] = jnp.broadcast_to(b_ref[...], o_ref.shape)

    o_ref[...] += jax.lax.dot_general(
        x_ref[...], w_ref[...],
        dimension_numbers=(((1,), (1,)), ((), ())),       # contract over K
        preferred_element_type=jnp.float32)


# ----------------------------------------------------------------------------
# Wrappers around pallas_call
# ----------------------------------------------------------------------------
def conv_relu(x, wf, b):
    B, H, W, Cin = x.shape
    KH, KWC, Cout = wf.shape
    KW = KWC // Cin
    Ho, Wo = H - KH + 1, W - KW + 1
    return pl.pallas_call(
        conv_relu_kernel,
        out_shape=jax.ShapeDtypeStruct((B, Ho, Wo, Cout), jnp.bfloat16),
        grid=(B,),
        in_specs=[
            pl.BlockSpec((1, H, W, Cin), lambda bi: (bi, 0, 0, 0)),
            pl.BlockSpec((KH, KWC, Cout), lambda bi: (0, 0, 0)),
            pl.BlockSpec((1, Cout), lambda bi: (0, 0)),
        ],
        out_specs=pl.BlockSpec((1, Ho, Wo, Cout), lambda bi: (bi, 0, 0, 0)),
        compiler_params=pltpu.CompilerParams(
            dimension_semantics=("parallel",),
            vmem_limit_bytes=32 * 1024 * 1024),
    )(x, wf, b)


def head(xf, w, b):
    B, Kp = xf.shape
    d = w.shape[0]
    # Kp is either <= MAX_TK (single tile) or a multiple of MAX_TK (by init).
    TK = Kp if Kp <= MAX_TK else MAX_TK
    nk = Kp // TK
    return pl.pallas_call(
        head_kernel,
        out_shape=jax.ShapeDtypeStruct((B, d), jnp.float32),
        grid=(nk,),
        in_specs=[
            pl.BlockSpec((B, TK), lambda k: (0, k)),
            pl.BlockSpec((d, TK), lambda k: (0, k)),
            pl.BlockSpec((1, d), lambda k: (0, 0)),
        ],
        out_specs=pl.BlockSpec((B, d), lambda k: (0, 0)),
        compiler_params=pltpu.CompilerParams(
            dimension_semantics=("arbitrary",),
            vmem_limit_bytes=32 * 1024 * 1024),
    )(xf, w, b)


# ----------------------------------------------------------------------------
# Model: parameter init + forward
# ----------------------------------------------------------------------------
def init_params(key, *, in_size, channels, k_size, n_conv, pic_size, d,
                num_of_classes):
    keys = jax.random.split(key, 2 * n_conv + 3)
    convs = []
    cin, sz, ki = in_size, pic_size, 0
    for li in range(n_conv):
        fan_in = cin * k_size * k_size
        bound = 1.0 / np.sqrt(fan_in)
        w = jax.random.uniform(keys[ki], (k_size, k_size, cin, channels),
                               jnp.float32, -bound, bound)
        b = jax.random.uniform(keys[ki + 1], (channels,), jnp.float32,
                               -bound, bound)
        bp = jnp.zeros((1, CPAD), jnp.float32).at[0, :channels].set(b)
        if li == 0:
            # First layer (tiny Cin): im2col layer -> weight (1, k*k*cin, CPAD).
            wf = (jnp.zeros((1, k_size * k_size * cin, CPAD), jnp.float32)
                  .at[0, :, :channels]
                  .set(w.reshape(k_size * k_size * cin, channels))
                  .astype(jnp.bfloat16))
        else:
            # Channel-pad Cin/Cout to CPAD, fuse KW into K: (KH, KW*CPAD, CPAD).
            wp = (jnp.zeros((k_size, k_size, CPAD, CPAD), jnp.float32)
                  .at[:, :, :cin, :channels].set(w))
            wf = wp.reshape(k_size, k_size * CPAD, CPAD).astype(jnp.bfloat16)
        convs.append({"wf": wf, "b": bp, "w_hwio": w.astype(jnp.bfloat16)})
        ki += 2
        cin = channels
        sz = sz - k_size + 1                   # conv_final_out_size step (s=1)

    feat = sz * sz * channels                  # get_final_layers_size (logical)
    feat_pad = sz * sz * CPAD                  # NHWC/channel-padded flatten
    if feat_pad <= MAX_TK:
        feat_p = feat_pad                      # single K tile
    else:
        feat_p = ((feat_pad + MAX_TK - 1) // MAX_TK) * MAX_TK
    bound = 1.0 / np.sqrt(feat)
    # PyTorch Linear weight is (d, C*Ho*Wo) over an NCHW flatten; we store it
    # (d, Ho*Wo*CPAD) over the NHWC/channel-padded flatten so the conv output
    # is consumed without any boundary transpose.  (A torch checkpoint would be
    # permuted once at load time: w.reshape(d,C,Ho,Wo) -> (d,Ho,Wo,C) -> pad.)
    w_l = jax.random.uniform(keys[ki], (d, sz, sz, channels), jnp.float32,
                             -bound, bound)
    w_head = (jnp.zeros((d, sz, sz, CPAD), jnp.float32)
              .at[:, :, :, :channels].set(w_l).reshape(d, feat_pad))
    w_head = jnp.pad(w_head, ((0, 0), (0, feat_p - feat_pad))).astype(jnp.bfloat16)
    return {
        "convs": convs,
        "w_head": w_head,
        "b_head": jax.random.uniform(keys[ki + 1], (1, d), jnp.float32,
                                     -bound, bound),
        "emb": jax.random.normal(keys[ki + 2], (num_of_classes, d), jnp.float32),
    }


@jax.jit
def convnet_forward(x_nchw, params):
    B, in_size = x_nchw.shape[0], x_nchw.shape[1]
    convs = params["convs"]

    # ---- Layer 1 (Cin = in_size, typically 1): wrapper im2col, no 128-pad of
    #      the raw input in HBM (avoids ~128x DMA/compute inflation).
    khkw = convs[0]["wf"].shape[1] // in_size
    k = int(round(khkw ** 0.5))                # square kernel assumed
    x = jnp.transpose(x_nchw, (0, 2, 3, 1)).astype(jnp.bfloat16)   # NHWC
    H, W = x.shape[1], x.shape[2]
    Ho, Wo = H - k + 1, W - k + 1
    patches = jnp.concatenate(
        [x[:, kh:kh + Ho, kw:kw + Wo, :] for kh in range(k) for kw in range(k)],
        axis=-1)                               # (B, Ho, Wo, k*k*in_size)
    h = conv_relu(patches, convs[0]["wf"], convs[0]["b"])

    # ---- Layers 2..n: channel-padded NHWC, KW fused into matmul K.
    for layer in convs[1:]:
        h = conv_relu(h, layer["wf"], layer["b"])

    # ---- Head: NHWC flatten (free reshape); head-weight layout matches it.
    hf = h.reshape(B, -1)
    feat_p = params["w_head"].shape[1]
    if hf.shape[1] != feat_p:
        hf = jnp.pad(hf, ((0, 0), (0, feat_p - hf.shape[1])))
    y = head(hf, params["w_head"], params["b_head"])
    # get_embeddings() == the full table; concat handled by XLA (no kernel copy).
    return jnp.concatenate([y, params["emb"]], axis=0)


def reference_forward(x_nchw, params):
    """Pure-JAX reference (lax conv / dot) using the same bf16 weights."""
    h = jnp.transpose(x_nchw, (0, 2, 3, 1)).astype(jnp.bfloat16)
    for layer in params["convs"]:
        w = layer["w_hwio"].astype(jnp.float32)            # (k,k,cin,cout)
        cout = w.shape[-1]
        b = layer["b"][0, :cout]
        hf32 = jax.lax.conv_general_dilated(
            h.astype(jnp.float32), w,
            window_strides=(1, 1), padding="VALID",
            dimension_numbers=("NHWC", "HWIO", "NHWC"),
            precision=jax.lax.Precision.HIGHEST) + b
        h = jnp.maximum(hf32, 0.0).astype(jnp.bfloat16)
    B = h.shape[0]
    h = jnp.pad(h, ((0, 0), (0, 0), (0, 0), (0, CPAD - h.shape[-1])))
    hf = h.reshape(B, -1)
    feat_p = params["w_head"].shape[1]
    if hf.shape[1] != feat_p:
        hf = jnp.pad(hf, ((0, 0), (0, feat_p - hf.shape[1])))
    y = jnp.dot(hf.astype(jnp.float32),
                params["w_head"].astype(jnp.float32).T,
                precision=jax.lax.Precision.HIGHEST) + params["b_head"]
    return jnp.concatenate([y, params["emb"]], axis=0)


# ----------------------------------------------------------------------------
if __name__ == "__main__":
    # Small, module-consistent shapes (original: pic_size=105, channels=64,
    # d=17, k=4, 4 conv layers; scaled down for a quick synthetic run).
    B = 2
    IN_SIZE = 1
    PIC_SIZE = 16
    CHANNELS = 8
    K_SIZE = 4
    N_CONV = 4
    D = 17
    NUM_CLASSES = 10

    key = jax.random.PRNGKey(0)
    k_params, k_x = jax.random.split(key)
    params = init_params(k_params, in_size=IN_SIZE, channels=CHANNELS,
                         k_size=K_SIZE, n_conv=N_CONV, pic_size=PIC_SIZE,
                         d=D, num_of_classes=NUM_CLASSES)

    x = jax.random.normal(k_x, (B, IN_SIZE, PIC_SIZE, PIC_SIZE), jnp.float32)

    out = jax.block_until_ready(convnet_forward(x, params))
    assert out.shape == (B + NUM_CLASSES, D), out.shape

    ref = jax.block_until_ready(reference_forward(x, params))
    np.testing.assert_allclose(np.asarray(out, dtype=np.float32),
                               np.asarray(ref, dtype=np.float32),
                               rtol=1e-2, atol=2e-2)

    print("KERNEL_OK")
</pallas_src>

<mosaic_0001>
module attributes {stable_mosaic.version = 11 : i64} {
  func.func @conv_relu_kernel(%arg0: i32, %arg1: memref<1x13x13x16xbf16, #tpu.memory_space<vmem>>, %arg2: memref<1x16x128xbf16, #tpu.memory_space<vmem>>, %arg3: memref<1x128xf32, #tpu.memory_space<vmem>>, %arg4: memref<1x13x13x128xbf16, #tpu.memory_space<vmem>>) attributes {dimension_semantics = [#tpu.dimension_semantics<parallel>], iteration_bounds = array<i64: 2>, scalar_prefetch = 0 : i64, scratch_operands = 0 : i64, tpu.core_type = #tpu.core_type<tc>, window_params = [{transform_indices = @transform_0, window_bounds = array<i64: 1, 13, 13, 16>}, {pipeline_mode = #tpu.pipeline_mode<synchronous>, transform_indices = @transform_1, window_bounds = array<i64: 1, 16, 128>}, {pipeline_mode = #tpu.pipeline_mode<synchronous>, transform_indices = @transform_2, window_bounds = array<i64: 1, 128>}, {transform_indices = @transform_3, window_bounds = array<i64: 1, 13, 13, 128>}]} {
    %c0 = arith.constant 0 : index
    %c0_0 = arith.constant 0 : index
    %0 = vector.load %arg3[%c0, %c0_0] : memref<1x128xf32, #tpu.memory_space<vmem>>, vector<1x128xf32>
    %c0_i32 = arith.constant 0 : i32
    %c13_i32 = arith.constant 13 : i32
    %1 = arith.addi %c0_i32, %c13_i32 : i32
    %c1_i32 = arith.constant 1 : i32
    scf.for %arg5 = %c0_i32 to %1 step %c1_i32  : i32 {
      %c1_i32_2 = arith.constant 1 : i32
      %2 = arith.muli %arg5, %c1_i32_2 : i32
      %c0_i32_3 = arith.constant 0 : i32
      %3 = arith.addi %c0_i32_3, %2 : i32
      %4 = vector.shape_cast %0 : vector<1x128xf32> to vector<1x128xf32>
      %5 = vector.broadcast %4 : vector<1x128xf32> to vector<13x128xf32>
      %c0_i32_4 = arith.constant 0 : i32
      %6 = arith.addi %3, %c0_i32_4 : i32
      %c0_5 = arith.constant 0 : index
      %7 = arith.index_cast %6 : i32 to index
      %c0_6 = arith.constant 0 : index
      %c0_7 = arith.constant 0 : index
      %8 = vector.load %arg1[%c0_5, %7, %c0_6, %c0_7] : memref<1x13x13x16xbf16, #tpu.memory_space<vmem>>, vector<1x1x13x16xbf16>
      %9 = vector.shape_cast %8 : vector<1x1x13x16xbf16> to vector<1x13x16xbf16>
      %10 = vector.shape_cast %9 : vector<1x13x16xbf16> to vector<13x16xbf16>
      %c0_8 = arith.constant 0 : index
      %c0_9 = arith.constant 0 : index
      %c0_10 = arith.constant 0 : index
      %11 = vector.load %arg2[%c0_8, %c0_9, %c0_10] : memref<1x16x128xbf16, #tpu.memory_space<vmem>>, vector<1x16x128xbf16>
      %12 = vector.shape_cast %11 : vector<1x16x128xbf16> to vector<16x128xbf16>
      %cst = arith.constant dense<0.000000e+00> : vector<13x128xf32>
      %13 = tpu.matmul %10, %12, %cst {dimension_numbers = #tpu.dot_dimension_numbers<[1], [0], [0], [1], [0, 0, 1, 1], [], []>} : vector<13x16xbf16>, vector<16x128xbf16>, vector<13x128xf32> -> vector<13x128xf32>
      %14 = arith.addf %5, %13 : vector<13x128xf32>
      %cst_11 = arith.constant 0.000000e+00 : f32
      %15 = vector.broadcast %cst_11 : f32 to vector<13x128xf32>
      %16 = arith.maximumf %14, %15 : vector<13x128xf32>
      %17 = arith.truncf %16 : vector<13x128xf32> to vector<13x128xbf16>
      %18 = vector.shape_cast %17 : vector<13x128xbf16> to vector<1x13x128xbf16>
      %c0_12 = arith.constant 0 : index
      %19 = arith.index_cast %3 : i32 to index
      %c0_13 = arith.constant 0 : index
      %c0_14 = arith.constant 0 : index
      %20 = vector.load %arg4[%c0_12, %19, %c0_13, %c0_14] : memref<1x13x13x128xbf16, #tpu.memory_space<vmem>>, vector<1x1x13x128xbf16>
      %21 = vector.shape_cast %20 : vector<1x1x13x128xbf16> to vector<1x13x128xbf16>
      %22 = vector.shape_cast %18 : vector<1x13x128xbf16> to vector<1x1x13x128xbf16>
      tpu.vector_store %arg4[%c0_12, %19, %c0_13, %c0_14], %22 {strides = array<i32>} : memref<1x13x13x128xbf16, #tpu.memory_space<vmem>>, vector<1x1x13x128xbf16>,
    }
    %c13_i32_1 = arith.constant 13 : i32
    return
  }
  func.func @transform_0(%arg0: i32) -> (i32, i32, i32, i32) {
    %c0_i32 = arith.constant 0 : i32
    %c0_i32_0 = arith.constant 0 : i32
    %c0_i32_1 = arith.constant 0 : i32
    %c0_i32_2 = arith.constant 0 : i32
    return %arg0, %c0_i32, %c0_i32_0, %c0_i32_1 : i32, i32, i32, i32
  }
  func.func @transform_1(%arg0: i32) -> (i32, i32, i32) {
    %c0_i32 = arith.constant 0 : i32
    %c0_i32_0 = arith.constant 0 : i32
    %c0_i32_1 = arith.constant 0 : i32
    %c0_i32_2 = arith.constant 0 : i32
    return %c0_i32, %c0_i32_0, %c0_i32_1 : i32, i32, i32
  }
  func.func @transform_2(%arg0: i32) -> (i32, i32) {
    %c0_i32 = arith.constant 0 : i32
    %c0_i32_0 = arith.constant 0 : i32
    %c0_i32_1 = arith.constant 0 : i32
    return %c0_i32, %c0_i32_0 : i32, i32
  }
  func.func @transform_3(%arg0: i32) -> (i32, i32, i32, i32) {
    %c0_i32 = arith.constant 0 : i32
    %c0_i32_0 = arith.constant 0 : i32
    %c0_i32_1 = arith.constant 0 : i32
    %c0_i32_2 = arith.constant 0 : i32
    return %arg0, %c0_i32, %c0_i32_0, %c0_i32_1 : i32, i32, i32, i32
  }
}

module attributes {stable_mosaic.version = 11 : i64} {
  func.func @conv_relu_kernel(%arg0: i32, %arg1: memref<1x10x10x128xbf16, #tpu.memory_space<vmem>>, %arg2: memref<4x512x128xbf16, #tpu.memory_space<vmem>>, %arg3: memref<1x128xf32, #tpu.memory_space<vmem>>, %arg4: memref<1x7x7x128xbf16, #tpu.memory_space<vmem>>) attributes {dimension_semantics = [#tpu.dimension_semantics<parallel>], iteration_bounds = array<i64: 2>, scalar_prefetch = 0 : i64, scratch_operands = 0 : i64, tpu.core_type = #tpu.core_type<tc>, window_params = [{transform_indices = @transform_0, window_bounds = array<i64: 1, 10, 10, 128>}, {pipeline_mode = #tpu.pipeline_mode<synchronous>, transform_indices = @transform_1, window_bounds = array<i64: 4, 512, 128>}, {pipeline_mode = #tpu.pipeline_mode<synchronous>, transform_indices = @transform_2, window_bounds = array<i64: 1, 128>}, {transform_indices = @transform_3, window_bounds = array<i64: 1, 7, 7, 128>}]} {
    %c0 = arith.constant 0 : index
    %c0_0 = arith.constant 0 : index
    %0 = vector.load %arg3[%c0, %c0_0] : memref<1x128xf32, #tpu.memory_space<vmem>>, vector<1x128xf32>
    %c0_i32 = arith.constant 0 : i32
    %c7_i32 = arith.constant 7 : i32
    %1 = arith.addi %c0_i32, %c7_i32 : i32
    %c1_i32 = arith.constant 1 : i32
    scf.for %arg5 = %c0_i32 to %1 step %c1_i32  : i32 {
      %c1_i32_2 = arith.constant 1 : i32
      %2 = arith.muli %arg5, %c1_i32_2 : i32
      %c0_i32_3 = arith.constant 0 : i32
      %3 = arith.addi %c0_i32_3, %2 : i32
      %4 = vector.shape_cast %0 : vector<1x128xf32> to vector<1x128xf32>
      %5 = vector.broadcast %4 : vector<1x128xf32> to vector<7x128xf32>
      %c0_i32_4 = arith.constant 0 : i32
      %6 = arith.addi %3, %c0_i32_4 : i32
      %c0_5 = arith.constant 0 : index
      %7 = arith.index_cast %6 : i32 to index
      %c0_6 = arith.constant 0 : index
      %c0_7 = arith.constant 0 : index
      %8 = vector.load %arg1[%c0_5, %7, %c0_6, %c0_7] : memref<1x10x10x128xbf16, #tpu.memory_space<vmem>>, vector<1x1x10x128xbf16>
      %9 = vector.shape_cast %8 : vector<1x1x10x128xbf16> to vector<1x10x128xbf16>
      %10 = vector.shape_cast %9 : vector<1x10x128xbf16> to vector<10x128xbf16>
      %11 = vector.extract_strided_slice %10 {offsets = [0, 0], sizes = [7, 128], strides = [1, 1]} : vector<10x128xbf16> to vector<7x128xbf16>
      %12 = vector.extract_strided_slice %10 {offsets = [1, 0], sizes = [7, 128], strides = [1, 1]} : vector<10x128xbf16> to vector<7x128xbf16>
      %13 = vector.extract_strided_slice %10 {offsets = [2, 0], sizes = [7, 128], strides = [1, 1]} : vector<10x128xbf16> to vector<7x128xbf16>
      %14 = vector.extract_strided_slice %10 {offsets = [3, 0], sizes = [7, 128], strides = [1, 1]} : vector<10x128xbf16> to vector<7x128xbf16>
      %15 = tpu.concatenate %11, %12, %13, %14 in 1 : vector<7x128xbf16>, vector<7x128xbf16>, vector<7x128xbf16>, vector<7x128xbf16> -> vector<7x512xbf16>
      %c0_8 = arith.constant 0 : index
      %c0_9 = arith.constant 0 : index
      %c0_10 = arith.constant 0 : index
      %16 = vector.load %arg2[%c0_8, %c0_9, %c0_10] : memref<4x512x128xbf16, #tpu.memory_space<vmem>>, vector<1x512x128xbf16>
      %17 = vector.shape_cast %16 : vector<1x512x128xbf16> to vector<512x128xbf16>
      %cst = arith.constant dense<0.000000e+00> : vector<7x128xf32>
      %18 = tpu.matmul %15, %17, %cst {dimension_numbers = #tpu.dot_dimension_numbers<[1], [0], [0], [1], [0, 0, 1, 1], [], []>} : vector<7x512xbf16>, vector<512x128xbf16>, vector<7x128xf32> -> vector<7x128xf32>
      %19 = arith.addf %5, %18 : vector<7x128xf32>
      %c1_i32_11 = arith.constant 1 : i32
      %20 = arith.addi %3, %c1_i32_11 : i32
      %c0_12 = arith.constant 0 : index
      %21 = arith.index_cast %20 : i32 to index
      %c0_13 = arith.constant 0 : index
      %c0_14 = arith.constant 0 : index
      %22 = vector.load %arg1[%c0_12, %21, %c0_13, %c0_14] : memref<1x10x10x128xbf16, #tpu.memory_space<vmem>>, vector<1x1x10x128xbf16>
      %23 = vector.shape_cast %22 : vector<1x1x10x128xbf16> to vector<1x10x128xbf16>
      %24 = vector.shape_cast %23 : vector<1x10x128xbf16> to vector<10x128xbf16>
      %25 = vector.extract_strided_slice %24 {offsets = [0, 0], sizes = [7, 128], strides = [1, 1]} : vector<10x128xbf16> to vector<7x128xbf16>
      %26 = vector.extract_strided_slice %24 {offsets = [1, 0], sizes = [7, 128], strides = [1, 1]} : vector<10x128xbf16> to vector<7x128xbf16>
      %27 = vector.extract_strided_slice %24 {offsets = [2, 0], sizes = [7, 128], strides = [1, 1]} : vector<10x128xbf16> to vector<7x128xbf16>
      %28 = vector.extract_strided_slice %24 {offsets = [3, 0], sizes = [7, 128], strides = [1, 1]} : vector<10x128xbf16> to vector<7x128xbf16>
      %29 = tpu.concatenate %25, %26, %27, %28 in 1 : vector<7x128xbf16>, vector<7x128xbf16>, vector<7x128xbf16>, vector<7x128xbf16> -> vector<7x512xbf16>
      %c1 = arith.constant 1 : index
      %c0_15 = arith.constant 0 : index
      %c0_16 = arith.constant 0 : index
      %30 = vector.load %arg2[%c1, %c0_15, %c0_16] : memref<4x512x128xbf16, #tpu.memory_space<vmem>>, vector<1x512x128xbf16>
      %31 = vector.shape_cast %30 : vector<1x512x128xbf16> to vector<512x128xbf16>
      %cst_17 = arith.constant dense<0.000000e+00> : vector<7x128xf32>
      %32 = tpu.matmul %29, %31, %cst_17 {dimension_numbers = #tpu.dot_dimension_numbers<[1], [0], [0], [1], [0, 0, 1, 1], [], []>} : vector<7x512xbf16>, vector<512x128xbf16>, vector<7x128xf32> -> vector<7x128xf32>
      %33 = arith.addf %19, %32 : vector<7x128xf32>
      %c2_i32 = arith.constant 2 : i32
      %34 = arith.addi %3, %c2_i32 : i32
      %c0_18 = arith.constant 0 : index
      %35 = arith.index_cast %34 : i32 to index
      %c0_19 = arith.constant 0 : index
      %c0_20 = arith.constant 0 : index
      %36 = vector.load %arg1[%c0_18, %35, %c0_19, %c0_20] : memref<1x10x10x128xbf16, #tpu.memory_space<vmem>>, vector<1x1x10x128xbf16>
      %37 = vector.shape_cast %36 : vector<1x1x10x128xbf16> to vector<1x10x128xbf16>
      %38 = vector.shape_cast %37 : vector<1x10x128xbf16> to vector<10x128xbf16>
      %39 = vector.extract_strided_slice %38 {offsets = [0, 0], sizes = [7, 128], strides = [1, 1]} : vector<10x128xbf16> to vector<7x128xbf16>
      %40 = vector.extract_strided_slice %38 {offsets = [1, 0], sizes = [7, 128], strides = [1, 1]} : vector<10x128xbf16> to vector<7x128xbf16>
      %41 = vector.extract_strided_slice %38 {offsets = [2, 0], sizes = [7, 128], strides = [1, 1]} : vector<10x128xbf16> to vector<7x128xbf16>
      %42 = vector.extract_strided_slice %38 {offsets = [3, 0], sizes = [7, 128], strides = [1, 1]} : vector<10x128xbf16> to vector<7x128xbf16>
      %43 = tpu.concatenate %39, %40, %41, %42 in 1 : vector<7x128xbf16>, vector<7x128xbf16>, vector<7x128xbf16>, vector<7x128xbf16> -> vector<7x512xbf16>
      %c2 = arith.constant 2 : index
      %c0_21 = arith.constant 0 : index
      %c0_22 = arith.constant 0 : index
      %44 = vector.load %arg2[%c2, %c0_21, %c0_22] : memref<4x512x128xbf16, #tpu.memory_space<vmem>>, vector<1x512x128xbf16>
      %45 = vector.shape_cast %44 : vector<1x512x128xbf16> to vector<512x128xbf16>
      %cst_23 = arith.constant dense<0.000000e+00> : vector<7x128xf32>
      %46 = tpu.matmul %43, %45, %cst_23 {dimension_numbers = #tpu.dot_dimension_numbers<[1], [0], [0], [1], [0, 0, 1, 1], [], []>} : vector<7x512xbf16>, vector<512x128xbf16>, vector<7x128xf32> -> vector<7x128xf32>
      %47 = arith.addf %33, %46 : vector<7x128xf32>
      %c3_i32 = arith.constant 3 : i32
      %48 = arith.addi %3, %c3_i32 : i32
      %c0_24 = arith.constant 0 : index
      %49 = arith.index_cast %48 : i32 to index
      %c0_25 = arith.constant 0 : index
      %c0_26 = arith.constant 0 : index
      %50 = vector.load %arg1[%c0_24, %49, %c0_25, %c0_26] : memref<1x10x10x128xbf16, #tpu.memory_space<vmem>>, vector<1x1x10x128xbf16>
      %51 = vector.shape_cast %50 : vector<1x1x10x128xbf16> to vector<1x10x128xbf16>
      %52 = vector.shape_cast %51 : vector<1x10x128xbf16> to vector<10x128xbf16>
      %53 = vector.extract_strided_slice %52 {offsets = [0, 0], sizes = [7, 128], strides = [1, 1]} : vector<10x128xbf16> to vector<7x128xbf16>
      %54 = vector.extract_strided_slice %52 {offsets = [1, 0], sizes = [7, 128], strides = [1, 1]} : vector<10x128xbf16> to vector<7x128xbf16>
      %55 = vector.extract_strided_slice %52 {offsets = [2, 0], sizes = [7, 128], strides = [1, 1]} : vector<10x128xbf16> to vector<7x128xbf16>
      %56 = vector.extract_strided_slice %52 {offsets = [3, 0], sizes = [7, 128], strides = [1, 1]} : vector<10x128xbf16> to vector<7x128xbf16>
      %57 = tpu.concatenate %53, %54, %55, %56 in 1 : vector<7x128xbf16>, vector<7x128xbf16>, vector<7x128xbf16>, vector<7x128xbf16> -> vector<7x512xbf16>
      %c3 = arith.constant 3 : index
      %c0_27 = arith.constant 0 : index
      %c0_28 = arith.constant 0 : index
      %58 = vector.load %arg2[%c3, %c0_27, %c0_28] : memref<4x512x128xbf16, #tpu.memory_space<vmem>>, vector<1x512x128xbf16>
      %59 = vector.shape_cast %58 : vector<1x512x128xbf16> to vector<512x128xbf16>
      %cst_29 = arith.constant dense<0.000000e+00> : vector<7x128xf32>
      %60 = tpu.matmul %57, %59, %cst_29 {dimension_numbers = #tpu.dot_dimension_numbers<[1], [0], [0], [1], [0, 0, 1, 1], [], []>} : vector<7x512xbf16>, vector<512x128xbf16>, vector<7x128xf32> -> vector<7x128xf32>
      %61 = arith.addf %47, %60 : vector<7x128xf32>
      %cst_30 = arith.constant 0.000000e+00 : f32
      %62 = vector.broadcast %cst_30 : f32 to vector<7x128xf32>
      %63 = arith.maximumf %61, %62 : vector<7x128xf32>
      %64 = arith.truncf %63 : vector<7x128xf32> to vector<7x128xbf16>
      %65 = vector.shape_cast %64 : vector<7x128xbf16> to vector<1x7x128xbf16>
      %c0_31 = arith.constant 0 : index
      %66 = arith.index_cast %3 : i32 to index
      %c0_32 = arith.constant 0 : index
      %c0_33 = arith.constant 0 : index
      %67 = vector.load %arg4[%c0_31, %66, %c0_32, %c0_33] : memref<1x7x7x128xbf16, #tpu.memory_space<vmem>>, vector<1x1x7x128xbf16>
      %68 = vector.shape_cast %67 : vector<1x1x7x128xbf16> to vector<1x7x128xbf16>
      %69 = vector.shape_cast %65 : vector<1x7x128xbf16> to vector<1x1x7x128xbf16>
      tpu.vector_store %arg4[%c0_31, %66, %c0_32, %c0_33], %69 {strides = array<i32>} : memref<1x7x7x128xbf16, #tpu.memory_space<vmem>>, vector<1x1x7x128xbf16>,
    }
    %c7_i32_1 = arith.constant 7 : i32
    return
  }
  func.func @transform_0(%arg0: i32) -> (i32, i32, i32, i32) {
    %c0_i32 = arith.constant 0 : i32
    %c0_i32_0 = arith.constant 0 : i32
    %c0_i32_1 = arith.constant 0 : i32
    %c0_i32_2 = arith.constant 0 : i32
    return %arg0, %c0_i32, %c0_i32_0, %c0_i32_1 : i32, i32, i32, i32
  }
  func.func @transform_1(%arg0: i32) -> (i32, i32, i32) {
    %c0_i32 = arith.constant 0 : i32
    %c0_i32_0 = arith.constant 0 : i32
    %c0_i32_1 = arith.constant 0 : i32
    %c0_i32_2 = arith.constant 0 : i32
    return %c0_i32, %c0_i32_0, %c0_i32_1 : i32, i32, i32
  }
  func.func @transform_2(%arg0: i32) -> (i32, i32) {
    %c0_i32 = arith.constant 0 : i32
    %c0_i32_0 = arith.constant 0 : i32
    %c0_i32_1 = arith.constant 0 : i32
    return %c0_i32, %c0_i32_0 : i32, i32
  }
  func.func @transform_3(%arg0: i32) -> (i32, i32, i32, i32) {
    %c0_i32 = arith.constant 0 : i32
    %c0_i32_0 = arith.constant 0 : i32
    %c0_i32_1 = arith.constant 0 : i32
    %c0_i32_2 = arith.constant 0 : i32
    return %arg0, %c0_i32, %c0_i32_0, %c0_i32_1 : i32, i32, i32, i32
  }
}

module attributes {stable_mosaic.version = 11 : i64} {
  func.func @conv_relu_kernel(%arg0: i32, %arg1: memref<1x13x13x128xbf16, #tpu.memory_space<vmem>>, %arg2: memref<4x512x128xbf16, #tpu.memory_space<vmem>>, %arg3: memref<1x128xf32, #tpu.memory_space<vmem>>, %arg4: memref<1x10x10x128xbf16, #tpu.memory_space<vmem>>) attributes {dimension_semantics = [#tpu.dimension_semantics<parallel>], iteration_bounds = array<i64: 2>, scalar_prefetch = 0 : i64, scratch_operands = 0 : i64, tpu.core_type = #tpu.core_type<tc>, window_params = [{transform_indices = @transform_0, window_bounds = array<i64: 1, 13, 13, 128>}, {pipeline_mode = #tpu.pipeline_mode<synchronous>, transform_indices = @transform_1, window_bounds = array<i64: 4, 512, 128>}, {pipeline_mode = #tpu.pipeline_mode<synchronous>, transform_indices = @transform_2, window_bounds = array<i64: 1, 128>}, {transform_indices = @transform_3, window_bounds = array<i64: 1, 10, 10, 128>}]} {
    %c0 = arith.constant 0 : index
    %c0_0 = arith.constant 0 : index
    %0 = vector.load %arg3[%c0, %c0_0] : memref<1x128xf32, #tpu.memory_space<vmem>>, vector<1x128xf32>
    %c0_i32 = arith.constant 0 : i32
    %c10_i32 = arith.constant 10 : i32
    %1 = arith.addi %c0_i32, %c10_i32 : i32
    %c1_i32 = arith.constant 1 : i32
    scf.for %arg5 = %c0_i32 to %1 step %c1_i32  : i32 {
      %c1_i32_2 = arith.constant 1 : i32
      %2 = arith.muli %arg5, %c1_i32_2 : i32
      %c0_i32_3 = arith.constant 0 : i32
      %3 = arith.addi %c0_i32_3, %2 : i32
      %4 = vector.shape_cast %0 : vector<1x128xf32> to vector<1x128xf32>
      %5 = vector.broadcast %4 : vector<1x128xf32> to vector<10x128xf32>
      %c0_i32_4 = arith.constant 0 : i32
      %6 = arith.addi %3, %c0_i32_4 : i32
      %c0_5 = arith.constant 0 : index
      %7 = arith.index_cast %6 : i32 to index
      %c0_6 = arith.constant 0 : index
      %c0_7 = arith.constant 0 : index
      %8 = vector.load %arg1[%c0_5, %7, %c0_6, %c0_7] : memref<1x13x13x128xbf16, #tpu.memory_space<vmem>>, vector<1x1x13x128xbf16>
      %9 = vector.shape_cast %8 : vector<1x1x13x128xbf16> to vector<1x13x128xbf16>
      %10 = vector.shape_cast %9 : vector<1x13x128xbf16> to vector<13x128xbf16>
      %11 = vector.extract_strided_slice %10 {offsets = [0, 0], sizes = [10, 128], strides = [1, 1]} : vector<13x128xbf16> to vector<10x128xbf16>
      %12 = vector.extract_strided_slice %10 {offsets = [1, 0], sizes = [10, 128], strides = [1, 1]} : vector<13x128xbf16> to vector<10x128xbf16>
      %13 = vector.extract_strided_slice %10 {offsets = [2, 0], sizes = [10, 128], strides = [1, 1]} : vector<13x128xbf16> to vector<10x128xbf16>
      %14 = vector.extract_strided_slice %10 {offsets = [3, 0], sizes = [10, 128], strides = [1, 1]} : vector<13x128xbf16> to vector<10x128xbf16>
      %15 = tpu.concatenate %11, %12, %13, %14 in 1 : vector<10x128xbf16>, vector<10x128xbf16>, vector<10x128xbf16>, vector<10x128xbf16> -> vector<10x512xbf16>
      %c0_8 = arith.constant 0 : index
      %c0_9 = arith.constant 0 : index
      %c0_10 = arith.constant 0 : index
      %16 = vector.load %arg2[%c0_8, %c0_9, %c0_10] : memref<4x512x128xbf16, #tpu.memory_space<vmem>>, vector<1x512x128xbf16>
      %17 = vector.shape_cast %16 : vector<1x512x128xbf16> to vector<512x128xbf16>
      %cst = arith.constant dense<0.000000e+00> : vector<10x128xf32>
      %18 = tpu.matmul %15, %17, %cst {dimension_numbers = #tpu.dot_dimension_numbers<[1], [0], [0], [1], [0, 0, 1, 1], [], []>} : vector<10x512xbf16>, vector<512x128xbf16>, vector<10x128xf32> -> vector<10x128xf32>
      %19 = arith.addf %5, %18 : vector<10x128xf32>
      %c1_i32_11 = arith.constant 1 : i32
      %20 = arith.addi %3, %c1_i32_11 : i32
      %c0_12 = arith.constant 0 : index
      %21 = arith.index_cast %20 : i32 to index
      %c0_13 = arith.constant 0 : index
      %c0_14 = arith.constant 0 : index
      %22 = vector.load %arg1[%c0_12, %21, %c0_13, %c0_14] : memref<1x13x13x128xbf16, #tpu.memory_space<vmem>>, vector<1x1x13x128xbf16>
      %23 = vector.shape_cast %22 : vector<1x1x13x128xbf16> to vector<1x13x128xbf16>
      %24 = vector.shape_cast %23 : vector<1x13x128xbf16> to vector<13x128xbf16>
      %25 = vector.extract_strided_slice %24 {offsets = [0, 0], sizes = [10, 128], strides = [1, 1]} : vector<13x128xbf16> to vector<10x128xbf16>
      %26 = vector.extract_strided_slice %24 {offsets = [1, 0], sizes = [10, 128], strides = [1, 1]} : vector<13x128xbf16> to vector<10x128xbf16>
      %27 = vector.extract_strided_slice %24 {offsets = [2, 0], sizes = [10, 128], strides = [1, 1]} : vector<13x128xbf16> to vector<10x128xbf16>
      %28 = vector.extract_strided_slice %24 {offsets = [3, 0], sizes = [10, 128], strides = [1, 1]} : vector<13x128xbf16> to vector<10x128xbf16>
      %29 = tpu.concatenate %25, %26, %27, %28 in 1 : vector<10x128xbf16>, vector<10x128xbf16>, vector<10x128xbf16>, vector<10x128xbf16> -> vector<10x512xbf16>
      %c1 = arith.constant 1 : index
      %c0_15 = arith.constant 0 : index
      %c0_16 = arith.constant 0 : index
      %30 = vector.load %arg2[%c1, %c0_15, %c0_16] : memref<4x512x128xbf16, #tpu.memory_space<vmem>>, vector<1x512x128xbf16>
      %31 = vector.shape_cast %30 : vector<1x512x128xbf16> to vector<512x128xbf16>
      %cst_17 = arith.constant dense<0.000000e+00> : vector<10x128xf32>
      %32 = tpu.matmul %29, %31, %cst_17 {dimension_numbers = #tpu.dot_dimension_numbers<[1], [0], [0], [1], [0, 0, 1, 1], [], []>} : vector<10x512xbf16>, vector<512x128xbf16>, vector<10x128xf32> -> vector<10x128xf32>
      %33 = arith.addf %19, %32 : vector<10x128xf32>
      %c2_i32 = arith.constant 2 : i32
      %34 = arith.addi %3, %c2_i32 : i32
      %c0_18 = arith.constant 0 : index
      %35 = arith.index_cast %34 : i32 to index
      %c0_19 = arith.constant 0 : index
      %c0_20 = arith.constant 0 : index
      %36 = vector.load %arg1[%c0_18, %35, %c0_19, %c0_20] : memref<1x13x13x128xbf16, #tpu.memory_space<vmem>>, vector<1x1x13x128xbf16>
      %37 = vector.shape_cast %36 : vector<1x1x13x128xbf16> to vector<1x13x128xbf16>
      %38 = vector.shape_cast %37 : vector<1x13x128xbf16> to vector<13x128xbf16>
      %39 = vector.extract_strided_slice %38 {offsets = [0, 0], sizes = [10, 128], strides = [1, 1]} : vector<13x128xbf16> to vector<10x128xbf16>
      %40 = vector.extract_strided_slice %38 {offsets = [1, 0], sizes = [10, 128], strides = [1, 1]} : vector<13x128xbf16> to vector<10x128xbf16>
      %41 = vector.extract_strided_slice %38 {offsets = [2, 0], sizes = [10, 128], strides = [1, 1]} : vector<13x128xbf16> to vector<10x128xbf16>
      %42 = vector.extract_strided_slice %38 {offsets = [3, 0], sizes = [10, 128], strides = [1, 1]} : vector<13x128xbf16> to vector<10x128xbf16>
      %43 = tpu.concatenate %39, %40, %41, %42 in 1 : vector<10x128xbf16>, vector<10x128xbf16>, vector<10x128xbf16>, vector<10x128xbf16> -> vector<10x512xbf16>
      %c2 = arith.constant 2 : index
      %c0_21 = arith.constant 0 : index
      %c0_22 = arith.constant 0 : index
      %44 = vector.load %arg2[%c2, %c0_21, %c0_22] : memref<4x512x128xbf16, #tpu.memory_space<vmem>>, vector<1x512x128xbf16>
      %45 = vector.shape_cast %44 : vector<1x512x128xbf16> to vector<512x128xbf16>
      %cst_23 = arith.constant dense<0.000000e+00> : vector<10x128xf32>
      %46 = tpu.matmul %43, %45, %cst_23 {dimension_numbers = #tpu.dot_dimension_numbers<[1], [0], [0], [1], [0, 0, 1, 1], [], []>} : vector<10x512xbf16>, vector<512x128xbf16>, vector<10x128xf32> -> vector<10x128xf32>
      %47 = arith.addf %33, %46 : vector<10x128xf32>
      %c3_i32 = arith.constant 3 : i32
      %48 = arith.addi %3, %c3_i32 : i32
      %c0_24 = arith.constant 0 : index
      %49 = arith.index_cast %48 : i32 to index
      %c0_25 = arith.constant 0 : index
      %c0_26 = arith.constant 0 : index
      %50 = vector.load %arg1[%c0_24, %49, %c0_25, %c0_26] : memref<1x13x13x128xbf16, #tpu.memory_space<vmem>>, vector<1x1x13x128xbf16>
      %51 = vector.shape_cast %50 : vector<1x1x13x128xbf16> to vector<1x13x128xbf16>
      %52 = vector.shape_cast %51 : vector<1x13x128xbf16> to vector<13x128xbf16>
      %53 = vector.extract_strided_slice %52 {offsets = [0, 0], sizes = [10, 128], strides = [1, 1]} : vector<13x128xbf16> to vector<10x128xbf16>
      %54 = vector.extract_strided_slice %52 {offsets = [1, 0], sizes = [10, 128], strides = [1, 1]} : vector<13x128xbf16> to vector<10x128xbf16>
      %55 = vector.extract_strided_slice %52 {offsets = [2, 0], sizes = [10, 128], strides = [1, 1]} : vector<13x128xbf16> to vector<10x128xbf16>
      %56 = vector.extract_strided_slice %52 {offsets = [3, 0], sizes = [10, 128], strides = [1, 1]} : vector<13x128xbf16> to vector<10x128xbf16>
      %57 = tpu.concatenate %53, %54, %55, %56 in 1 : vector<10x128xbf16>, vector<10x128xbf16>, vector<10x128xbf16>, vector<10x128xbf16> -> vector<10x512xbf16>
      %c3 = arith.constant 3 : index
      %c0_27 = arith.constant 0 : index
      %c0_28 = arith.constant 0 : index
      %58 = vector.load %arg2[%c3, %c0_27, %c0_28] : memref<4x512x128xbf16, #tpu.memory_space<vmem>>, vector<1x512x128xbf16>
      %59 = vector.shape_cast %58 : vector<1x512x128xbf16> to vector<512x128xbf16>
      %cst_29 = arith.constant dense<0.000000e+00> : vector<10x128xf32>
      %60 = tpu.matmul %57, %59, %cst_29 {dimension_numbers = #tpu.dot_dimension_numbers<[1], [0], [0], [1], [0, 0, 1, 1], [], []>} : vector<10x512xbf16>, vector<512x128xbf16>, vector<10x128xf32> -> vector<10x128xf32>
      %61 = arith.addf %47, %60 : vector<10x128xf32>
      %cst_30 = arith.constant 0.000000e+00 : f32
      %62 = vector.broadcast %cst_30 : f32 to vector<10x128xf32>
      %63 = arith.maximumf %61, %62 : vector<10x128xf32>
      %64 = arith.truncf %63 : vector<10x128xf32> to vector<10x128xbf16>
      %65 = vector.shape_cast %64 : vector<10x128xbf16> to vector<1x10x128xbf16>
      %c0_31 = arith.constant 0 : index
      %66 = arith.index_cast %3 : i32 to index
      %c0_32 = arith.constant 0 : index
      %c0_33 = arith.constant 0 : index
      %67 = vector.load %arg4[%c0_31, %66, %c0_32, %c0_33] : memref<1x10x10x128xbf16, #tpu.memory_space<vmem>>, vector<1x1x10x128xbf16>
      %68 = vector.shape_cast %67 : vector<1x1x10x128xbf16> to vector<1x10x128xbf16>
      %69 = vector.shape_cast %65 : vector<1x10x128xbf16> to vector<1x1x10x128xbf16>
      tpu.vector_store %arg4[%c0_31, %66, %c0_32, %c0_33], %69 {strides = array<i32>} : memref<1x10x10x128xbf16, #tpu.memory_space<vmem>>, vector<1x1x10x128xbf16>,
    }
    %c10_i32_1 = arith.constant 10 : i32
    return
  }
  func.func @transform_0(%arg0: i32) -> (i32, i32, i32, i32) {
    %c0_i32 = arith.constant 0 : i32
    %c0_i32_0 = arith.constant 0 : i32
    %c0_i32_1 = arith.constant 0 : i32
    %c0_i32_2 = arith.constant 0 : i32
    return %arg0, %c0_i32, %c0_i32_0, %c0_i32_1 : i32, i32, i32, i32
  }
  func.func @transform_1(%arg0: i32) -> (i32, i32, i32) {
    %c0_i32 = arith.constant 0 : i32
    %c0_i32_0 = arith.constant 0 : i32
    %c0_i32_1 = arith.constant 0 : i32
    %c0_i32_2 = arith.constant 0 : i32
    return %c0_i32, %c0_i32_0, %c0_i32_1 : i32, i32, i32
  }
  func.func @transform_2(%arg0: i32) -> (i32, i32) {
    %c0_i32 = arith.constant 0 : i32
    %c0_i32_0 = arith.constant 0 : i32
    %c0_i32_1 = arith.constant 0 : i32
    return %c0_i32, %c0_i32_0 : i32, i32
  }
  func.func @transform_3(%arg0: i32) -> (i32, i32, i32, i32) {
    %c0_i32 = arith.constant 0 : i32
    %c0_i32_0 = arith.constant 0 : i32
    %c0_i32_1 = arith.constant 0 : i32
    %c0_i32_2 = arith.constant 0 : i32
    return %arg0, %c0_i32, %c0_i32_0, %c0_i32_1 : i32, i32, i32, i32
  }
}

module attributes {stable_mosaic.version = 11 : i64} {
  func.func @conv_relu_kernel(%arg0: i32, %arg1: memref<1x7x7x128xbf16, #tpu.memory_space<vmem>>, %arg2: memref<4x512x128xbf16, #tpu.memory_space<vmem>>, %arg3: memref<1x128xf32, #tpu.memory_space<vmem>>, %arg4: memref<1x4x4x128xbf16, #tpu.memory_space<vmem>>) attributes {dimension_semantics = [#tpu.dimension_semantics<parallel>], iteration_bounds = array<i64: 2>, scalar_prefetch = 0 : i64, scratch_operands = 0 : i64, tpu.core_type = #tpu.core_type<tc>, window_params = [{transform_indices = @transform_0, window_bounds = array<i64: 1, 7, 7, 128>}, {pipeline_mode = #tpu.pipeline_mode<synchronous>, transform_indices = @transform_1, window_bounds = array<i64: 4, 512, 128>}, {pipeline_mode = #tpu.pipeline_mode<synchronous>, transform_indices = @transform_2, window_bounds = array<i64: 1, 128>}, {transform_indices = @transform_3, window_bounds = array<i64: 1, 4, 4, 128>}]} {
    %c0 = arith.constant 0 : index
    %c0_0 = arith.constant 0 : index
    %0 = vector.load %arg3[%c0, %c0_0] : memref<1x128xf32, #tpu.memory_space<vmem>>, vector<1x128xf32>
    %c0_i32 = arith.constant 0 : i32
    %c4_i32 = arith.constant 4 : i32
    %1 = arith.addi %c0_i32, %c4_i32 : i32
    %c1_i32 = arith.constant 1 : i32
    scf.for %arg5 = %c0_i32 to %1 step %c1_i32  : i32 {
      %c1_i32_2 = arith.constant 1 : i32
      %2 = arith.muli %arg5, %c1_i32_2 : i32
      %c0_i32_3 = arith.constant 0 : i32
      %3 = arith.addi %c0_i32_3, %2 : i32
      %4 = vector.shape_cast %0 : vector<1x128xf32> to vector<1x128xf32>
      %5 = vector.broadcast %4 : vector<1x128xf32> to vector<4x128xf32>
      %c0_i32_4 = arith.constant 0 : i32
      %6 = arith.addi %3, %c0_i32_4 : i32
      %c0_5 = arith.constant 0 : index
      %7 = arith.index_cast %6 : i32 to index
      %c0_6 = arith.constant 0 : index
      %c0_7 = arith.constant 0 : index
      %8 = vector.load %arg1[%c0_5, %7, %c0_6, %c0_7] : memref<1x7x7x128xbf16, #tpu.memory_space<vmem>>, vector<1x1x7x128xbf16>
      %9 = vector.shape_cast %8 : vector<1x1x7x128xbf16> to vector<1x7x128xbf16>
      %10 = vector.shape_cast %9 : vector<1x7x128xbf16> to vector<7x128xbf16>
      %11 = vector.extract_strided_slice %10 {offsets = [0, 0], sizes = [4, 128], strides = [1, 1]} : vector<7x128xbf16> to vector<4x128xbf16>
      %12 = vector.extract_strided_slice %10 {offsets = [1, 0], sizes = [4, 128], strides = [1, 1]} : vector<7x128xbf16> to vector<4x128xbf16>
      %13 = vector.extract_strided_slice %10 {offsets = [2, 0], sizes = [4, 128], strides = [1, 1]} : vector<7x128xbf16> to vector<4x128xbf16>
      %14 = vector.extract_strided_slice %10 {offsets = [3, 0], sizes = [4, 128], strides = [1, 1]} : vector<7x128xbf16> to vector<4x128xbf16>
      %15 = tpu.concatenate %11, %12, %13, %14 in 1 : vector<4x128xbf16>, vector<4x128xbf16>, vector<4x128xbf16>, vector<4x128xbf16> -> vector<4x512xbf16>
      %c0_8 = arith.constant 0 : index
      %c0_9 = arith.constant 0 : index
      %c0_10 = arith.constant 0 : index
      %16 = vector.load %arg2[%c0_8, %c0_9, %c0_10] : memref<4x512x128xbf16, #tpu.memory_space<vmem>>, vector<1x512x128xbf16>
      %17 = vector.shape_cast %16 : vector<1x512x128xbf16> to vector<512x128xbf16>
      %cst = arith.constant dense<0.000000e+00> : vector<4x128xf32>
      %18 = tpu.matmul %15, %17, %cst {dimension_numbers = #tpu.dot_dimension_numbers<[1], [0], [0], [1], [0, 0, 1, 1], [], []>} : vector<4x512xbf16>, vector<512x128xbf16>, vector<4x128xf32> -> vector<4x128xf32>
      %19 = arith.addf %5, %18 : vector<4x128xf32>
      %c1_i32_11 = arith.constant 1 : i32
      %20 = arith.addi %3, %c1_i32_11 : i32
      %c0_12 = arith.constant 0 : index
      %21 = arith.index_cast %20 : i32 to index
      %c0_13 = arith.constant 0 : index
      %c0_14 = arith.constant 0 : index
      %22 = vector.load %arg1[%c0_12, %21, %c0_13, %c0_14] : memref<1x7x7x128xbf16, #tpu.memory_space<vmem>>, vector<1x1x7x128xbf16>
      %23 = vector.shape_cast %22 : vector<1x1x7x128xbf16> to vector<1x7x128xbf16>
      %24 = vector.shape_cast %23 : vector<1x7x128xbf16> to vector<7x128xbf16>
      %25 = vector.extract_strided_slice %24 {offsets = [0, 0], sizes = [4, 128], strides = [1, 1]} : vector<7x128xbf16> to vector<4x128xbf16>
      %26 = vector.extract_strided_slice %24 {offsets = [1, 0], sizes = [4, 128], strides = [1, 1]} : vector<7x128xbf16> to vector<4x128xbf16>
      %27 = vector.extract_strided_slice %24 {offsets = [2, 0], sizes = [4, 128], strides = [1, 1]} : vector<7x128xbf16> to vector<4x128xbf16>
      %28 = vector.extract_strided_slice %24 {offsets = [3, 0], sizes = [4, 128], strides = [1, 1]} : vector<7x128xbf16> to vector<4x128xbf16>
      %29 = tpu.concatenate %25, %26, %27, %28 in 1 : vector<4x128xbf16>, vector<4x128xbf16>, vector<4x128xbf16>, vector<4x128xbf16> -> vector<4x512xbf16>
      %c1 = arith.constant 1 : index
      %c0_15 = arith.constant 0 : index
      %c0_16 = arith.constant 0 : index
      %30 = vector.load %arg2[%c1, %c0_15, %c0_16] : memref<4x512x128xbf16, #tpu.memory_space<vmem>>, vector<1x512x128xbf16>
      %31 = vector.shape_cast %30 : vector<1x512x128xbf16> to vector<512x128xbf16>
      %cst_17 = arith.constant dense<0.000000e+00> : vector<4x128xf32>
      %32 = tpu.matmul %29, %31, %cst_17 {dimension_numbers = #tpu.dot_dimension_numbers<[1], [0], [0], [1], [0, 0, 1, 1], [], []>} : vector<4x512xbf16>, vector<512x128xbf16>, vector<4x128xf32> -> vector<4x128xf32>
      %33 = arith.addf %19, %32 : vector<4x128xf32>
      %c2_i32 = arith.constant 2 : i32
      %34 = arith.addi %3, %c2_i32 : i32
      %c0_18 = arith.constant 0 : index
      %35 = arith.index_cast %34 : i32 to index
      %c0_19 = arith.constant 0 : index
      %c0_20 = arith.constant 0 : index
      %36 = vector.load %arg1[%c0_18, %35, %c0_19, %c0_20] : memref<1x7x7x128xbf16, #tpu.memory_space<vmem>>, vector<1x1x7x128xbf16>
      %37 = vector.shape_cast %36 : vector<1x1x7x128xbf16> to vector<1x7x128xbf16>
      %38 = vector.shape_cast %37 : vector<1x7x128xbf16> to vector<7x128xbf16>
      %39 = vector.extract_strided_slice %38 {offsets = [0, 0], sizes = [4, 128], strides = [1, 1]} : vector<7x128xbf16> to vector<4x128xbf16>
      %40 = vector.extract_strided_slice %38 {offsets = [1, 0], sizes = [4, 128], strides = [1, 1]} : vector<7x128xbf16> to vector<4x128xbf16>
      %41 = vector.extract_strided_slice %38 {offsets = [2, 0], sizes = [4, 128], strides = [1, 1]} : vector<7x128xbf16> to vector<4x128xbf16>
      %42 = vector.extract_strided_slice %38 {offsets = [3, 0], sizes = [4, 128], strides = [1, 1]} : vector<7x128xbf16> to vector<4x128xbf16>
      %43 = tpu.concatenate %39, %40, %41, %42 in 1 : vector<4x128xbf16>, vector<4x128xbf16>, vector<4x128xbf16>, vector<4x128xbf16> -> vector<4x512xbf16>
      %c2 = arith.constant 2 : index
      %c0_21 = arith.constant 0 : index
      %c0_22 = arith.constant 0 : index
      %44 = vector.load %arg2[%c2, %c0_21, %c0_22] : memref<4x512x128xbf16, #tpu.memory_space<vmem>>, vector<1x512x128xbf16>
      %45 = vector.shape_cast %44 : vector<1x512x128xbf16> to vector<512x128xbf16>
      %cst_23 = arith.constant dense<0.000000e+00> : vector<4x128xf32>
      %46 = tpu.matmul %43, %45, %cst_23 {dimension_numbers = #tpu.dot_dimension_numbers<[1], [0], [0], [1], [0, 0, 1, 1], [], []>} : vector<4x512xbf16>, vector<512x128xbf16>, vector<4x128xf32> -> vector<4x128xf32>
      %47 = arith.addf %33, %46 : vector<4x128xf32>
      %c3_i32 = arith.constant 3 : i32
      %48 = arith.addi %3, %c3_i32 : i32
      %c0_24 = arith.constant 0 : index
      %49 = arith.index_cast %48 : i32 to index
      %c0_25 = arith.constant 0 : index
      %c0_26 = arith.constant 0 : index
      %50 = vector.load %arg1[%c0_24, %49, %c0_25, %c0_26] : memref<1x7x7x128xbf16, #tpu.memory_space<vmem>>, vector<1x1x7x128xbf16>
      %51 = vector.shape_cast %50 : vector<1x1x7x128xbf16> to vector<1x7x128xbf16>
      %52 = vector.shape_cast %51 : vector<1x7x128xbf16> to vector<7x128xbf16>
      %53 = vector.extract_strided_slice %52 {offsets = [0, 0], sizes = [4, 128], strides = [1, 1]} : vector<7x128xbf16> to vector<4x128xbf16>
      %54 = vector.extract_strided_slice %52 {offsets = [1, 0], sizes = [4, 128], strides = [1, 1]} : vector<7x128xbf16> to vector<4x128xbf16>
      %55 = vector.extract_strided_slice %52 {offsets = [2, 0], sizes = [4, 128], strides = [1, 1]} : vector<7x128xbf16> to vector<4x128xbf16>
      %56 = vector.extract_strided_slice %52 {offsets = [3, 0], sizes = [4, 128], strides = [1, 1]} : vector<7x128xbf16> to vector<4x128xbf16>
      %57 = tpu.concatenate %53, %54, %55, %56 in 1 : vector<4x128xbf16>, vector<4x128xbf16>, vector<4x128xbf16>, vector<4x128xbf16> -> vector<4x512xbf16>
      %c3 = arith.constant 3 : index
      %c0_27 = arith.constant 0 : index
      %c0_28 = arith.constant 0 : index
      %58 = vector.load %arg2[%c3, %c0_27, %c0_28] : memref<4x512x128xbf16, #tpu.memory_space<vmem>>, vector<1x512x128xbf16>
      %59 = vector.shape_cast %58 : vector<1x512x128xbf16> to vector<512x128xbf16>
      %cst_29 = arith.constant dense<0.000000e+00> : vector<4x128xf32>
      %60 = tpu.matmul %57, %59, %cst_29 {dimension_numbers = #tpu.dot_dimension_numbers<[1], [0], [0], [1], [0, 0, 1, 1], [], []>} : vector<4x512xbf16>, vector<512x128xbf16>, vector<4x128xf32> -> vector<4x128xf32>
      %61 = arith.addf %47, %60 : vector<4x128xf32>
      %cst_30 = arith.constant 0.000000e+00 : f32
      %62 = vector.broadcast %cst_30 : f32 to vector<4x128xf32>
      %63 = arith.maximumf %61, %62 : vector<4x128xf32>
      %64 = arith.truncf %63 : vector<4x128xf32> to vector<4x128xbf16>
      %65 = vector.shape_cast %64 : vector<4x128xbf16> to vector<1x4x128xbf16>
      %c0_31 = arith.constant 0 : index
      %66 = arith.index_cast %3 : i32 to index
      %c0_32 = arith.constant 0 : index
      %c0_33 = arith.constant 0 : index
      %67 = vector.load %arg4[%c0_31, %66, %c0_32, %c0_33] : memref<1x4x4x128xbf16, #tpu.memory_space<vmem>>, vector<1x1x4x128xbf16>
      %68 = vector.shape_cast %67 : vector<1x1x4x128xbf16> to vector<1x4x128xbf16>
      %69 = vector.shape_cast %65 : vector<1x4x128xbf16> to vector<1x1x4x128xbf16>
      tpu.vector_store %arg4[%c0_31, %66, %c0_32, %c0_33], %69 {strides = array<i32>} : memref<1x4x4x128xbf16, #tpu.memory_space<vmem>>, vector<1x1x4x128xbf16>,
    }
    %c4_i32_1 = arith.constant 4 : i32
    return
  }
  func.func @transform_0(%arg0: i32) -> (i32, i32, i32, i32) {
    %c0_i32 = arith.constant 0 : i32
    %c0_i32_0 = arith.constant 0 : i32
    %c0_i32_1 = arith.constant 0 : i32
    %c0_i32_2 = arith.constant 0 : i32
    return %arg0, %c0_i32, %c0_i32_0, %c0_i32_1 : i32, i32, i32, i32
  }
  func.func @transform_1(%arg0: i32) -> (i32, i32, i32) {
    %c0_i32 = arith.constant 0 : i32
    %c0_i32_0 = arith.constant 0 : i32
    %c0_i32_1 = arith.constant 0 : i32
    %c0_i32_2 = arith.constant 0 : i32
    return %c0_i32, %c0_i32_0, %c0_i32_1 : i32, i32, i32
  }
  func.func @transform_2(%arg0: i32) -> (i32, i32) {
    %c0_i32 = arith.constant 0 : i32
    %c0_i32_0 = arith.constant 0 : i32
    %c0_i32_1 = arith.constant 0 : i32
    return %c0_i32, %c0_i32_0 : i32, i32
  }
  func.func @transform_3(%arg0: i32) -> (i32, i32, i32, i32) {
    %c0_i32 = arith.constant 0 : i32
    %c0_i32_0 = arith.constant 0 : i32
    %c0_i32_1 = arith.constant 0 : i32
    %c0_i32_2 = arith.constant 0 : i32
    return %arg0, %c0_i32, %c0_i32_0, %c0_i32_1 : i32, i32, i32, i32
  }
}

module attributes {stable_mosaic.version = 11 : i64} {
  func.func @head_kernel(%arg0: i32, %arg1: memref<2x2048xbf16, #tpu.memory_space<vmem>>, %arg2: memref<17x2048xbf16, #tpu.memory_space<vmem>>, %arg3: memref<1x17xf32, #tpu.memory_space<vmem>>, %arg4: memref<2x17xf32, #tpu.memory_space<vmem>>) attributes {dimension_semantics = [#tpu.dimension_semantics<arbitrary>], iteration_bounds = array<i64: 1>, scalar_prefetch = 0 : i64, scratch_operands = 0 : i64, tpu.core_type = #tpu.core_type<tc>, window_params = [{transform_indices = @transform_0, window_bounds = array<i64: 2, 2048>}, {transform_indices = @transform_1, window_bounds = array<i64: 17, 2048>}, {pipeline_mode = #tpu.pipeline_mode<synchronous>, transform_indices = @transform_2, window_bounds = array<i64: 1, 17>}, {pipeline_mode = #tpu.pipeline_mode<synchronous>, transform_indices = @transform_3, window_bounds = array<i64: 2, 17>}]} {
    %c0_i32 = arith.constant 0 : i32
    %0 = arith.cmpi eq, %arg0, %c0_i32 : i32
    %1 = arith.extui %0 : i1 to i32
    %c0_i32_0 = arith.constant 0 : i32
    %2 = arith.cmpi ne, %1, %c0_i32_0 : i32
    scf.if %2 {
      %c0_8 = arith.constant 0 : index
      %c0_9 = arith.constant 0 : index
      %9 = vector.load %arg3[%c0_8, %c0_9] : memref<1x17xf32, #tpu.memory_space<vmem>>, vector<1x17xf32>
      %10 = vector.shape_cast %9 : vector<1x17xf32> to vector<1x17xf32>
      %11 = vector.broadcast %10 : vector<1x17xf32> to vector<2x17xf32>
      %c0_10 = arith.constant 0 : index
      %c0_11 = arith.constant 0 : index
      %12 = vector.load %arg4[%c0_10, %c0_11] : memref<2x17xf32, #tpu.memory_space<vmem>>, vector<2x17xf32>
      tpu.vector_store %arg4[%c0_10, %c0_11], %11 {strides = array<i32>} : memref<2x17xf32, #tpu.memory_space<vmem>>, vector<2x17xf32>,
    } else {
    }
    %c0 = arith.constant 0 : index
    %c0_1 = arith.constant 0 : index
    %3 = vector.load %arg4[%c0, %c0_1] : memref<2x17xf32, #tpu.memory_space<vmem>>, vector<2x17xf32>
    %c0_2 = arith.constant 0 : index
    %c0_3 = arith.constant 0 : index
    %4 = vector.load %arg1[%c0_2, %c0_3] : memref<2x2048xbf16, #tpu.memory_space<vmem>>, vector<2x2048xbf16>
    %c0_4 = arith.constant 0 : index
    %c0_5 = arith.constant 0 : index
    %5 = vector.load %arg2[%c0_4, %c0_5] : memref<17x2048xbf16, #tpu.memory_space<vmem>>, vector<17x2048xbf16>
    %cst = arith.constant dense<0.000000e+00> : vector<2x17xf32>
    %6 = tpu.matmul %4, %5, %cst {dimension_numbers = #tpu.dot_dimension_numbers<[1], [1], [0], [0], [0, 0, 1, 0], [], []>} : vector<2x2048xbf16>, vector<17x2048xbf16>, vector<2x17xf32> -> vector<2x17xf32>
    %7 = arith.addf %3, %6 : vector<2x17xf32>
    %c0_6 = arith.constant 0 : index
    %c0_7 = arith.constant 0 : index
    %8 = vector.load %arg4[%c0_6, %c0_7] : memref<2x17xf32, #tpu.memory_space<vmem>>, vector<2x17xf32>
    tpu.vector_store %arg4[%c0_6, %c0_7], %7 {strides = array<i32>} : memref<2x17xf32, #tpu.memory_space<vmem>>, vector<2x17xf32>,
    return
  }
  func.func @transform_0(%arg0: i32) -> (i32, i32) {
    %c0_i32 = arith.constant 0 : i32
    %c0_i32_0 = arith.constant 0 : i32
    return %c0_i32, %arg0 : i32, i32
  }
  func.func @transform_1(%arg0: i32) -> (i32, i32) {
    %c0_i32 = arith.constant 0 : i32
    %c0_i32_0 = arith.constant 0 : i32
    return %c0_i32, %arg0 : i32, i32
  }
  func.func @transform_2(%arg0: i32) -> (i32, i32) {
    %c0_i32 = arith.constant 0 : i32
    %c0_i32_0 = arith.constant 0 : i32
    %c0_i32_1 = arith.constant 0 : i32
    return %c0_i32, %c0_i32_0 : i32, i32
  }
  func.func @transform_3(%arg0: i32) -> (i32, i32) {
    %c0_i32 = arith.constant 0 : i32
    %c0_i32_0 = arith.constant 0 : i32
    %c0_i32_1 = arith.constant 0 : i32
    return %c0_i32, %c0_i32_0 : i32, i32
  }
}

</mosaic_0001>

<bundles_post_ra>
// kernel: convnet_forward.5
= control target key start
LH: loop header
LB: loop body
LE: loop exit
PB: predicated region body
PF: predicated region fallthrough
CT: control target
= control target key end

     0   :  { %s422_s12 = smov 0   ;;  %s460_s0 = inlined_call_operand.vmem [shape: bf16[2,13,13,16], index: 0, kind: input, shape index: {}]   ;;  %s461_s1 = inlined_call_operand.vmem [shape: bf16[1,16,128], index: 1, kind: input, shape index: {}]   ;;  %s462_s2 = inlined_call_operand.vmem [shape: f32[1,128], index: 2, kind: input, shape index: {}]   ;;  %s463_s3 = inlined_call_operand.vmem [shape: bf16[2,13,13,128], index: 3, kind: output, shape index: {}]  }
   0x1 LB: > { %s333_s13 = sadd.s32 4294967295, %s394_s12   ;;  %p337_p0 = scmp.ge.s32.totalorder %s394_s12, 1  ;;  %s394_s12 = sphi %s422_s12, %s13_s12  }
   0x2   : > { %p137_p1 = scmp.lt.s32.totalorder %s394_s12, 3 }
   0x4   : > { %p138_p2 = pnand %p337_p0, %p137_p1 }
   0x5   : > { %p161_p3 = scmp.lt.s32.totalorder (!%p138_p2), %s333_s13, 1  ;;  %s443_s23 = smov (!%p138_p2), 0  }
   0x6   : > { %141 = sbr.rel (%p138_p2) target bundleno = 225 (0xe1), region = 32 }
   0xb   : > { %v340_v0 = vld [vmem:[%s462_s2] ss:$0 sm:$0xff]  ;;  %s465_s13 = smov (!%p161_p3, %s333_s13), 1 }
   0xc   : > { %s363_s16 = smul.u32 104, %s465_s13 }
   0xe   : > { %s436_s19 = scalar_lea.vmem %s460_s0, %s363_s16  ;;  %s441_s22 = scalar_lea.vmem %s463_s3, %s363_s16 }
   0xf LB: >> { %v382_v1 = vld [vmem:[%s461_s1] sm:$0xff]   ;;  %v400_v2 = vmov 0.0   ;;  %vm401_vm0 = vmmov 0   ;;  %s351_s26 = sshll.u32 %s398_s23, 3  ;;  %vm203_vm1 = vcmask 130048   ;;  %vm263_vm2 = vcmask 1042432   ;;  %s398_s23 = sphi %s443_s23, %s178_s23  }
  0x10   : >> { %357 = vmatprep.subr.bf16.mxu0 %v400_v2  ;;  %359 = vmatprep.mubr.msk.bf16.mxu0 %vm401_vm0, %v400_v2  ;;  %s187_s27 = scalar_lea.vmem %s436_s19, %s351_s26  ;;  %s261_s28 = scalar_lea.vmem %s441_s22, %s351_s26  ;;  %vm264_vm3 = vsmask.f32 2304 }
  0x11   : >> { %358 = vmatpush3.bf16.msra.mxu0 %v382_v1  ;;  %v383_v3 = vld [vmem:[%s187_s27] sm:$0x7f]   ;;  %vm265_vm4 = vmand %vm263_vm2, %vm264_vm3  ;;  %s178_s23 = sadd.s32 1, %s398_s23  }
  0x12   : >> { %v266_v13 = vld [vmem:[%s261_s28 + $0x4] sm:$0x7]  ;;  %p175_p4 = scmp.ge.s32.totalorder %s178_s23, 13  }
  0x14   : >> { %360 = vmatmul.mubr.msk.bf16.vlgmr.msra.gmra.mxu0 %vm203_vm1, %v383_v3 }
  0xd4   : >> { %v241_v4 = vpop.f32.mrf.mxu0 }
  0xd5   : >> { %v248_v5 = vadd.f32 %v340_v0, %v241_v4 }
  0xd6   : >> { %v361_v6 = vpop.f32.mrf.mxu0 }
  0xd7   : >> { %v250_v7 = vmax.f32 %v248_v5, 0.0 }
  0xd8   : >> { %v244_v8 = vpop.f32.mrf.mxu0 }
  0xd9   : >> { %v352_v9 = vpack.c.bf16 %v250_v7, %v250_v7  ;;  %v249_v10 = vadd.f32 %v340_v0, %v244_v8 }
  0xda   : >> { %v362_v11 = vpop.f32.mrf.mxu0 }
  0xdb   : >> { %262 = vst [vmem:[%s261_s28] sm:$0xf] %v352_v9  ;;  %v251_v12 = vmax.f32 %v249_v10, 0.0 }
  0xdc   : > { %177 = sbr.rel (!%p175_p4) target bundleno = 15 (0xf), region = 71 }
  0xdd   : >> { %v353_v14 = vpack.c.bf16 %v251_v12, %v251_v12 }
  0xdf   : >> { %v267_v15 = vsel %vm265_vm4, %v353_v14, %v266_v13 }
  0xe0   : >> { %268 = vst [vmem:[%s261_s28 + $0x4] sm:$0x7] %v267_v15 }
  0xe1 PF: > { %s13_s12 = sadd.s32 1, %s394_s12  }
  0xe2   : > { %p10_p5 = scmp.ge.s32.totalorder %s13_s12, 4  }
  0xe4   :  { %12 = sbr.rel (!%p10_p5) target bundleno = 1 (0x1), region = 82 }

// kernel: convnet_forward.7
= control target key start
LH: loop header
LB: loop body
LE: loop exit
PB: predicated region body
PF: predicated region fallthrough
CT: control target
= control target key end

     0   :  { %s2459_s12 = smov 0   ;;  %s2892_s0 = inlined_call_operand.vmem [shape: bf16[2,10,10,128], index: 0, kind: input, shape index: {}]   ;;  %s2893_s1 = inlined_call_operand.vmem [shape: bf16[4,512,128], index: 1, kind: input, shape index: {}]   ;;  %s2894_s2 = inlined_call_operand.vmem [shape: f32[1,128], index: 2, kind: input, shape index: {}]   ;;  %s2895_s3 = inlined_call_operand.vmem [shape: bf16[2,7,7,128], index: 3, kind: output, shape index: {}]  }
   0x1 LB: > { %s1742_s13 = sadd.s32 4294967295, %s2433_s12   ;;  %p1746_p0 = scmp.ge.s32.totalorder %s2433_s12, 1  ;;  %s2433_s12 = sphi %s2459_s12, %s13_s12  }
   0x2   : > { %p137_p1 = scmp.lt.s32.totalorder %s2433_s12, 3 }
   0x4   : > { %p138_p2 = pnand %p1746_p0, %p137_p1 }
   0x5   : > { %p161_p3 = scmp.lt.s32.totalorder (!%p138_p2), %s1742_s13, 1  ;;  %s2482_s24 = smov (!%p138_p2), 0  }
   0x6   : > { %141 = sbr.rel (%p138_p2) target bundleno = 354 (0x162), region = 32 }
   0xb   : > { %v2470_v0 = vld [vmem:[%s2894_s2] ss:$0 sm:$0xff]  ;;  %s2897_s13 = smov (!%p161_p3, %s1742_s13), 1 }
   0xc   : > { %s2269_s16 = smul.u32 80, %s2897_s13 }
   0xd   : > { %s2270_s17 = smul.u32 28, %s2897_s13 }
   0xe   : > { %s2475_s20 = scalar_lea.vmem %s2892_s0, %s2269_s16 }
   0xf   : > { %s2480_s23 = scalar_lea.vmem %s2895_s3, %s2270_s17 }
  0x10 LB: >> { %v2287_v1 = vld [vmem:[%s2893_s1 + $0x78] sm:$0xff]   ;;  %v2291_v5 = vld [vmem:[%s2893_s1 + $0x70] sm:$0xff]   ;;  %v2295_v9 = vld [vmem:[%s2893_s1 + $0x68] sm:$0xff]   ;;  %s2092_s6 = sshll.u32 %s2437_s24, 3  ;;  %vm1663_vm0 = vcmask 1043456   ;;  %s2437_s24 = sphi %s2482_s24, %s178_s24  }
  0x11   : >> { %v2288_v2 = vld [vmem:[%s2893_s1 + $0xf8] sm:$0xff]   ;;  %2093 = vmatprep.subr.bf16.mxu0 %v2287_v1  ;;  %v2292_v6 = vld [vmem:[%s2893_s1 + $0xf0] sm:$0xff]   ;;  %v2296_v10 = vld [vmem:[%s2893_s1 + $0xe8] sm:$0xff]   ;;  %s2579_s14 = scalar_lea.vmem %s2475_s20, %s2092_s6  ;;  %vm1664_vm1 = vsmask.f32 3328 }
  0x12   : >> { %v2289_v3 = vld [vmem:[%s2893_s1 + $0x38] sm:$0xff]   ;;  %2115 = vmatprep.subr.bf16.mxu1 %v2288_v2  ;;  %v2293_v7 = vld [vmem:[%s2893_s1 + $0x30] sm:$0xff]   ;;  %v2297_v11 = vld [vmem:[%s2893_s1 + $0x28] sm:$0xff]  }
  0x13   : >> { %v2290_v4 = vld [vmem:[%s2893_s1 + $0xb8] sm:$0xff]   ;;  %2094 = vmatpush3.bf16.msra.mxu0 %v2289_v3  ;;  %v2294_v8 = vld [vmem:[%s2893_s1 + $0xb0] sm:$0xff]   ;;  %v2298_v12 = vld [vmem:[%s2893_s1 + $0xa8] sm:$0xff]  }
  0x14   : >> { %2116 = vmatpush3.bf16.msra.mxu1 %v2290_v4  ;;  %2095 = vmatprep.subr.bf16.mxu0 %v2291_v5  ;;  %v2299_v13 = vld [vmem:[%s2893_s1 + $0x60] sm:$0xff]   ;;  %v2303_v17 = vld [vmem:[%s2893_s1 + $0x58] sm:$0xff]   ;;  %v2307_v21 = vld [vmem:[%s2893_s1 + $0x50] sm:$0xff]  }
  0x15   : >> { %2117 = vmatprep.subr.bf16.mxu1 %v2292_v6  ;;  %v2300_v14 = vld [vmem:[%s2893_s1 + $0xe0] sm:$0xff]   ;;  %v2304_v18 = vld [vmem:[%s2893_s1 + $0xd8] sm:$0xff]   ;;  %v2308_v22 = vld [vmem:[%s2893_s1 + $0xd0] sm:$0xff]  }
  0x16   : >> { %v2301_v15 = vld [vmem:[%s2893_s1 + $0x20] sm:$0xff]   ;;  %v2305_v19 = vld [vmem:[%s2893_s1 + $0x18] sm:$0xff]   ;;  %v2309_v23 = vld [vmem:[%s2893_s1 + $0x10] sm:$0xff]  }
  0x17   : >> { %2096 = vmatpush3.bf16.msra.mxu0 %v2293_v7  ;;  %v2302_v16 = vld [vmem:[%s2893_s1 + $0xa0] sm:$0xff]   ;;  %v2306_v20 = vld [vmem:[%s2893_s1 + $0x98] sm:$0xff]   ;;  %v2310_v24 = vld [vmem:[%s2893_s1 + $0x90] sm:$0xff]  }
  0x18   : >> { %2118 = vmatpush3.bf16.msra.mxu1 %v2294_v8  ;;  %2097 = vmatprep.subr.bf16.mxu0 %v2295_v9  ;;  %v2311_v25 = vld [vmem:[%s2893_s1 + $0x48] sm:$0xff]   ;;  %v2315_v29 = vld [vmem:[%s2893_s1 + $0x40] sm:$0xff]   ;;  %v2321_v37 = vld [vmem:[%s2893_s1 + $0x178] sm:$0xff]  }
  0x19   : >> { %2119 = vmatprep.subr.bf16.mxu1 %v2296_v10  ;;  %v2312_v26 = vld [vmem:[%s2893_s1 + $0xc8] sm:$0xff]   ;;  %v2316_v30 = vld [vmem:[%s2893_s1 + $0xc0] sm:$0xff]   ;;  %v2322_v38 = vld [vmem:[%s2893_s1 + $0x1f8] sm:$0xff]  }
  0x1a   : >> { %v2313_v27 = vld [vmem:[%s2893_s1 + $0x8] sm:$0xff]   ;;  %v2317_v31 = vld [vmem:[%s2893_s1] sm:$0xff]   ;;  %v2323_v46 = vld [vmem:[%s2893_s1 + $0x138] sm:$0xff]  }
  0x1b   : >> { %2098 = vmatpush3.bf16.msra.mxu0 %v2297_v11  ;;  %v2314_v28 = vld [vmem:[%s2893_s1 + $0x88] sm:$0xff]   ;;  %v2318_v32 = vld [vmem:[%s2893_s1 + $0x80] sm:$0xff]   ;;  %v2324_v48 = vld [vmem:[%s2893_s1 + $0x1b8] sm:$0xff]  }
  0x1c   : >> { %2120 = vmatpush3.bf16.msra.mxu1 %v2298_v12  ;;  %2099 = vmatprep.subr.bf16.mxu0 %v2299_v13  ;;  %v188_v33 = vld [vmem:[%s2579_s14] sm:$0xf]  ;;  %v189_v34 = vld [vmem:[%s2579_s14 + $0x4] sm:$0x1]  ;;  %v2325_v51 = vld [vmem:[%s2893_s1 + $0x170] sm:$0xff]  }
  0x1d   : >> { %2121 = vmatprep.subr.bf16.mxu1 %v2300_v14  ;;  %v1752_v35 = vcombine.low %v188_v33, %v188_v33  ;;  %v1753_v36 = vcombine.low %v188_v33, %v189_v34  ;;  %v2326_v52 = vld [vmem:[%s2893_s1 + $0x1f0] sm:$0xff]   ;;  %v2329_v55 = vld [vmem:[%s2893_s1 + $0x168] sm:$0xff]   ;;  %v2333_v59 = vld [vmem:[%s2893_s1 + $0x160] sm:$0xff]  }
  0x1e   : >> { %v2327_v53 = vld [vmem:[%s2893_s1 + $0x130] sm:$0xff]   ;;  %v2330_v56 = vld [vmem:[%s2893_s1 + $0x1e8] sm:$0xff]   ;;  %v2334_v60 = vld [vmem:[%s2893_s1 + $0x1e0] sm:$0xff]  }
  0x1f   : >> { %2100 = vmatpush3.bf16.msra.mxu0 %v2301_v15  ;;  %v194_v39 = vshrl.u32 %v1752_v35, 16  ;;  %v196_v40 = vshll.u32 %v1752_v35, 16  ;;  %v207_v41 = vshrl.u32 %v1753_v36, 16  ;;  %v210_v42 = vshll.u32 %v1753_v36, 16  ;;  %v2328_v54 = vld [vmem:[%s2893_s1 + $0x1b0] sm:$0xff]   ;;  %v2331_v57 = vld [vmem:[%s2893_s1 + $0x128] sm:$0xff]   ;;  %vm1665_vm2 = vmand %vm1663_vm0, %vm1664_vm1 }
  0x20   : >> { %2122 = vmatpush3.bf16.msra.mxu1 %v2302_v16  ;;  %2101 = vmatprep.subr.bf16.mxu0 %v2303_v17  ;;  %v204_v47 = vrot.slane %v1753_v36, 1  ;;  %v2332_v58 = vld [vmem:[%s2893_s1 + $0x1a8] sm:$0xff]   ;;  %v2335_v61 = vld [vmem:[%s2893_s1 + $0x120] sm:$0xff]   ;;  %v2337_v63 = vld [vmem:[%s2893_s1 + $0x158] sm:$0xff]  }
  0x21   : >> { %2123 = vmatprep.subr.bf16.mxu1 %v2304_v18  ;;  %v198_v43 = vrot.slane %v196_v40, 1  ;;  %v209_v44 = vrot.slane %v207_v41, 1  ;;  %v212_v45 = vrot.slane %v210_v42, 2  ;;  %v2336_v62 = vld [vmem:[%s2893_s1 + $0x1a0] sm:$0xff]   ;;  %v2338_v1 = vld [vmem:[%s2893_s1 + $0x1d8] sm:$0xff]   ;;  %v2341_v4 = vld [vmem:[%s2893_s1 + $0x150] sm:$0xff]  }
  0x22   : >> { %v2339_v2 = vld [vmem:[%s2893_s1 + $0x118] sm:$0xff]   ;;  %v2342_v5 = vld [vmem:[%s2893_s1 + $0x1d0] sm:$0xff]   ;;  %v2345_v8 = vld [vmem:[%s2893_s1 + $0x148] sm:$0xff]  }
  0x23   : >> { %2102 = vmatpush3.bf16.msra.mxu0 %v2305_v19  ;;  %v199_v49 = vor.u32 %v198_v43, %v194_v39  ;;  %v213_v50 = vor.u32 %v212_v45, %v209_v44  ;;  %v2340_v3 = vld [vmem:[%s2893_s1 + $0x198] sm:$0xff]   ;;  %v2343_v6 = vld [vmem:[%s2893_s1 + $0x110] sm:$0xff]   ;;  %v2346_v9 = vld [vmem:[%s2893_s1 + $0x1c8] sm:$0xff]  }
  0x24   : >> { %2124 = vmatpush3.bf16.msra.mxu1 %v2306_v20  ;;  %2103 = vmatprep.subr.bf16.mxu0 %v2307_v21  ;;  %v2344_v7 = vld [vmem:[%s2893_s1 + $0x190] sm:$0xff]   ;;  %v2347_v10 = vld [vmem:[%s2893_s1 + $0x108] sm:$0xff]   ;;  %v2349_v12 = vld [vmem:[%s2893_s1 + $0x140] sm:$0xff]  }
  0x25   : >> { %2125 = vmatprep.subr.bf16.mxu1 %v2308_v22  ;;  %503 = vmatprep.mubr.bf16.mxu0 %v199_v49  ;;  %v2348_v11 = vld [vmem:[%s2893_s1 + $0x188] sm:$0xff]   ;;  %v2350_v13 = vld [vmem:[%s2893_s1 + $0x1c0] sm:$0xff]   ;;  %v2355_v22 = vld [vmem:[%s2893_s1 + $0x278] sm:$0xff]  }
  0x26   : >> { %543 = vmatprep.mubr.bf16.mxu1 %v213_v50  ;;  %v2351_v14 = vld [vmem:[%s2893_s1 + $0x100] sm:$0xff]   ;;  %v1787_v15 = vld [vmem:[%s2579_s14 + $0x8] sm:$0xf]  ;;  %v1788_v17 = vld [vmem:[%s2579_s14 + $0xc] sm:$0x1] }
  0x27   : >> { %2104 = vmatpush3.bf16.msra.mxu0 %v2309_v23  ;;  %v1789_v16 = vcombine.low %v1787_v15, %v1787_v15  ;;  %v2352_v18 = vld [vmem:[%s2893_s1 + $0x180] sm:$0xff]   ;;  %v1790_v19 = vcombine.low %v1787_v15, %v1788_v17  ;;  %v2356_v23 = vld [vmem:[%s2893_s1 + $0x2f8] sm:$0xff]   ;;  %v2360_v35 = vld [vmem:[%s2893_s1 + $0x2f0] sm:$0xff]  }
  0x28   : >> { %2126 = vmatpush3.bf16.msra.mxu1 %v2310_v24  ;;  %2105 = vmatprep.subr.bf16.mxu0 %v2311_v25  ;;  %v2361_v36 = vld [vmem:[%s2893_s1 + $0x230] sm:$0xff]   ;;  %v2364_v39 = vld [vmem:[%s2893_s1 + $0x2e8] sm:$0xff]   ;;  %v2367_v42 = vld [vmem:[%s2893_s1 + $0x260] sm:$0xff]  }
  0x29   : >> { %2127 = vmatprep.subr.bf16.mxu1 %v2312_v26  ;;  %v562_v20 = vshrl.u32 %v1789_v16, 16  ;;  %v564_v21 = vshll.u32 %v1789_v16, 16  ;;  %v575_v24 = vshrl.u32 %v1790_v19, 16  ;;  %v578_v25 = vshll.u32 %v1790_v19, 16  ;;  %v2365_v40 = vld [vmem:[%s2893_s1 + $0x228] sm:$0xff]   ;;  %v2368_v43 = vld [vmem:[%s2893_s1 + $0x2e0] sm:$0xff]  }
  0x2a   : >> { %v2366_v41 = vld [vmem:[%s2893_s1 + $0x2a8] sm:$0xff]   ;;  %v2369_v44 = vld [vmem:[%s2893_s1 + $0x220] sm:$0xff]   ;;  %v2374_v49 = vld [vmem:[%s2893_s1 + $0x298] sm:$0xff]  }
  0x2b   : >> { %2106 = vmatpush3.bf16.msra.mxu0 %v2313_v27  ;;  %v566_v26 = vrot.slane %v564_v21, 1  ;;  %v2357_v27 = vld [vmem:[%s2893_s1 + $0x238] sm:$0xff]   ;;  %v2370_v45 = vld [vmem:[%s2893_s1 + $0x2a0] sm:$0xff]   ;;  %v2375_v50 = vld [vmem:[%s2893_s1 + $0x250] sm:$0xff]  }
  0x2c   : >> { %2128 = vmatpush3.bf16.msra.mxu1 %v2314_v28  ;;  %2107 = vmatprep.subr.bf16.mxu0 %v2315_v29  ;;  %v577_v28 = vrot.slane %v575_v24, 1  ;;  %v580_v29 = vrot.slane %v578_v25, 2  ;;  %v2393_v17 = vld [vmem:[%s2893_s1 + $0x370] sm:$0xff]   ;;  %v2397_v21 = vld [vmem:[%s2893_s1 + $0x368] sm:$0xff]   ;;  %v2401_v25 = vld [vmem:[%s2893_s1 + $0x360] sm:$0xff]  }
  0x2d   : >> { %2129 = vmatprep.subr.bf16.mxu1 %v2316_v30  ;;  %v2358_v30 = vld [vmem:[%s2893_s1 + $0x2b8] sm:$0xff]   ;;  %v2400_v24 = vld [vmem:[%s2893_s1 + $0x3a8] sm:$0xff]  }
  0x2e   : >> { %v581_v34 = vor.u32 %v580_v29, %v577_v28  ;;  %v2404_v28 = vld [vmem:[%s2893_s1 + $0x3a0] sm:$0xff]   ;;  %v2405_v29 = vld [vmem:[%s2893_s1 + $0x358] sm:$0xff]  }
  0x2f   : >> { %2108 = vmatpush3.bf16.msra.mxu0 %v2317_v31  ;;  %v567_v31 = vor.u32 %v566_v26, %v562_v20  ;;  %v2396_v20 = vld [vmem:[%s2893_s1 + $0x3b0] sm:$0xff]   ;;  %v2402_v26 = vld [vmem:[%s2893_s1 + $0x3e0] sm:$0xff]  }
  0x30   : >> { %2130 = vmatpush3.bf16.msra.mxu1 %v2318_v32  ;;  %2137 = vmatprep.subr.bf16.mxu0 %v2321_v37  ;;  %v572_v32 = vrot.slane %v1790_v19, 1  ;;  %v2362_v37 = vld [vmem:[%s2893_s1 + $0x2b0] sm:$0xff]  }
  0x31   : >> { %2159 = vmatprep.subr.bf16.mxu1 %v2322_v38  ;;  %v2363_v38 = vld [vmem:[%s2893_s1 + $0x268] sm:$0xff]   ;;  %v2395_v19 = vld [vmem:[%s2893_s1 + $0x330] sm:$0xff]  }
  0x32   : >> { %504 = vmatmul.mubr.bf16.vlgmr.msra.gmra.mxu0 %v188_v33  ;;  %v2359_v33 = vld [vmem:[%s2893_s1 + $0x270] sm:$0xff]  }
  0x33   : >> { %544 = vmatmul.mubr.bf16.vlgmr.msra.gmra.mxu1 %v204_v47  ;;  %2138 = vmatpush3.bf16.msra.mxu0 %v2323_v46  ;;  %v2371_v46 = vld [vmem:[%s2893_s1 + $0x258] sm:$0xff]  }
  0x34   : >> { %2160 = vmatpush3.bf16.msra.mxu1 %v2324_v48  ;;  %2139 = vmatprep.subr.bf16.mxu0 %v2325_v51  ;;  %v2372_v47 = vld [vmem:[%s2893_s1 + $0x2d8] sm:$0xff]   ;;  %v2376_v51 = vld [vmem:[%s2893_s1 + $0x2d0] sm:$0xff]  }
  0x35   : >> { %2161 = vmatprep.subr.bf16.mxu1 %v2326_v52  ;;  %872 = vmatprep.mubr.bf16.mxu0 %v567_v31  ;;  %v2373_v48 = vld [vmem:[%s2893_s1 + $0x218] sm:$0xff]   ;;  %v2377_v52 = vld [vmem:[%s2893_s1 + $0x210] sm:$0xff]  }
  0x36   : >> { %912 = vmatprep.mubr.bf16.mxu1 %v581_v34  ;;  %v2407_v31 = vld [vmem:[%s2893_s1 + $0x318] sm:$0xff]   ;;  %v2410_v34 = vld [vmem:[%s2893_s1 + $0x3d0] sm:$0xff]  }
  0x37   : >> { %2140 = vmatpush3.bf16.msra.mxu0 %v2327_v53  ;;  %v2378_v53 = vld [vmem:[%s2893_s1 + $0x290] sm:$0xff]  }
  0x38   : >> { %2162 = vmatpush3.bf16.msra.mxu1 %v2328_v54  ;;  %2141 = vmatprep.subr.bf16.mxu0 %v2329_v55  ;;  %v2379_v54 = vld [vmem:[%s2893_s1 + $0x248] sm:$0xff]  }
  0x39   : >> { %2163 = vmatprep.subr.bf16.mxu1 %v2330_v56  ;;  %v2380_v55 = vld [vmem:[%s2893_s1 + $0x2c8] sm:$0xff]  }
  0x3a   : >> { %v2381_v56 = vld [vmem:[%s2893_s1 + $0x208] sm:$0xff]  }
  0x3b   : >> { %2142 = vmatpush3.bf16.msra.mxu0 %v2331_v57  ;;  %v2382_v57 = vld [vmem:[%s2893_s1 + $0x288] sm:$0xff]  }
  0x3c   : >> { %2164 = vmatpush3.bf16.msra.mxu1 %v2332_v58  ;;  %2143 = vmatprep.subr.bf16.mxu0 %v2333_v59  ;;  %v2383_v58 = vld [vmem:[%s2893_s1 + $0x240] sm:$0xff]  }
  0x3d   : >> { %2165 = vmatprep.subr.bf16.mxu1 %v2334_v60  ;;  %v2384_v59 = vld [vmem:[%s2893_s1 + $0x2c0] sm:$0xff]  }
  0x3e   : >> { %v2385_v60 = vld [vmem:[%s2893_s1 + $0x200] sm:$0xff]  }
  0x3f   : >> { %2144 = vmatpush3.bf16.msra.mxu0 %v2335_v61  ;;  %v2386_v61 = vld [vmem:[%s2893_s1 + $0x280] sm:$0xff]  }
  0x40   : >> { %2166 = vmatpush3.bf16.msra.mxu1 %v2336_v62  ;;  %2145 = vmatprep.subr.bf16.mxu0 %v2337_v63  ;;  %v1888_v62 = vld [vmem:[%s2579_s14 + $0x10] sm:$0xf]  ;;  %v1889_v63 = vld [vmem:[%s2579_s14 + $0x14] sm:$0x1] }
  0x41   : >> { %2167 = vmatprep.subr.bf16.mxu1 %v2338_v1  ;;  %v1890_v1 = vcombine.low %v1888_v62, %v1888_v62 }
  0x43   : >> { %2146 = vmatpush3.bf16.msra.mxu0 %v2339_v2  ;;  %v1891_v2 = vcombine.low %v1888_v62, %v1889_v63 }
  0x44   : >> { %2168 = vmatpush3.bf16.msra.mxu1 %v2340_v3  ;;  %2147 = vmatprep.subr.bf16.mxu0 %v2341_v4  ;;  %v2389_v3 = vld [vmem:[%s2893_s1 + $0x378] sm:$0xff]  }
  0x45   : >> { %2169 = vmatprep.subr.bf16.mxu1 %v2342_v5  ;;  %v2390_v4 = vld [vmem:[%s2893_s1 + $0x3f8] sm:$0xff]   ;;  %v931_v5 = vshrl.u32 %v1890_v1, 16 }
  0x47   : >> { %2148 = vmatpush3.bf16.msra.mxu0 %v2343_v6  ;;  %v933_v6 = vshll.u32 %v1890_v1, 16 }
  0x48   : >> { %2170 = vmatpush3.bf16.msra.mxu1 %v2344_v7  ;;  %2149 = vmatprep.subr.bf16.mxu0 %v2345_v8  ;;  %v944_v7 = vshrl.u32 %v1891_v2, 16  ;;  %v947_v8 = vshll.u32 %v1891_v2, 16 }
  0x49   : >> { %2171 = vmatprep.subr.bf16.mxu1 %v2346_v9  ;;  %v935_v9 = vrot.slane %v933_v6, 1 }
  0x4b   : >> { %2150 = vmatpush3.bf16.msra.mxu0 %v2347_v10  ;;  %v946_v10 = vrot.slane %v944_v7, 1 }
  0x4c   : >> { %2172 = vmatpush3.bf16.msra.mxu1 %v2348_v11  ;;  %2151 = vmatprep.subr.bf16.mxu0 %v2349_v12  ;;  %v949_v11 = vrot.slane %v947_v8, 2  ;;  %v2391_v12 = vld [vmem:[%s2893_s1 + $0x338] sm:$0xff]  }
  0x4d   : >> { %2173 = vmatprep.subr.bf16.mxu1 %v2350_v13  ;;  %v941_v13 = vrot.slane %v1891_v2, 1 }
  0x4e   : >> { %v950_v16 = vor.u32 %v949_v11, %v946_v10 }
  0x4f   : >> { %2152 = vmatpush3.bf16.msra.mxu0 %v2351_v14  ;;  %v2392_v14 = vld [vmem:[%s2893_s1 + $0x3b8] sm:$0xff]  }
  0x50   : >> { %2174 = vmatpush3.bf16.msra.mxu1 %v2352_v18  ;;  %2181 = vmatprep.subr.bf16.mxu0 %v2355_v22  ;;  %v2394_v18 = vld [vmem:[%s2893_s1 + $0x3f0] sm:$0xff]   ;;  %v2398_v22 = vld [vmem:[%s2893_s1 + $0x3e8] sm:$0xff]  }
  0x51   : >> { %2203 = vmatprep.subr.bf16.mxu1 %v2356_v23  ;;  %v2399_v23 = vld [vmem:[%s2893_s1 + $0x328] sm:$0xff]  }
  0x52   : >> { %873 = vmatmul.mubr.bf16.vlgmr.msra.gmra.mxu0 %v1787_v15  ;;  %v936_v15 = vor.u32 %v935_v9, %v931_v5 }
  0x53   : >> { %913 = vmatmul.mubr.bf16.vlgmr.msra.gmra.mxu1 %v572_v32  ;;  %2182 = vmatpush3.bf16.msra.mxu0 %v2357_v27  ;;  %v2403_v27 = vld [vmem:[%s2893_s1 + $0x320] sm:$0xff]   ;;  %v2408_v32 = vld [vmem:[%s2893_s1 + $0x398] sm:$0xff]  }
  0x54   : >> { %2204 = vmatpush3.bf16.msra.mxu1 %v2358_v30  ;;  %2183 = vmatprep.subr.bf16.mxu0 %v2359_v33  ;;  %v2406_v30 = vld [vmem:[%s2893_s1 + $0x3d8] sm:$0xff]   ;;  %v2409_v33 = vld [vmem:[%s2893_s1 + $0x350] sm:$0xff]  }
  0x55   : >> { %2205 = vmatprep.subr.bf16.mxu1 %v2360_v35  ;;  %1241 = vmatprep.mubr.bf16.mxu0 %v936_v15  ;;  %v2411_v35 = vld [vmem:[%s2893_s1 + $0x310] sm:$0xff]  }
  0x56   : >> { %1281 = vmatprep.mubr.bf16.mxu1 %v950_v16 }
  0x57   : >> { %2184 = vmatpush3.bf16.msra.mxu0 %v2361_v36  ;;  %v2412_v36 = vld [vmem:[%s2893_s1 + $0x390] sm:$0xff]  }
  0x58   : >> { %2206 = vmatpush3.bf16.msra.mxu1 %v2362_v37  ;;  %2185 = vmatprep.subr.bf16.mxu0 %v2363_v38  ;;  %v2413_v37 = vld [vmem:[%s2893_s1 + $0x348] sm:$0xff]  }
  0x59   : >> { %2207 = vmatprep.subr.bf16.mxu1 %v2364_v39  ;;  %v2414_v38 = vld [vmem:[%s2893_s1 + $0x3c8] sm:$0xff]  }
  0x5a   : >> { %v2415_v39 = vld [vmem:[%s2893_s1 + $0x308] sm:$0xff]  }
  0x5b   : >> { %2186 = vmatpush3.bf16.msra.mxu0 %v2365_v40  ;;  %v2416_v40 = vld [vmem:[%s2893_s1 + $0x388] sm:$0xff]  }
  0x5c   : >> { %2208 = vmatpush3.bf16.msra.mxu1 %v2366_v41  ;;  %2187 = vmatprep.subr.bf16.mxu0 %v2367_v42  ;;  %v2417_v41 = vld [vmem:[%s2893_s1 + $0x340] sm:$0xff]  }
  0x5d   : >> { %2209 = vmatprep.subr.bf16.mxu1 %v2368_v43  ;;  %v2418_v42 = vld [vmem:[%s2893_s1 + $0x3c0] sm:$0xff]   ;;  %v1989_v43 = vld [vmem:[%s2579_s14 + $0x18] sm:$0xf] }
  0x5f   : >> { %2188 = vmatpush3.bf16.msra.mxu0 %v2369_v44  ;;  %v1991_v44 = vcombine.low %v1989_v43, %v1989_v43 }
  0x60   : >> { %2210 = vmatpush3.bf16.msra.mxu1 %v2370_v45  ;;  %2189 = vmatprep.subr.bf16.mxu0 %v2371_v46  ;;  %v1990_v45 = vld [vmem:[%s2579_s14 + $0x1c] sm:$0x1]  ;;  %v2419_v46 = vld [vmem:[%s2893_s1 + $0x300] sm:$0xff]   ;;  %s2089_s14 = sshll.u32 %s2437_s24, 2  ;;  %s178_s24 = sadd.s32 1, %s2437_s24  }
  0x61   : >> { %2211 = vmatprep.subr.bf16.mxu1 %v2372_v47  ;;  %v2420_v47 = vld [vmem:[%s2893_s1 + $0x380] sm:$0xff]   ;;  %s1662_s11 = scalar_lea.vmem %s2480_s23, %s2089_s14  ;;  %p175_p4 = scmp.ge.s32.totalorder %s178_s24, 7  }
  0x63   : >> { %2190 = vmatpush3.bf16.msra.mxu0 %v2373_v48  ;;  %v1992_v48 = vcombine.low %v1989_v43, %v1990_v45  ;;  %v1666_v45 = vld [vmem:[%s1662_s11] sm:$0xf] }
  0x64   : >> { %2212 = vmatpush3.bf16.msra.mxu1 %v2374_v49  ;;  %2191 = vmatprep.subr.bf16.mxu0 %v2375_v50  ;;  %v1300_v49 = vshrl.u32 %v1991_v44, 16  ;;  %v1302_v50 = vshll.u32 %v1991_v44, 16 }
  0x65   : >> { %2213 = vmatprep.subr.bf16.mxu1 %v2376_v51  ;;  %v1313_v51 = vshrl.u32 %v1992_v48, 16 }
  0x67   : >> { %2192 = vmatpush3.bf16.msra.mxu0 %v2377_v52  ;;  %v1316_v52 = vshll.u32 %v1992_v48, 16 }
  0x68   : >> { %2214 = vmatpush3.bf16.msra.mxu1 %v2378_v53  ;;  %2193 = vmatprep.subr.bf16.mxu0 %v2379_v54  ;;  %v1304_v53 = vrot.slane %v1302_v50, 1  ;;  %v1315_v54 = vrot.slane %v1313_v51, 1 }
  0x69   : >> { %2215 = vmatprep.subr.bf16.mxu1 %v2380_v55  ;;  %v1318_v55 = vrot.slane %v1316_v52, 2 }
  0x6b   : >> { %2194 = vmatpush3.bf16.msra.mxu0 %v2381_v56  ;;  %v1305_v56 = vor.u32 %v1304_v53, %v1300_v49 }
  0x6c   : >> { %2216 = vmatpush3.bf16.msra.mxu1 %v2382_v57  ;;  %2195 = vmatprep.subr.bf16.mxu0 %v2383_v58  ;;  %v1310_v57 = vrot.slane %v1992_v48, 1  ;;  %v1319_v58 = vor.u32 %v1318_v55, %v1315_v54 }
  0x6d   : >> { %2217 = vmatprep.subr.bf16.mxu1 %v2384_v59 }
  0x6f   : >> { %2196 = vmatpush3.bf16.msra.mxu0 %v2385_v60 }
  0x70   : >> { %2218 = vmatpush3.bf16.msra.mxu1 %v2386_v61  ;;  %2225 = vmatprep.subr.bf16.mxu0 %v2389_v3 }
  0x71   : >> { %2247 = vmatprep.subr.bf16.mxu1 %v2390_v4 }
  0x72   : >> { %1242 = vmatmul.mubr.bf16.vlgmr.msra.gmra.mxu0 %v1888_v62 }
  0x73   : >> { %1282 = vmatmul.mubr.bf16.vlgmr.msra.gmra.mxu1 %v941_v13  ;;  %2226 = vmatpush3.bf16.msra.mxu0 %v2391_v12 }
  0x74   : >> { %2248 = vmatpush3.bf16.msra.mxu1 %v2392_v14  ;;  %2227 = vmatprep.subr.bf16.mxu0 %v2393_v17 }
  0x75   : >> { %2249 = vmatprep.subr.bf16.mxu1 %v2394_v18  ;;  %1610 = vmatprep.mubr.bf16.mxu0 %v1305_v56 }
  0x76   : >> { %1650 = vmatprep.mubr.bf16.mxu1 %v1319_v58 }
  0x77   : >> { %2228 = vmatpush3.bf16.msra.mxu0 %v2395_v19 }
  0x78   : >> { %2250 = vmatpush3.bf16.msra.mxu1 %v2396_v20  ;;  %2229 = vmatprep.subr.bf16.mxu0 %v2397_v21 }
  0x79   : >> { %2251 = vmatprep.subr.bf16.mxu1 %v2398_v22 }
  0x7b   : >> { %2230 = vmatpush3.bf16.msra.mxu0 %v2399_v23 }
  0x7c   : >> { %2252 = vmatpush3.bf16.msra.mxu1 %v2400_v24  ;;  %2231 = vmatprep.subr.bf16.mxu0 %v2401_v25 }
  0x7d   : >> { %2253 = vmatprep.subr.bf16.mxu1 %v2402_v26 }
  0x7f   : >> { %2232 = vmatpush3.bf16.msra.mxu0 %v2403_v27 }
  0x80   : >> { %2254 = vmatpush3.bf16.msra.mxu1 %v2404_v28  ;;  %2233 = vmatprep.subr.bf16.mxu0 %v2405_v29 }
  0x81   : >> { %2255 = vmatprep.subr.bf16.mxu1 %v2406_v30 }
  0x83   : >> { %2234 = vmatpush3.bf16.msra.mxu0 %v2407_v31 }
  0x84   : >> { %2256 = vmatpush3.bf16.msra.mxu1 %v2408_v32  ;;  %2235 = vmatprep.subr.bf16.mxu0 %v2409_v33 }
  0x85   : >> { %2257 = vmatprep.subr.bf16.mxu1 %v2410_v34 }
  0x87   : >> { %2236 = vmatpush3.bf16.msra.mxu0 %v2411_v35 }
  0x88   : >> { %2258 = vmatpush3.bf16.msra.mxu1 %v2412_v36  ;;  %2237 = vmatprep.subr.bf16.mxu0 %v2413_v37 }
  0x89   : >> { %2259 = vmatprep.subr.bf16.mxu1 %v2414_v38 }
  0x8b   : >> { %2238 = vmatpush3.bf16.msra.mxu0 %v2415_v39 }
  0x8c   : >> { %2260 = vmatpush3.bf16.msra.mxu1 %v2416_v40  ;;  %2239 = vmatprep.subr.bf16.mxu0 %v2417_v41 }
  0x8d   : >> { %2261 = vmatprep.subr.bf16.mxu1 %v2418_v42 }
  0x8f   : >> { %2240 = vmatpush3.bf16.msra.mxu0 %v2419_v46 }
  0x90   : >> { %2262 = vmatpush3.bf16.msra.mxu1 %v2420_v47 }
  0x92   : >> { %1611 = vmatmul.mubr.bf16.vlgmr.msra.gmra.mxu0 %v1989_v43 }
  0x93   : >> { %1651 = vmatmul.mubr.bf16.vlgmr.msra.gmra.mxu1 %v1310_v57 }
  0xf2   : >> { %v2109_v59 = vpop.f32.mrf.mxu0 }
  0xf3   : >> { %v2131_v60 = vpop.f32.mrf.mxu1 }
  0xf4   : >> { %v2110_v61 = vpop.f32.mrf.mxu0 }
  0xf5   : >> { %v2132_v62 = vpop.f32.mrf.mxu1  ;;  %v2111_v63 = vadd.f32 %v2110_v61, %v2109_v59 }
  0xf6   : >> { %v2133_v1 = vadd.f32 %v2132_v62, %v2131_v60  ;;  %v2112_v2 = vpop.f32.mrf.mxu0 }
  0xf7   : >> { %v2134_v3 = vpop.f32.mrf.mxu1 }
  0xf8   : >> { %v546_v4 = vadd.f32 %v2133_v1, %v2111_v63  ;;  %v2113_v5 = vpop.f32.mrf.mxu0 }
  0xf9   : >> { %v2135_v6 = vpop.f32.mrf.mxu1 }
  0xfa   : >> { %v551_v15 = vadd.f32 %v2470_v0, %v546_v4 }
 0x112   : >> { %v2153_v7 = vpop.f32.mrf.mxu0 }
 0x113   : >> { %v2175_v8 = vpop.f32.mrf.mxu1 }
 0x114   : >> { %v2154_v9 = vpop.f32.mrf.mxu0 }
 0x115   : >> { %v2155_v10 = vadd.f32 %v2154_v9, %v2153_v7  ;;  %v2176_v11 = vpop.f32.mrf.mxu1 }
 0x116   : >> { %v2177_v12 = vadd.f32 %v2176_v11, %v2175_v8  ;;  %v2156_v13 = vpop.f32.mrf.mxu0 }
 0x117   : >> { %v2178_v14 = vpop.f32.mrf.mxu1 }
 0x118   : >> { %v915_v16 = vadd.f32 %v2177_v12, %v2155_v10  ;;  %v2157_v17 = vpop.f32.mrf.mxu0 }
 0x119   : >> { %v2179_v18 = vpop.f32.mrf.mxu1 }
 0x11a   : >> { %v920_v19 = vadd.f32 %v915_v16, %v551_v15 }
 0x132   : >> { %v2197_v20 = vpop.f32.mrf.mxu0 }
 0x133   : >> { %v2219_v21 = vpop.f32.mrf.mxu1 }
 0x134   : >> { %v2198_v22 = vpop.f32.mrf.mxu0 }
 0x135   : >> { %v2220_v23 = vpop.f32.mrf.mxu1  ;;  %v2199_v28 = vadd.f32 %v2198_v22, %v2197_v20 }
 0x136   : >> { %v2200_v24 = vpop.f32.mrf.mxu0  ;;  %v2221_v29 = vadd.f32 %v2220_v23, %v2219_v21 }
 0x137   : >> { %v2222_v25 = vpop.f32.mrf.mxu1 }
 0x138   : >> { %v2201_v26 = vpop.f32.mrf.mxu0  ;;  %v1284_v32 = vadd.f32 %v2221_v29, %v2199_v28 }
 0x139   : >> { %v2223_v27 = vpop.f32.mrf.mxu1 }
 0x13a   : >> { %v1289_v39 = vadd.f32 %v1284_v32, %v920_v19 }
 0x152   : >> { %v2241_v30 = vpop.f32.mrf.mxu0 }
 0x153   : >> { %v2263_v31 = vpop.f32.mrf.mxu1 }
 0x154   : >> { %v2242_v33 = vpop.f32.mrf.mxu0 }
 0x155   : >> { %v2243_v34 = vadd.f32 %v2242_v33, %v2241_v30  ;;  %v2264_v35 = vpop.f32.mrf.mxu1 }
 0x156   : >> { %v2265_v36 = vadd.f32 %v2264_v35, %v2263_v31  ;;  %v2244_v37 = vpop.f32.mrf.mxu0 }
 0x157   : >> { %v2266_v38 = vpop.f32.mrf.mxu1 }
 0x158   : >> { %v1653_v40 = vadd.f32 %v2265_v36, %v2243_v34  ;;  %v2245_v41 = vpop.f32.mrf.mxu0 }
 0x159   : >> { %v2267_v42 = vpop.f32.mrf.mxu1 }
 0x15a   : >> { %v1658_v43 = vadd.f32 %v1653_v40, %v1289_v39 }
 0x15c   : >> { %v1659_v44 = vmax.f32 %v1658_v43, 0.0 }
 0x15d   : > { %177 = sbr.rel (!%p175_p4) target bundleno = 16 (0x10), region = 77 }
 0x15e   : >> { %v1660_v46 = vpack.c.bf16 %v1659_v44, %v1659_v44 }
 0x160   : >> { %v1667_v47 = vsel %vm1665_vm2, %v1660_v46, %v1666_v45 }
 0x161   : >> { %1668 = vst [vmem:[%s1662_s11] sm:$0xf] %v1667_v47 }
 0x162 PF: > { %s13_s12 = sadd.s32 1, %s2433_s12  }
 0x163   : > { %p10_p5 = scmp.ge.s32.totalorder %s13_s12, 4  }
 0x165   :  { %12 = sbr.rel (!%p10_p5) target bundleno = 1 (0x1), region = 88 }

// kernel: convnet_forward.6
= control target key start
LH: loop header
LB: loop body
LE: loop exit
PB: predicated region body
PF: predicated region fallthrough
CT: control target
= control target key end

     0   :  { %s2452_s12 = smov 0   ;;  %s2885_s0 = inlined_call_operand.vmem [shape: bf16[2,13,13,128], index: 0, kind: input, shape index: {}]   ;;  %s2886_s1 = inlined_call_operand.vmem [shape: bf16[4,512,128], index: 1, kind: input, shape index: {}]   ;;  %s2887_s2 = inlined_call_operand.vmem [shape: f32[1,128], index: 2, kind: input, shape index: {}]   ;;  %s2888_s3 = inlined_call_operand.vmem [shape: bf16[2,10,10,128], index: 3, kind: output, shape index: {}]  }
   0x1 LB: > { %s1738_s13 = sadd.s32 4294967295, %s2426_s12   ;;  %p1742_p0 = scmp.ge.s32.totalorder %s2426_s12, 1  ;;  %s2426_s12 = sphi %s2452_s12, %s13_s12  }
   0x2   : > { %p137_p1 = scmp.lt.s32.totalorder %s2426_s12, 3 }
   0x4   : > { %p138_p2 = pnand %p1742_p0, %p137_p1 }
   0x5   : > { %p161_p3 = scmp.lt.s32.totalorder (!%p138_p2), %s1738_s13, 1  ;;  %s2475_s24 = smov (!%p138_p2), 0  }
   0x6   : > { %141 = sbr.rel (%p138_p2) target bundleno = 357 (0x165), region = 32 }
   0xb   : > { %v2463_v0 = vld [vmem:[%s2887_s2] ss:$0 sm:$0xff]  ;;  %s2890_s13 = smov (!%p161_p3, %s1738_s13), 1 }
   0xc   : > { %s2266_s16 = smul.u32 104, %s2890_s13 }
   0xd   : > { %s2267_s17 = smul.u32 80, %s2890_s13 }
   0xe   : > { %s2468_s20 = scalar_lea.vmem %s2885_s0, %s2266_s16 }
   0xf   : > { %s2473_s23 = scalar_lea.vmem %s2888_s3, %s2267_s17 }
  0x10 LB: >> { %v2284_v1 = vld [vmem:[%s2886_s1 + $0x78] sm:$0xff]   ;;  %v2288_v5 = vld [vmem:[%s2886_s1 + $0x70] sm:$0xff]   ;;  %v2292_v9 = vld [vmem:[%s2886_s1 + $0x68] sm:$0xff]   ;;  %s2086_s6 = sshll.u32 %s2430_s24, 3  ;;  %s178_s24 = sadd.s32 1, %s2430_s24   ;;  %s2430_s24 = sphi %s2475_s24, %s178_s24  }
  0x11   : >> { %v2285_v2 = vld [vmem:[%s2886_s1 + $0xf8] sm:$0xff]   ;;  %2090 = vmatprep.subr.bf16.mxu0 %v2284_v1  ;;  %v2289_v6 = vld [vmem:[%s2886_s1 + $0xf0] sm:$0xff]   ;;  %v2293_v10 = vld [vmem:[%s2886_s1 + $0xe8] sm:$0xff]   ;;  %s2574_s14 = scalar_lea.vmem %s2468_s20, %s2086_s6  ;;  %p175_p4 = scmp.ge.s32.totalorder %s178_s24, 10  }
  0x12   : >> { %v2286_v3 = vld [vmem:[%s2886_s1 + $0x38] sm:$0xff]   ;;  %2112 = vmatprep.subr.bf16.mxu1 %v2285_v2  ;;  %v2290_v7 = vld [vmem:[%s2886_s1 + $0x30] sm:$0xff]   ;;  %v2294_v11 = vld [vmem:[%s2886_s1 + $0x28] sm:$0xff]  }
  0x13   : >> { %v2287_v4 = vld [vmem:[%s2886_s1 + $0xb8] sm:$0xff]   ;;  %2091 = vmatpush3.bf16.msra.mxu0 %v2286_v3  ;;  %v2291_v8 = vld [vmem:[%s2886_s1 + $0xb0] sm:$0xff]   ;;  %v2295_v12 = vld [vmem:[%s2886_s1 + $0xa8] sm:$0xff]  }
  0x14   : >> { %2113 = vmatpush3.bf16.msra.mxu1 %v2287_v4  ;;  %2092 = vmatprep.subr.bf16.mxu0 %v2288_v5  ;;  %v2296_v13 = vld [vmem:[%s2886_s1 + $0x60] sm:$0xff]   ;;  %v2300_v17 = vld [vmem:[%s2886_s1 + $0x58] sm:$0xff]   ;;  %v2304_v21 = vld [vmem:[%s2886_s1 + $0x50] sm:$0xff]  }
  0x15   : >> { %2114 = vmatprep.subr.bf16.mxu1 %v2289_v6  ;;  %v2297_v14 = vld [vmem:[%s2886_s1 + $0xe0] sm:$0xff]   ;;  %v2301_v18 = vld [vmem:[%s2886_s1 + $0xd8] sm:$0xff]   ;;  %v2305_v22 = vld [vmem:[%s2886_s1 + $0xd0] sm:$0xff]  }
  0x16   : >> { %v2298_v15 = vld [vmem:[%s2886_s1 + $0x20] sm:$0xff]   ;;  %v2302_v19 = vld [vmem:[%s2886_s1 + $0x18] sm:$0xff]   ;;  %v2306_v23 = vld [vmem:[%s2886_s1 + $0x10] sm:$0xff]  }
  0x17   : >> { %2093 = vmatpush3.bf16.msra.mxu0 %v2290_v7  ;;  %v2299_v16 = vld [vmem:[%s2886_s1 + $0xa0] sm:$0xff]   ;;  %v2303_v20 = vld [vmem:[%s2886_s1 + $0x98] sm:$0xff]   ;;  %v2307_v24 = vld [vmem:[%s2886_s1 + $0x90] sm:$0xff]  }
  0x18   : >> { %2115 = vmatpush3.bf16.msra.mxu1 %v2291_v8  ;;  %2094 = vmatprep.subr.bf16.mxu0 %v2292_v9  ;;  %v2308_v25 = vld [vmem:[%s2886_s1 + $0x48] sm:$0xff]   ;;  %v2312_v29 = vld [vmem:[%s2886_s1 + $0x40] sm:$0xff]   ;;  %v2317_v34 = vld [vmem:[%s2886_s1 + $0x178] sm:$0xff]  }
  0x19   : >> { %2116 = vmatprep.subr.bf16.mxu1 %v2293_v10  ;;  %v2309_v26 = vld [vmem:[%s2886_s1 + $0xc8] sm:$0xff]   ;;  %v2313_v30 = vld [vmem:[%s2886_s1 + $0xc0] sm:$0xff]   ;;  %v2318_v37 = vld [vmem:[%s2886_s1 + $0x1f8] sm:$0xff]  }
  0x1a   : >> { %v2310_v27 = vld [vmem:[%s2886_s1 + $0x8] sm:$0xff]   ;;  %v2314_v31 = vld [vmem:[%s2886_s1] sm:$0xff]   ;;  %v2319_v41 = vld [vmem:[%s2886_s1 + $0x138] sm:$0xff]  }
  0x1b   : >> { %2095 = vmatpush3.bf16.msra.mxu0 %v2294_v11  ;;  %v2311_v28 = vld [vmem:[%s2886_s1 + $0x88] sm:$0xff]   ;;  %v2315_v32 = vld [vmem:[%s2886_s1 + $0x80] sm:$0xff]   ;;  %v2320_v43 = vld [vmem:[%s2886_s1 + $0x1b8] sm:$0xff]  }
  0x1c   : >> { %2117 = vmatpush3.bf16.msra.mxu1 %v2295_v12  ;;  %2096 = vmatprep.subr.bf16.mxu0 %v2296_v13  ;;  %v2316_v33 = vld [vmem:[%s2574_s14] sm:$0x7f]   ;;  %v2321_v46 = vld [vmem:[%s2886_s1 + $0x170] sm:$0xff]   ;;  %v2325_v50 = vld [vmem:[%s2886_s1 + $0x168] sm:$0xff]  }
  0x1d   : >> { %2118 = vmatprep.subr.bf16.mxu1 %v2297_v14  ;;  %v197_v35 = vshrl.u32 %v2316_v33, 16  ;;  %v199_v36 = vshll.u32 %v2316_v33, 16  ;;  %v204_v42 = vrot.slane %v2316_v33, 1  ;;  %v2322_v47 = vld [vmem:[%s2886_s1 + $0x1f0] sm:$0xff]   ;;  %v2326_v51 = vld [vmem:[%s2886_s1 + $0x1e8] sm:$0xff]   ;;  %v2329_v54 = vld [vmem:[%s2886_s1 + $0x160] sm:$0xff]  }
  0x1e   : >> { %v2323_v48 = vld [vmem:[%s2886_s1 + $0x130] sm:$0xff]   ;;  %v2327_v52 = vld [vmem:[%s2886_s1 + $0x128] sm:$0xff]   ;;  %v2330_v55 = vld [vmem:[%s2886_s1 + $0x1e0] sm:$0xff]  }
  0x1f   : >> { %2097 = vmatpush3.bf16.msra.mxu0 %v2298_v15  ;;  %v201_v38 = vrot.slane %v199_v36, 1  ;;  %v206_v39 = vrot.slane %v197_v35, 1  ;;  %v207_v40 = vrot.slane %v199_v36, 2  ;;  %v2324_v49 = vld [vmem:[%s2886_s1 + $0x1b0] sm:$0xff]   ;;  %v2328_v53 = vld [vmem:[%s2886_s1 + $0x1a8] sm:$0xff]   ;;  %v2331_v56 = vld [vmem:[%s2886_s1 + $0x120] sm:$0xff]  }
  0x20   : >> { %2119 = vmatpush3.bf16.msra.mxu1 %v2299_v16  ;;  %2098 = vmatprep.subr.bf16.mxu0 %v2300_v17  ;;  %v2332_v57 = vld [vmem:[%s2886_s1 + $0x1a0] sm:$0xff]   ;;  %v2333_v58 = vld [vmem:[%s2886_s1 + $0x158] sm:$0xff]   ;;  %v2337_v62 = vld [vmem:[%s2886_s1 + $0x150] sm:$0xff]  }
  0x21   : >> { %2120 = vmatprep.subr.bf16.mxu1 %v2301_v18  ;;  %v202_v44 = vor.u32 %v201_v38, %v197_v35  ;;  %v208_v45 = vor.u32 %v207_v40, %v206_v39  ;;  %v2334_v59 = vld [vmem:[%s2886_s1 + $0x1d8] sm:$0xff]   ;;  %v2338_v63 = vld [vmem:[%s2886_s1 + $0x1d0] sm:$0xff]   ;;  %v2341_v3 = vld [vmem:[%s2886_s1 + $0x148] sm:$0xff]  }
  0x22   : >> { %v2335_v60 = vld [vmem:[%s2886_s1 + $0x118] sm:$0xff]   ;;  %v2339_v1 = vld [vmem:[%s2886_s1 + $0x110] sm:$0xff]   ;;  %v2342_v4 = vld [vmem:[%s2886_s1 + $0x1c8] sm:$0xff]  }
  0x23   : >> { %2099 = vmatpush3.bf16.msra.mxu0 %v2302_v19  ;;  %498 = vmatprep.mubr.bf16.mxu0 %v202_v44  ;;  %v2336_v61 = vld [vmem:[%s2886_s1 + $0x198] sm:$0xff]   ;;  %v2340_v2 = vld [vmem:[%s2886_s1 + $0x190] sm:$0xff]   ;;  %v2343_v5 = vld [vmem:[%s2886_s1 + $0x108] sm:$0xff]  }
  0x24   : >> { %2121 = vmatpush3.bf16.msra.mxu1 %v2303_v20  ;;  %2100 = vmatprep.subr.bf16.mxu0 %v2304_v21  ;;  %v2344_v6 = vld [vmem:[%s2886_s1 + $0x188] sm:$0xff]   ;;  %v2345_v7 = vld [vmem:[%s2886_s1 + $0x140] sm:$0xff]   ;;  %v2350_v12 = vld [vmem:[%s2886_s1 + $0x278] sm:$0xff]  }
  0x25   : >> { %2122 = vmatprep.subr.bf16.mxu1 %v2305_v22  ;;  %539 = vmatprep.mubr.bf16.mxu1 %v208_v45  ;;  %v2346_v8 = vld [vmem:[%s2886_s1 + $0x1c0] sm:$0xff]   ;;  %v2349_v11 = vld [vmem:[%s2574_s14 + $0x8] sm:$0x7f]   ;;  %v2351_v15 = vld [vmem:[%s2886_s1 + $0x2f8] sm:$0xff]  }
  0x26   : >> { %v2347_v9 = vld [vmem:[%s2886_s1 + $0x100] sm:$0xff]   ;;  %v563_v13 = vshrl.u32 %v2349_v11, 16  ;;  %v565_v14 = vshll.u32 %v2349_v11, 16  ;;  %v570_v16 = vrot.slane %v2349_v11, 1  ;;  %v2352_v20 = vld [vmem:[%s2886_s1 + $0x238] sm:$0xff]   ;;  %v2370_v40 = vld [vmem:[%s2886_s1 + $0x250] sm:$0xff]  }
  0x27   : >> { %2101 = vmatpush3.bf16.msra.mxu0 %v2306_v23  ;;  %v2348_v10 = vld [vmem:[%s2886_s1 + $0x180] sm:$0xff]   ;;  %v2353_v21 = vld [vmem:[%s2886_s1 + $0x2b8] sm:$0xff]   ;;  %v2374_v44 = vld [vmem:[%s2886_s1 + $0x248] sm:$0xff]  }
  0x28   : >> { %2123 = vmatpush3.bf16.msra.mxu1 %v2307_v24  ;;  %2102 = vmatprep.subr.bf16.mxu0 %v2308_v25  ;;  %v567_v17 = vrot.slane %v565_v14, 1  ;;  %v572_v18 = vrot.slane %v563_v13, 1  ;;  %v573_v19 = vrot.slane %v565_v14, 2  ;;  %v2354_v24 = vld [vmem:[%s2886_s1 + $0x270] sm:$0xff]   ;;  %v2365_v35 = vld [vmem:[%s2886_s1 + $0x2a0] sm:$0xff]   ;;  %v2366_v36 = vld [vmem:[%s2886_s1 + $0x258] sm:$0xff]  }
  0x29   : >> { %2124 = vmatprep.subr.bf16.mxu1 %v2309_v26  ;;  %v2355_v25 = vld [vmem:[%s2886_s1 + $0x2f0] sm:$0xff]   ;;  %v2368_v38 = vld [vmem:[%s2886_s1 + $0x218] sm:$0xff]   ;;  %v2375_v45 = vld [vmem:[%s2886_s1 + $0x2c8] sm:$0xff]  }
  0x2a   : >> { %v568_v22 = vor.u32 %v567_v17, %v563_v13  ;;  %v574_v23 = vor.u32 %v573_v19, %v572_v18  ;;  %v2356_v26 = vld [vmem:[%s2886_s1 + $0x230] sm:$0xff]   ;;  %v2369_v39 = vld [vmem:[%s2886_s1 + $0x298] sm:$0xff]   ;;  %v2398_v13 = vld [vmem:[%s2886_s1 + $0x3a0] sm:$0xff]  }
  0x2b   : >> { %2103 = vmatpush3.bf16.msra.mxu0 %v2310_v27  ;;  %v2357_v27 = vld [vmem:[%s2886_s1 + $0x2b0] sm:$0xff]   ;;  %v2399_v14 = vld [vmem:[%s2886_s1 + $0x358] sm:$0xff]  }
  0x2c   : >> { %2125 = vmatpush3.bf16.msra.mxu1 %v2311_v28  ;;  %2104 = vmatprep.subr.bf16.mxu0 %v2312_v29  ;;  %v2358_v28 = vld [vmem:[%s2886_s1 + $0x268] sm:$0xff]   ;;  %v2402_v17 = vld [vmem:[%s2886_s1 + $0x398] sm:$0xff]   ;;  %v2403_v18 = vld [vmem:[%s2886_s1 + $0x350] sm:$0xff]  }
  0x2d   : >> { %2126 = vmatprep.subr.bf16.mxu1 %v2313_v30  ;;  %v2359_v29 = vld [vmem:[%s2886_s1 + $0x2e8] sm:$0xff]   ;;  %v2404_v19 = vld [vmem:[%s2886_s1 + $0x3d0] sm:$0xff]  }
  0x2e   : >> { %v2360_v30 = vld [vmem:[%s2886_s1 + $0x228] sm:$0xff]  }
  0x2f   : >> { %2105 = vmatpush3.bf16.msra.mxu0 %v2314_v31  ;;  %v2361_v31 = vld [vmem:[%s2886_s1 + $0x2a8] sm:$0xff]  }
  0x30   : >> { %2127 = vmatpush3.bf16.msra.mxu1 %v2315_v32  ;;  %2134 = vmatprep.subr.bf16.mxu0 %v2317_v34  ;;  %v2362_v32 = vld [vmem:[%s2886_s1 + $0x260] sm:$0xff]  }
  0x31   : >> { %2156 = vmatprep.subr.bf16.mxu1 %v2318_v37  ;;  %v2364_v34 = vld [vmem:[%s2886_s1 + $0x220] sm:$0xff]   ;;  %v2367_v37 = vld [vmem:[%s2886_s1 + $0x2d8] sm:$0xff]  }
  0x32   : >> { %499 = vmatmul.mubr.bf16.vlgmr.msra.gmra.mxu0 %v2316_v33  ;;  %v2363_v33 = vld [vmem:[%s2886_s1 + $0x2e0] sm:$0xff]  }
  0x33   : >> { %540 = vmatmul.mubr.bf16.vlgmr.msra.gmra.mxu1 %v204_v42  ;;  %2135 = vmatpush3.bf16.msra.mxu0 %v2319_v41  ;;  %v2371_v41 = vld [vmem:[%s2886_s1 + $0x2d0] sm:$0xff]  }
  0x34   : >> { %2157 = vmatpush3.bf16.msra.mxu1 %v2320_v43  ;;  %2136 = vmatprep.subr.bf16.mxu0 %v2321_v46  ;;  %v2372_v42 = vld [vmem:[%s2886_s1 + $0x210] sm:$0xff]   ;;  %v2376_v46 = vld [vmem:[%s2886_s1 + $0x208] sm:$0xff]  }
  0x35   : >> { %2158 = vmatprep.subr.bf16.mxu1 %v2322_v47  ;;  %865 = vmatprep.mubr.bf16.mxu0 %v568_v22  ;;  %v2373_v43 = vld [vmem:[%s2886_s1 + $0x290] sm:$0xff]   ;;  %v2377_v47 = vld [vmem:[%s2886_s1 + $0x288] sm:$0xff]  }
  0x36   : >> { %906 = vmatprep.mubr.bf16.mxu1 %v574_v23  ;;  %v2407_v22 = vld [vmem:[%s2886_s1 + $0x348] sm:$0xff]  }
  0x37   : >> { %2137 = vmatpush3.bf16.msra.mxu0 %v2323_v48  ;;  %v2378_v48 = vld [vmem:[%s2886_s1 + $0x240] sm:$0xff]   ;;  %v2408_v23 = vld [vmem:[%s2886_s1 + $0x3c8] sm:$0xff]  }
  0x38   : >> { %2159 = vmatpush3.bf16.msra.mxu1 %v2324_v49  ;;  %2138 = vmatprep.subr.bf16.mxu0 %v2325_v50  ;;  %v2379_v49 = vld [vmem:[%s2886_s1 + $0x2c0] sm:$0xff]  }
  0x39   : >> { %2160 = vmatprep.subr.bf16.mxu1 %v2326_v51  ;;  %v2380_v50 = vld [vmem:[%s2886_s1 + $0x200] sm:$0xff]  }
  0x3a   : >> { %v2381_v51 = vld [vmem:[%s2886_s1 + $0x280] sm:$0xff]  }
  0x3b   : >> { %2139 = vmatpush3.bf16.msra.mxu0 %v2327_v52  ;;  %v2382_v52 = vld [vmem:[%s2574_s14 + $0x10] sm:$0x7f]  }
  0x3c   : >> { %2161 = vmatpush3.bf16.msra.mxu1 %v2328_v53  ;;  %2140 = vmatprep.subr.bf16.mxu0 %v2329_v54  ;;  %v2383_v53 = vld [vmem:[%s2886_s1 + $0x378] sm:$0xff]   ;;  %v930_v54 = vshrl.u32 %v2382_v52, 16 }
  0x3d   : >> { %2162 = vmatprep.subr.bf16.mxu1 %v2330_v55  ;;  %v932_v55 = vshll.u32 %v2382_v52, 16 }
  0x3f   : >> { %2141 = vmatpush3.bf16.msra.mxu0 %v2331_v56  ;;  %v2384_v56 = vld [vmem:[%s2886_s1 + $0x3f8] sm:$0xff]  }
  0x40   : >> { %2163 = vmatpush3.bf16.msra.mxu1 %v2332_v57  ;;  %2142 = vmatprep.subr.bf16.mxu0 %v2333_v58  ;;  %v934_v57 = vrot.slane %v932_v55, 1  ;;  %v939_v58 = vrot.slane %v930_v54, 1 }
  0x41   : >> { %2164 = vmatprep.subr.bf16.mxu1 %v2334_v59  ;;  %v940_v59 = vrot.slane %v932_v55, 2 }
  0x43   : >> { %2143 = vmatpush3.bf16.msra.mxu0 %v2335_v60  ;;  %v2385_v60 = vld [vmem:[%s2886_s1 + $0x338] sm:$0xff]  }
  0x44   : >> { %2165 = vmatpush3.bf16.msra.mxu1 %v2336_v61  ;;  %2144 = vmatprep.subr.bf16.mxu0 %v2337_v62  ;;  %v937_v61 = vrot.slane %v2382_v52, 1  ;;  %v2386_v62 = vld [vmem:[%s2886_s1 + $0x3b8] sm:$0xff]  }
  0x45   : >> { %2166 = vmatprep.subr.bf16.mxu1 %v2338_v63  ;;  %v935_v63 = vor.u32 %v934_v57, %v930_v54 }
  0x47   : >> { %2145 = vmatpush3.bf16.msra.mxu0 %v2339_v1  ;;  %v941_v1 = vor.u32 %v940_v59, %v939_v58 }
  0x48   : >> { %2167 = vmatpush3.bf16.msra.mxu1 %v2340_v2  ;;  %2146 = vmatprep.subr.bf16.mxu0 %v2341_v3  ;;  %v2387_v2 = vld [vmem:[%s2886_s1 + $0x370] sm:$0xff]  }
  0x49   : >> { %2168 = vmatprep.subr.bf16.mxu1 %v2342_v4  ;;  %v2388_v3 = vld [vmem:[%s2886_s1 + $0x3f0] sm:$0xff]  }
  0x4a   : >> { %v2389_v4 = vld [vmem:[%s2886_s1 + $0x330] sm:$0xff]  }
  0x4b   : >> { %2147 = vmatpush3.bf16.msra.mxu0 %v2343_v5  ;;  %v2390_v5 = vld [vmem:[%s2886_s1 + $0x3b0] sm:$0xff]  }
  0x4c   : >> { %2169 = vmatpush3.bf16.msra.mxu1 %v2344_v6  ;;  %2148 = vmatprep.subr.bf16.mxu0 %v2345_v7  ;;  %v2391_v6 = vld [vmem:[%s2886_s1 + $0x368] sm:$0xff]  }
  0x4d   : >> { %2170 = vmatprep.subr.bf16.mxu1 %v2346_v8  ;;  %v2392_v7 = vld [vmem:[%s2886_s1 + $0x3e8] sm:$0xff]  }
  0x4e   : >> { %v2393_v8 = vld [vmem:[%s2886_s1 + $0x328] sm:$0xff]  }
  0x4f   : >> { %2149 = vmatpush3.bf16.msra.mxu0 %v2347_v9  ;;  %v2394_v9 = vld [vmem:[%s2886_s1 + $0x3a8] sm:$0xff]  }
  0x50   : >> { %2171 = vmatpush3.bf16.msra.mxu1 %v2348_v10  ;;  %2178 = vmatprep.subr.bf16.mxu0 %v2350_v12  ;;  %v2395_v10 = vld [vmem:[%s2886_s1 + $0x360] sm:$0xff]  }
  0x51   : >> { %2200 = vmatprep.subr.bf16.mxu1 %v2351_v15  ;;  %v2397_v12 = vld [vmem:[%s2886_s1 + $0x320] sm:$0xff]   ;;  %v2400_v15 = vld [vmem:[%s2886_s1 + $0x3d8] sm:$0xff]  }
  0x52   : >> { %866 = vmatmul.mubr.bf16.vlgmr.msra.gmra.mxu0 %v2349_v11  ;;  %v2396_v11 = vld [vmem:[%s2886_s1 + $0x3e0] sm:$0xff]  }
  0x53   : >> { %907 = vmatmul.mubr.bf16.vlgmr.msra.gmra.mxu1 %v570_v16  ;;  %2179 = vmatpush3.bf16.msra.mxu0 %v2352_v20  ;;  %v2401_v16 = vld [vmem:[%s2886_s1 + $0x318] sm:$0xff]   ;;  %v2405_v20 = vld [vmem:[%s2886_s1 + $0x310] sm:$0xff]  }
  0x54   : >> { %2201 = vmatpush3.bf16.msra.mxu1 %v2353_v21  ;;  %2180 = vmatprep.subr.bf16.mxu0 %v2354_v24  ;;  %v2406_v21 = vld [vmem:[%s2886_s1 + $0x390] sm:$0xff]   ;;  %v2409_v24 = vld [vmem:[%s2886_s1 + $0x308] sm:$0xff]  }
  0x55   : >> { %2202 = vmatprep.subr.bf16.mxu1 %v2355_v25  ;;  %1232 = vmatprep.mubr.bf16.mxu0 %v935_v63  ;;  %v2410_v25 = vld [vmem:[%s2886_s1 + $0x388] sm:$0xff]  }
  0x56   : >> { %1273 = vmatprep.mubr.bf16.mxu1 %v941_v1 }
  0x57   : >> { %2181 = vmatpush3.bf16.msra.mxu0 %v2356_v26  ;;  %v2411_v26 = vld [vmem:[%s2886_s1 + $0x340] sm:$0xff]  }
  0x58   : >> { %2203 = vmatpush3.bf16.msra.mxu1 %v2357_v27  ;;  %2182 = vmatprep.subr.bf16.mxu0 %v2358_v28  ;;  %v2412_v27 = vld [vmem:[%s2886_s1 + $0x3c0] sm:$0xff]   ;;  %v2415_v28 = vld [vmem:[%s2574_s14 + $0x18] sm:$0x7f]   ;;  %s1662_s14 = scalar_lea.vmem %s2473_s23, %s2086_s6 }
  0x59   : >> { %2204 = vmatprep.subr.bf16.mxu1 %v2359_v29  ;;  %v2413_v29 = vld [vmem:[%s2886_s1 + $0x300] sm:$0xff]  }
  0x5b   : >> { %2183 = vmatpush3.bf16.msra.mxu0 %v2360_v30  ;;  %v2414_v30 = vld [vmem:[%s2886_s1 + $0x380] sm:$0xff]  }
  0x5c   : >> { %2205 = vmatpush3.bf16.msra.mxu1 %v2361_v31  ;;  %2184 = vmatprep.subr.bf16.mxu0 %v2362_v32  ;;  %v1297_v31 = vshrl.u32 %v2415_v28, 16  ;;  %v1299_v32 = vshll.u32 %v2415_v28, 16 }
  0x5d   : >> { %2206 = vmatprep.subr.bf16.mxu1 %v2363_v33 }
  0x5e   : >> { %v1301_v33 = vrot.slane %v1299_v32, 1 }
  0x5f   : >> { %2185 = vmatpush3.bf16.msra.mxu0 %v2364_v34  ;;  %v1306_v34 = vrot.slane %v1297_v31, 1 }
  0x60   : >> { %2207 = vmatpush3.bf16.msra.mxu1 %v2365_v35  ;;  %2186 = vmatprep.subr.bf16.mxu0 %v2366_v36  ;;  %v1307_v35 = vrot.slane %v1299_v32, 2  ;;  %v1304_v36 = vrot.slane %v2415_v28, 1 }
  0x61   : >> { %2208 = vmatprep.subr.bf16.mxu1 %v2367_v37  ;;  %v1302_v37 = vor.u32 %v1301_v33, %v1297_v31 }
  0x63   : >> { %2187 = vmatpush3.bf16.msra.mxu0 %v2368_v38  ;;  %v1308_v38 = vor.u32 %v1307_v35, %v1306_v34 }
  0x64   : >> { %2209 = vmatpush3.bf16.msra.mxu1 %v2369_v39  ;;  %2188 = vmatprep.subr.bf16.mxu0 %v2370_v40 }
  0x65   : >> { %2210 = vmatprep.subr.bf16.mxu1 %v2371_v41 }
  0x67   : >> { %2189 = vmatpush3.bf16.msra.mxu0 %v2372_v42 }
  0x68   : >> { %2211 = vmatpush3.bf16.msra.mxu1 %v2373_v43  ;;  %2190 = vmatprep.subr.bf16.mxu0 %v2374_v44 }
  0x69   : >> { %2212 = vmatprep.subr.bf16.mxu1 %v2375_v45 }
  0x6b   : >> { %2191 = vmatpush3.bf16.msra.mxu0 %v2376_v46 }
  0x6c   : >> { %2213 = vmatpush3.bf16.msra.mxu1 %v2377_v47  ;;  %2192 = vmatprep.subr.bf16.mxu0 %v2378_v48 }
  0x6d   : >> { %2214 = vmatprep.subr.bf16.mxu1 %v2379_v49 }
  0x6f   : >> { %2193 = vmatpush3.bf16.msra.mxu0 %v2380_v50 }
  0x70   : >> { %2215 = vmatpush3.bf16.msra.mxu1 %v2381_v51  ;;  %2222 = vmatprep.subr.bf16.mxu0 %v2383_v53 }
  0x71   : >> { %2244 = vmatprep.subr.bf16.mxu1 %v2384_v56 }
  0x72   : >> { %1233 = vmatmul.mubr.bf16.vlgmr.msra.gmra.mxu0 %v2382_v52 }
  0x73   : >> { %1274 = vmatmul.mubr.bf16.vlgmr.msra.gmra.mxu1 %v937_v61  ;;  %2223 = vmatpush3.bf16.msra.mxu0 %v2385_v60 }
  0x74   : >> { %2245 = vmatpush3.bf16.msra.mxu1 %v2386_v62  ;;  %2224 = vmatprep.subr.bf16.mxu0 %v2387_v2 }
  0x75   : >> { %2246 = vmatprep.subr.bf16.mxu1 %v2388_v3  ;;  %1599 = vmatprep.mubr.bf16.mxu0 %v1302_v37 }
  0x76   : >> { %1640 = vmatprep.mubr.bf16.mxu1 %v1308_v38 }
  0x77   : >> { %2225 = vmatpush3.bf16.msra.mxu0 %v2389_v4 }
  0x78   : >> { %2247 = vmatpush3.bf16.msra.mxu1 %v2390_v5  ;;  %2226 = vmatprep.subr.bf16.mxu0 %v2391_v6 }
  0x79   : >> { %2248 = vmatprep.subr.bf16.mxu1 %v2392_v7 }
  0x7b   : >> { %2227 = vmatpush3.bf16.msra.mxu0 %v2393_v8 }
  0x7c   : >> { %2249 = vmatpush3.bf16.msra.mxu1 %v2394_v9  ;;  %2228 = vmatprep.subr.bf16.mxu0 %v2395_v10 }
  0x7d   : >> { %2250 = vmatprep.subr.bf16.mxu1 %v2396_v11 }
  0x7f   : >> { %2229 = vmatpush3.bf16.msra.mxu0 %v2397_v12 }
  0x80   : >> { %2251 = vmatpush3.bf16.msra.mxu1 %v2398_v13  ;;  %2230 = vmatprep.subr.bf16.mxu0 %v2399_v14 }
  0x81   : >> { %2252 = vmatprep.subr.bf16.mxu1 %v2400_v15 }
  0x83   : >> { %2231 = vmatpush3.bf16.msra.mxu0 %v2401_v16 }
  0x84   : >> { %2253 = vmatpush3.bf16.msra.mxu1 %v2402_v17  ;;  %2232 = vmatprep.subr.bf16.mxu0 %v2403_v18 }
  0x85   : >> { %2254 = vmatprep.subr.bf16.mxu1 %v2404_v19 }
  0x87   : >> { %2233 = vmatpush3.bf16.msra.mxu0 %v2405_v20 }
  0x88   : >> { %2255 = vmatpush3.bf16.msra.mxu1 %v2406_v21  ;;  %2234 = vmatprep.subr.bf16.mxu0 %v2407_v22 }
  0x89   : >> { %2256 = vmatprep.subr.bf16.mxu1 %v2408_v23 }
  0x8b   : >> { %2235 = vmatpush3.bf16.msra.mxu0 %v2409_v24 }
  0x8c   : >> { %2257 = vmatpush3.bf16.msra.mxu1 %v2410_v25  ;;  %2236 = vmatprep.subr.bf16.mxu0 %v2411_v26 }
  0x8d   : >> { %2258 = vmatprep.subr.bf16.mxu1 %v2412_v27 }
  0x8f   : >> { %2237 = vmatpush3.bf16.msra.mxu0 %v2413_v29 }
  0x90   : >> { %2259 = vmatpush3.bf16.msra.mxu1 %v2414_v30 }
  0x92   : >> { %1600 = vmatmul.mubr.bf16.vlgmr.msra.gmra.mxu0 %v2415_v28 }
  0x93   : >> { %1641 = vmatmul.mubr.bf16.vlgmr.msra.gmra.mxu1 %v1304_v36 }
  0xf2   : >> { %v2106_v39 = vpop.f32.mrf.mxu0 }
  0xf3   : >> { %v2128_v40 = vpop.f32.mrf.mxu1 }
  0xf4   : >> { %v2107_v41 = vpop.f32.mrf.mxu0 }
  0xf5   : >> { %v2129_v42 = vpop.f32.mrf.mxu1  ;;  %v2108_v59 = vadd.f32 %v2107_v41, %v2106_v39 }
  0xf6   : >> { %v2109_v43 = vpop.f32.mrf.mxu0  ;;  %v2130_v60 = vadd.f32 %v2129_v42, %v2128_v40 }
  0xf7   : >> { %v2131_v44 = vpop.f32.mrf.mxu1 }
  0xf8   : >> { %v2110_v45 = vpop.f32.mrf.mxu0  ;;  %v542_v2 = vadd.f32 %v2130_v60, %v2108_v59 }
  0xf9   : >> { %v2132_v46 = vpop.f32.mrf.mxu1  ;;  %v2111_v3 = vadd.f32 %v2110_v45, %v2109_v43 }
  0xfa   : >> { %v2133_v4 = vadd.f32 %v2132_v46, %v2131_v44  ;;  %v548_v12 = vadd.f32 %v2463_v0, %v542_v2 }
  0xfc   : >> { %v545_v15 = vadd.f32 %v2133_v4, %v2111_v3 }
  0xfe   : >> { %v549_v27 = vadd.f32 %v2463_v0, %v545_v15 }
 0x112   : >> { %v2150_v47 = vpop.f32.mrf.mxu0 }
 0x113   : >> { %v2172_v48 = vpop.f32.mrf.mxu1 }
 0x114   : >> { %v2151_v49 = vpop.f32.mrf.mxu0 }
 0x115   : >> { %v2173_v50 = vpop.f32.mrf.mxu1  ;;  %v2152_v63 = vadd.f32 %v2151_v49, %v2150_v47 }
 0x116   : >> { %v2153_v51 = vpop.f32.mrf.mxu0  ;;  %v2174_v1 = vadd.f32 %v2173_v50, %v2172_v48 }
 0x117   : >> { %v2175_v52 = vpop.f32.mrf.mxu1 }
 0x118   : >> { %v2154_v53 = vpop.f32.mrf.mxu0  ;;  %v909_v9 = vadd.f32 %v2174_v1, %v2152_v63 }
 0x119   : >> { %v2176_v54 = vpop.f32.mrf.mxu1  ;;  %v2155_v10 = vadd.f32 %v2154_v53, %v2153_v51 }
 0x11a   : >> { %v2177_v11 = vadd.f32 %v2176_v54, %v2175_v52  ;;  %v915_v21 = vadd.f32 %v909_v9, %v548_v12 }
 0x11c   : >> { %v912_v22 = vadd.f32 %v2177_v11, %v2155_v10 }
 0x11e   : >> { %v916_v33 = vadd.f32 %v912_v22, %v549_v27 }
 0x132   : >> { %v2194_v55 = vpop.f32.mrf.mxu0 }
 0x133   : >> { %v2216_v56 = vpop.f32.mrf.mxu1 }
 0x134   : >> { %v2195_v57 = vpop.f32.mrf.mxu0 }
 0x135   : >> { %v2217_v58 = vpop.f32.mrf.mxu1  ;;  %v2196_v5 = vadd.f32 %v2195_v57, %v2194_v55 }
 0x136   : >> { %v2197_v61 = vpop.f32.mrf.mxu0  ;;  %v2218_v6 = vadd.f32 %v2217_v58, %v2216_v56 }
 0x137   : >> { %v2219_v62 = vpop.f32.mrf.mxu1 }
 0x138   : >> { %v2198_v7 = vpop.f32.mrf.mxu0  ;;  %v1276_v16 = vadd.f32 %v2218_v6, %v2196_v5 }
 0x139   : >> { %v2220_v8 = vpop.f32.mrf.mxu1  ;;  %v2199_v17 = vadd.f32 %v2198_v7, %v2197_v61 }
 0x13a   : >> { %v2221_v18 = vadd.f32 %v2220_v8, %v2219_v62  ;;  %v1282_v28 = vadd.f32 %v1276_v16, %v915_v21 }
 0x13c   : >> { %v1279_v29 = vadd.f32 %v2221_v18, %v2199_v17 }
 0x13e   : >> { %v1283_v37 = vadd.f32 %v1279_v29, %v916_v33 }
 0x152   : >> { %v2238_v13 = vpop.f32.mrf.mxu0 }
 0x153   : >> { %v2260_v14 = vpop.f32.mrf.mxu1 }
 0x154   : >> { %v2239_v19 = vpop.f32.mrf.mxu0 }
 0x155   : >> { %v2261_v20 = vpop.f32.mrf.mxu1  ;;  %v2240_v23 = vadd.f32 %v2239_v19, %v2238_v13 }
 0x156   : >> { %v2262_v24 = vadd.f32 %v2261_v20, %v2260_v14  ;;  %v2241_v25 = vpop.f32.mrf.mxu0 }
 0x157   : >> { %v2263_v26 = vpop.f32.mrf.mxu1 }
 0x158   : >> { %v1643_v30 = vadd.f32 %v2262_v24, %v2240_v23  ;;  %v2242_v31 = vpop.f32.mrf.mxu0 }
 0x159   : >> { %v2264_v32 = vpop.f32.mrf.mxu1  ;;  %v2243_v35 = vadd.f32 %v2242_v31, %v2241_v25 }
 0x15a   : >> { %v1649_v34 = vadd.f32 %v1643_v30, %v1282_v28  ;;  %v2265_v36 = vadd.f32 %v2264_v32, %v2263_v26 }
 0x15c   : >> { %v1651_v38 = vmax.f32 %v1649_v34, 0.0  ;;  %v1646_v39 = vadd.f32 %v2265_v36, %v2243_v35 }
 0x15e   : >> { %v2087_v40 = vpack.c.bf16 %v1651_v38, %v1651_v38  ;;  %v1650_v41 = vadd.f32 %v1646_v39, %v1283_v37 }
 0x160   : >> { %1663 = vst [vmem:[%s1662_s14] sm:$0xf] %v2087_v40  ;;  %v1652_v42 = vmax.f32 %v1650_v41, 0.0  ;;  %177 = sbr.rel (!%p175_p4) target bundleno = 16 (0x10), region = 77 }
 0x162   : >> { %v2088_v43 = vpack.c.bf16 %v1652_v42, %v1652_v42 }
 0x164   : >> { %1664 = vst [vmem:[%s1662_s14 + $0x4] sm:$0x1] %v2088_v43 }
 0x165 PF: > { %s13_s12 = sadd.s32 1, %s2426_s12  }
 0x166   : > { %p10_p5 = scmp.ge.s32.totalorder %s13_s12, 4  }
 0x168   :  { %12 = sbr.rel (!%p10_p5) target bundleno = 1 (0x1), region = 88 }

// kernel: convnet_forward.8
= control target key start
LH: loop header
LB: loop body
LE: loop exit
PB: predicated region body
PF: predicated region fallthrough
CT: control target
= control target key end

     0   :  { %s2402_s12 = smov 0   ;;  %s2831_s0 = inlined_call_operand.vmem [shape: bf16[2,7,7,128], index: 0, kind: input, shape index: {}]   ;;  %s2832_s1 = inlined_call_operand.vmem [shape: bf16[4,512,128], index: 1, kind: input, shape index: {}]   ;;  %s2833_s2 = inlined_call_operand.vmem [shape: f32[1,128], index: 2, kind: input, shape index: {}]   ;;  %s2834_s3 = inlined_call_operand.vmem [shape: bf16[2,4,4,128], index: 3, kind: output, shape index: {}]  }
   0x1 LB: > { %s1697_s13 = sadd.s32 4294967295, %s2376_s12   ;;  %p1701_p0 = scmp.ge.s32.totalorder %s2376_s12, 1  ;;  %s2376_s12 = sphi %s2402_s12, %s13_s12  }
   0x2   : > { %p137_p1 = scmp.lt.s32.totalorder %s2376_s12, 3 }
   0x4   : > { %p138_p2 = pnand %p1701_p0, %p137_p1 }
   0x5   : > { %p161_p3 = scmp.lt.s32.totalorder (!%p138_p2), %s1697_s13, 1  ;;  %s2425_s24 = smov (!%p138_p2), 0  }
   0x6   : > { %141 = sbr.rel (%p138_p2) target bundleno = 352 (0x160), region = 32 }
   0xb   : > { %v2413_v0 = vld [vmem:[%s2833_s2] ss:$0 sm:$0xff]  ;;  %s2836_s13 = smov (!%p161_p3, %s1697_s13), 1 }
   0xc   : > { %s2217_s16 = smul.u32 28, %s2836_s13  ;;  %s2040_s17 = sshll.u32 %s2836_s13, 3 }
   0xd   : > { %s2418_s20 = scalar_lea.vmem %s2834_s3, %s2040_s17 }
   0xe   : > { %s2423_s23 = scalar_lea.vmem %s2831_s0, %s2217_s16 }
   0xf LB: >> { %v2234_v1 = vld [vmem:[%s2832_s1 + $0x78] sm:$0xff]   ;;  %v2238_v5 = vld [vmem:[%s2832_s1 + $0x70] sm:$0xff]   ;;  %v2242_v9 = vld [vmem:[%s2832_s1 + $0x68] sm:$0xff]   ;;  %s1706_s6 = sshll.u32 %s2380_s24, 2  ;;  %s2380_s24 = sphi %s2425_s24, %s178_s24  }
  0x10   : >> { %v2235_v2 = vld [vmem:[%s2832_s1 + $0xf8] sm:$0xff]   ;;  %2041 = vmatprep.subr.bf16.mxu0 %v2234_v1  ;;  %v2239_v6 = vld [vmem:[%s2832_s1 + $0xf0] sm:$0xff]   ;;  %v2243_v10 = vld [vmem:[%s2832_s1 + $0xe8] sm:$0xff]   ;;  %s2522_s14 = scalar_lea.vmem %s2423_s23, %s1706_s6 }
  0x11   : >> { %v2236_v3 = vld [vmem:[%s2832_s1 + $0x38] sm:$0xff]   ;;  %2063 = vmatprep.subr.bf16.mxu1 %v2235_v2  ;;  %v2240_v7 = vld [vmem:[%s2832_s1 + $0x30] sm:$0xff]   ;;  %v2244_v11 = vld [vmem:[%s2832_s1 + $0x28] sm:$0xff]  }
  0x12   : >> { %v2237_v4 = vld [vmem:[%s2832_s1 + $0xb8] sm:$0xff]   ;;  %2042 = vmatpush3.bf16.msra.mxu0 %v2236_v3  ;;  %v2241_v8 = vld [vmem:[%s2832_s1 + $0xb0] sm:$0xff]   ;;  %v2245_v12 = vld [vmem:[%s2832_s1 + $0xa8] sm:$0xff]  }
  0x13   : >> { %2064 = vmatpush3.bf16.msra.mxu1 %v2237_v4  ;;  %2043 = vmatprep.subr.bf16.mxu0 %v2238_v5  ;;  %v2246_v13 = vld [vmem:[%s2832_s1 + $0x60] sm:$0xff]   ;;  %v2250_v17 = vld [vmem:[%s2832_s1 + $0x58] sm:$0xff]   ;;  %v2254_v21 = vld [vmem:[%s2832_s1 + $0x50] sm:$0xff]  }
  0x14   : >> { %2065 = vmatprep.subr.bf16.mxu1 %v2239_v6  ;;  %v2247_v14 = vld [vmem:[%s2832_s1 + $0xe0] sm:$0xff]   ;;  %v2251_v18 = vld [vmem:[%s2832_s1 + $0xd8] sm:$0xff]   ;;  %v2255_v22 = vld [vmem:[%s2832_s1 + $0xd0] sm:$0xff]  }
  0x15   : >> { %v2248_v15 = vld [vmem:[%s2832_s1 + $0x20] sm:$0xff]   ;;  %v2252_v19 = vld [vmem:[%s2832_s1 + $0x18] sm:$0xff]   ;;  %v2256_v23 = vld [vmem:[%s2832_s1 + $0x10] sm:$0xff]  }
  0x16   : >> { %2044 = vmatpush3.bf16.msra.mxu0 %v2240_v7  ;;  %v2249_v16 = vld [vmem:[%s2832_s1 + $0xa0] sm:$0xff]   ;;  %v2253_v20 = vld [vmem:[%s2832_s1 + $0x98] sm:$0xff]   ;;  %v2257_v24 = vld [vmem:[%s2832_s1 + $0x90] sm:$0xff]  }
  0x17   : >> { %2066 = vmatpush3.bf16.msra.mxu1 %v2241_v8  ;;  %2045 = vmatprep.subr.bf16.mxu0 %v2242_v9  ;;  %v2258_v25 = vld [vmem:[%s2832_s1 + $0x48] sm:$0xff]   ;;  %v2262_v29 = vld [vmem:[%s2832_s1 + $0x40] sm:$0xff]   ;;  %v2267_v35 = vld [vmem:[%s2832_s1 + $0x178] sm:$0xff]  }
  0x18   : >> { %2067 = vmatprep.subr.bf16.mxu1 %v2243_v10  ;;  %v2259_v26 = vld [vmem:[%s2832_s1 + $0xc8] sm:$0xff]   ;;  %v2263_v30 = vld [vmem:[%s2832_s1 + $0xc0] sm:$0xff]   ;;  %v2268_v36 = vld [vmem:[%s2832_s1 + $0x1f8] sm:$0xff]  }
  0x19   : >> { %v2260_v27 = vld [vmem:[%s2832_s1 + $0x8] sm:$0xff]   ;;  %v2264_v31 = vld [vmem:[%s2832_s1] sm:$0xff]   ;;  %v2269_v42 = vld [vmem:[%s2832_s1 + $0x138] sm:$0xff]  }
  0x1a   : >> { %2046 = vmatpush3.bf16.msra.mxu0 %v2244_v11  ;;  %v2261_v28 = vld [vmem:[%s2832_s1 + $0x88] sm:$0xff]   ;;  %v2265_v32 = vld [vmem:[%s2832_s1 + $0x80] sm:$0xff]   ;;  %v2270_v44 = vld [vmem:[%s2832_s1 + $0x1b8] sm:$0xff]  }
  0x1b   : >> { %2068 = vmatpush3.bf16.msra.mxu1 %v2245_v12  ;;  %2047 = vmatprep.subr.bf16.mxu0 %v2246_v13  ;;  %v187_v33 = vld [vmem:[%s2522_s14] sm:$0xf]  ;;  %v2271_v47 = vld [vmem:[%s2832_s1 + $0x170] sm:$0xff]   ;;  %v2275_v51 = vld [vmem:[%s2832_s1 + $0x168] sm:$0xff]  }
  0x1c   : >> { %2069 = vmatprep.subr.bf16.mxu1 %v2247_v14  ;;  %v1707_v34 = vcombine.low %v187_v33, %v187_v33  ;;  %v2272_v48 = vld [vmem:[%s2832_s1 + $0x1f0] sm:$0xff]   ;;  %v2276_v52 = vld [vmem:[%s2832_s1 + $0x1e8] sm:$0xff]   ;;  %v2279_v55 = vld [vmem:[%s2832_s1 + $0x160] sm:$0xff]  }
  0x1d   : >> { %v2273_v49 = vld [vmem:[%s2832_s1 + $0x130] sm:$0xff]   ;;  %v2277_v53 = vld [vmem:[%s2832_s1 + $0x128] sm:$0xff]   ;;  %v2280_v56 = vld [vmem:[%s2832_s1 + $0x1e0] sm:$0xff]  }
  0x1e   : >> { %2048 = vmatpush3.bf16.msra.mxu0 %v2248_v15  ;;  %v192_v37 = vshrl.u32 %v1707_v34, 16  ;;  %v194_v38 = vshll.u32 %v1707_v34, 16  ;;  %v199_v43 = vrot.slane %v1707_v34, 1  ;;  %v2274_v50 = vld [vmem:[%s2832_s1 + $0x1b0] sm:$0xff]   ;;  %v2278_v54 = vld [vmem:[%s2832_s1 + $0x1a8] sm:$0xff]   ;;  %v2281_v57 = vld [vmem:[%s2832_s1 + $0x120] sm:$0xff]  }
  0x1f   : >> { %2070 = vmatpush3.bf16.msra.mxu1 %v2249_v16  ;;  %2049 = vmatprep.subr.bf16.mxu0 %v2250_v17  ;;  %v2282_v58 = vld [vmem:[%s2832_s1 + $0x1a0] sm:$0xff]   ;;  %v2283_v59 = vld [vmem:[%s2832_s1 + $0x158] sm:$0xff]   ;;  %v2287_v63 = vld [vmem:[%s2832_s1 + $0x150] sm:$0xff]  }
  0x20   : >> { %2071 = vmatprep.subr.bf16.mxu1 %v2251_v18  ;;  %v196_v39 = vrot.slane %v194_v38, 1  ;;  %v201_v40 = vrot.slane %v192_v37, 1  ;;  %v202_v41 = vrot.slane %v194_v38, 2  ;;  %v2284_v60 = vld [vmem:[%s2832_s1 + $0x1d8] sm:$0xff]   ;;  %v2288_v1 = vld [vmem:[%s2832_s1 + $0x1d0] sm:$0xff]   ;;  %v2291_v4 = vld [vmem:[%s2832_s1 + $0x148] sm:$0xff]  }
  0x21   : >> { %v2285_v61 = vld [vmem:[%s2832_s1 + $0x118] sm:$0xff]   ;;  %v2289_v2 = vld [vmem:[%s2832_s1 + $0x110] sm:$0xff]   ;;  %v2292_v5 = vld [vmem:[%s2832_s1 + $0x1c8] sm:$0xff]  }
  0x22   : >> { %2050 = vmatpush3.bf16.msra.mxu0 %v2252_v19  ;;  %v197_v45 = vor.u32 %v196_v39, %v192_v37  ;;  %v203_v46 = vor.u32 %v202_v41, %v201_v40  ;;  %v2286_v62 = vld [vmem:[%s2832_s1 + $0x198] sm:$0xff]   ;;  %v2290_v3 = vld [vmem:[%s2832_s1 + $0x190] sm:$0xff]   ;;  %v2293_v6 = vld [vmem:[%s2832_s1 + $0x108] sm:$0xff]  }
  0x23   : >> { %2072 = vmatpush3.bf16.msra.mxu1 %v2253_v20  ;;  %2051 = vmatprep.subr.bf16.mxu0 %v2254_v21  ;;  %v2294_v7 = vld [vmem:[%s2832_s1 + $0x188] sm:$0xff]   ;;  %v2295_v8 = vld [vmem:[%s2832_s1 + $0x140] sm:$0xff]   ;;  %v2300_v16 = vld [vmem:[%s2832_s1 + $0x278] sm:$0xff]  }
  0x24   : >> { %2073 = vmatprep.subr.bf16.mxu1 %v2255_v22  ;;  %493 = vmatprep.mubr.bf16.mxu0 %v197_v45  ;;  %v2296_v9 = vld [vmem:[%s2832_s1 + $0x1c0] sm:$0xff]   ;;  %v2301_v17 = vld [vmem:[%s2832_s1 + $0x2f8] sm:$0xff]   ;;  %v2323_v45 = vld [vmem:[%s2832_s1 + $0x290] sm:$0xff]  }
  0x25   : >> { %533 = vmatprep.mubr.bf16.mxu1 %v203_v46  ;;  %v1741_v10 = vld [vmem:[%s2522_s14 + $0x4] sm:$0xf]  ;;  %v2302_v21 = vld [vmem:[%s2832_s1 + $0x238] sm:$0xff]   ;;  %v2324_v46 = vld [vmem:[%s2832_s1 + $0x248] sm:$0xff]  }
  0x26   : >> { %2052 = vmatpush3.bf16.msra.mxu0 %v2256_v23  ;;  %v2297_v11 = vld [vmem:[%s2832_s1 + $0x100] sm:$0xff]   ;;  %v1742_v12 = vcombine.low %v1741_v10, %v1741_v10  ;;  %v2303_v23 = vld [vmem:[%s2832_s1 + $0x2b8] sm:$0xff]  }
  0x27   : >> { %2074 = vmatpush3.bf16.msra.mxu1 %v2257_v24  ;;  %2053 = vmatprep.subr.bf16.mxu0 %v2258_v25  ;;  %v2298_v13 = vld [vmem:[%s2832_s1 + $0x180] sm:$0xff]   ;;  %v2316_v38 = vld [vmem:[%s2832_s1 + $0x258] sm:$0xff]  }
  0x28   : >> { %2075 = vmatprep.subr.bf16.mxu1 %v2259_v26  ;;  %v550_v14 = vshrl.u32 %v1742_v12, 16  ;;  %v552_v15 = vshll.u32 %v1742_v12, 16  ;;  %v557_v22 = vrot.slane %v1742_v12, 1  ;;  %v2304_v26 = vld [vmem:[%s2832_s1 + $0x270] sm:$0xff]   ;;  %v2312_v34 = vld [vmem:[%s2832_s1 + $0x260] sm:$0xff]   ;;  %v2317_v39 = vld [vmem:[%s2832_s1 + $0x2d8] sm:$0xff]  }
  0x29   : >> { %v2315_v37 = vld [vmem:[%s2832_s1 + $0x2a0] sm:$0xff]   ;;  %v2318_v40 = vld [vmem:[%s2832_s1 + $0x218] sm:$0xff]   ;;  %v2344_v12 = vld [vmem:[%s2832_s1 + $0x3a8] sm:$0xff]  }
  0x2a   : >> { %2054 = vmatpush3.bf16.msra.mxu0 %v2260_v27  ;;  %v554_v18 = vrot.slane %v552_v15, 1  ;;  %v559_v19 = vrot.slane %v550_v14, 1  ;;  %v560_v20 = vrot.slane %v552_v15, 2  ;;  %v2305_v27 = vld [vmem:[%s2832_s1 + $0x2f0] sm:$0xff]   ;;  %v2319_v41 = vld [vmem:[%s2832_s1 + $0x298] sm:$0xff]   ;;  %v2347_v15 = vld [vmem:[%s2832_s1 + $0x320] sm:$0xff]  }
  0x2b   : >> { %2076 = vmatpush3.bf16.msra.mxu1 %v2261_v28  ;;  %2055 = vmatprep.subr.bf16.mxu0 %v2262_v29  ;;  %v2306_v28 = vld [vmem:[%s2832_s1 + $0x230] sm:$0xff]  }
  0x2c   : >> { %2077 = vmatprep.subr.bf16.mxu1 %v2263_v30  ;;  %v555_v24 = vor.u32 %v554_v18, %v550_v14  ;;  %v561_v25 = vor.u32 %v560_v20, %v559_v19  ;;  %v2307_v29 = vld [vmem:[%s2832_s1 + $0x2b0] sm:$0xff]   ;;  %v2308_v30 = vld [vmem:[%s2832_s1 + $0x268] sm:$0xff]   ;;  %v2346_v14 = vld [vmem:[%s2832_s1 + $0x3e0] sm:$0xff]  }
  0x2d   : >> { %v2350_v18 = vld [vmem:[%s2832_s1 + $0x3d8] sm:$0xff]  }
  0x2e   : >> { %2056 = vmatpush3.bf16.msra.mxu0 %v2264_v31  ;;  %v2309_v31 = vld [vmem:[%s2832_s1 + $0x2e8] sm:$0xff]   ;;  %v2351_v19 = vld [vmem:[%s2832_s1 + $0x318] sm:$0xff]  }
  0x2f   : >> { %2078 = vmatpush3.bf16.msra.mxu1 %v2265_v32  ;;  %2085 = vmatprep.subr.bf16.mxu0 %v2267_v35  ;;  %v2310_v32 = vld [vmem:[%s2832_s1 + $0x228] sm:$0xff]   ;;  %v2313_v35 = vld [vmem:[%s2832_s1 + $0x2e0] sm:$0xff]   ;;  %v2352_v20 = vld [vmem:[%s2832_s1 + $0x398] sm:$0xff]  }
  0x30   : >> { %2107 = vmatprep.subr.bf16.mxu1 %v2268_v36  ;;  %v2314_v36 = vld [vmem:[%s2832_s1 + $0x220] sm:$0xff]  }
  0x31   : >> { %494 = vmatmul.mubr.bf16.vlgmr.msra.gmra.mxu0 %v187_v33  ;;  %v2311_v33 = vld [vmem:[%s2832_s1 + $0x2a8] sm:$0xff]  }
  0x32   : >> { %534 = vmatmul.mubr.bf16.vlgmr.msra.gmra.mxu1 %v199_v43  ;;  %2086 = vmatpush3.bf16.msra.mxu0 %v2269_v42  ;;  %v2320_v42 = vld [vmem:[%s2832_s1 + $0x250] sm:$0xff]  }
  0x33   : >> { %2108 = vmatpush3.bf16.msra.mxu1 %v2270_v44  ;;  %2087 = vmatprep.subr.bf16.mxu0 %v2271_v47  ;;  %v2321_v43 = vld [vmem:[%s2832_s1 + $0x2d0] sm:$0xff]   ;;  %v2325_v47 = vld [vmem:[%s2832_s1 + $0x2c8] sm:$0xff]  }
  0x34   : >> { %2109 = vmatprep.subr.bf16.mxu1 %v2272_v48  ;;  %852 = vmatprep.mubr.bf16.mxu0 %v555_v24  ;;  %v2322_v44 = vld [vmem:[%s2832_s1 + $0x210] sm:$0xff]   ;;  %v2326_v48 = vld [vmem:[%s2832_s1 + $0x208] sm:$0xff]  }
  0x35   : >> { %892 = vmatprep.mubr.bf16.mxu1 %v561_v25  ;;  %v2356_v24 = vld [vmem:[%s2832_s1 + $0x390] sm:$0xff]   ;;  %v2357_v25 = vld [vmem:[%s2832_s1 + $0x348] sm:$0xff]  }
  0x36   : >> { %2088 = vmatpush3.bf16.msra.mxu0 %v2273_v49  ;;  %v2327_v49 = vld [vmem:[%s2832_s1 + $0x288] sm:$0xff]  }
  0x37   : >> { %2110 = vmatpush3.bf16.msra.mxu1 %v2274_v50  ;;  %2089 = vmatprep.subr.bf16.mxu0 %v2275_v51  ;;  %v2328_v50 = vld [vmem:[%s2832_s1 + $0x240] sm:$0xff]  }
  0x38   : >> { %2111 = vmatprep.subr.bf16.mxu1 %v2276_v52  ;;  %v2329_v51 = vld [vmem:[%s2832_s1 + $0x2c0] sm:$0xff]   ;;  %v1840_v52 = vld [vmem:[%s2522_s14 + $0x8] sm:$0xf] }
  0x3a   : >> { %2090 = vmatpush3.bf16.msra.mxu0 %v2277_v53  ;;  %v2330_v53 = vld [vmem:[%s2832_s1 + $0x200] sm:$0xff]  }
  0x3b   : >> { %2112 = vmatpush3.bf16.msra.mxu1 %v2278_v54  ;;  %2091 = vmatprep.subr.bf16.mxu0 %v2279_v55  ;;  %v1841_v54 = vcombine.low %v1840_v52, %v1840_v52  ;;  %v2331_v55 = vld [vmem:[%s2832_s1 + $0x280] sm:$0xff]  }
  0x3c   : >> { %2113 = vmatprep.subr.bf16.mxu1 %v2280_v56 }
  0x3d   : >> { %v909_v56 = vshrl.u32 %v1841_v54, 16 }
  0x3e   : >> { %2092 = vmatpush3.bf16.msra.mxu0 %v2281_v57  ;;  %v911_v57 = vshll.u32 %v1841_v54, 16 }
  0x3f   : >> { %2114 = vmatpush3.bf16.msra.mxu1 %v2282_v58  ;;  %2093 = vmatprep.subr.bf16.mxu0 %v2283_v59  ;;  %v2333_v58 = vld [vmem:[%s2832_s1 + $0x378] sm:$0xff]  }
  0x40   : >> { %2115 = vmatprep.subr.bf16.mxu1 %v2284_v60  ;;  %v2334_v59 = vld [vmem:[%s2832_s1 + $0x3f8] sm:$0xff]   ;;  %v913_v60 = vrot.slane %v911_v57, 1 }
  0x42   : >> { %2094 = vmatpush3.bf16.msra.mxu0 %v2285_v61  ;;  %v918_v61 = vrot.slane %v909_v56, 1 }
  0x43   : >> { %2116 = vmatpush3.bf16.msra.mxu1 %v2286_v62  ;;  %2095 = vmatprep.subr.bf16.mxu0 %v2287_v63  ;;  %v919_v62 = vrot.slane %v911_v57, 2  ;;  %v2335_v63 = vld [vmem:[%s2832_s1 + $0x338] sm:$0xff]  }
  0x44   : >> { %2117 = vmatprep.subr.bf16.mxu1 %v2288_v1  ;;  %v916_v1 = vrot.slane %v1841_v54, 1 }
  0x46   : >> { %2096 = vmatpush3.bf16.msra.mxu0 %v2289_v2  ;;  %v2336_v2 = vld [vmem:[%s2832_s1 + $0x3b8] sm:$0xff]  }
  0x47   : >> { %2118 = vmatpush3.bf16.msra.mxu1 %v2290_v3  ;;  %2097 = vmatprep.subr.bf16.mxu0 %v2291_v4  ;;  %v914_v3 = vor.u32 %v913_v60, %v909_v56  ;;  %v920_v4 = vor.u32 %v919_v62, %v918_v61 }
  0x48   : >> { %2119 = vmatprep.subr.bf16.mxu1 %v2292_v5  ;;  %v2337_v5 = vld [vmem:[%s2832_s1 + $0x370] sm:$0xff]  }
  0x4a   : >> { %2098 = vmatpush3.bf16.msra.mxu0 %v2293_v6  ;;  %v2338_v6 = vld [vmem:[%s2832_s1 + $0x3f0] sm:$0xff]  }
  0x4b   : >> { %2120 = vmatpush3.bf16.msra.mxu1 %v2294_v7  ;;  %2099 = vmatprep.subr.bf16.mxu0 %v2295_v8  ;;  %v2339_v7 = vld [vmem:[%s2832_s1 + $0x330] sm:$0xff]  }
  0x4c   : >> { %2121 = vmatprep.subr.bf16.mxu1 %v2296_v9  ;;  %v2340_v8 = vld [vmem:[%s2832_s1 + $0x3b0] sm:$0xff]   ;;  %v2341_v9 = vld [vmem:[%s2832_s1 + $0x368] sm:$0xff]  }
  0x4e   : >> { %2100 = vmatpush3.bf16.msra.mxu0 %v2297_v11  ;;  %v2343_v11 = vld [vmem:[%s2832_s1 + $0x328] sm:$0xff]  }
  0x4f   : >> { %2122 = vmatpush3.bf16.msra.mxu1 %v2298_v13  ;;  %2129 = vmatprep.subr.bf16.mxu0 %v2300_v16  ;;  %v2345_v13 = vld [vmem:[%s2832_s1 + $0x360] sm:$0xff]  }
  0x50   : >> { %2151 = vmatprep.subr.bf16.mxu1 %v2301_v17  ;;  %v2348_v16 = vld [vmem:[%s2832_s1 + $0x3a0] sm:$0xff]   ;;  %v2349_v17 = vld [vmem:[%s2832_s1 + $0x358] sm:$0xff]  }
  0x51   : >> { %853 = vmatmul.mubr.bf16.vlgmr.msra.gmra.mxu0 %v1741_v10  ;;  %v2342_v10 = vld [vmem:[%s2832_s1 + $0x3e8] sm:$0xff]  }
  0x52   : >> { %893 = vmatmul.mubr.bf16.vlgmr.msra.gmra.mxu1 %v557_v22  ;;  %2130 = vmatpush3.bf16.msra.mxu0 %v2302_v21  ;;  %v2353_v21 = vld [vmem:[%s2832_s1 + $0x350] sm:$0xff]  }
  0x53   : >> { %2152 = vmatpush3.bf16.msra.mxu1 %v2303_v23  ;;  %2131 = vmatprep.subr.bf16.mxu0 %v2304_v26  ;;  %v2354_v22 = vld [vmem:[%s2832_s1 + $0x3d0] sm:$0xff]   ;;  %v2358_v26 = vld [vmem:[%s2832_s1 + $0x3c8] sm:$0xff]  }
  0x54   : >> { %2153 = vmatprep.subr.bf16.mxu1 %v2305_v27  ;;  %1211 = vmatprep.mubr.bf16.mxu0 %v914_v3  ;;  %v2355_v23 = vld [vmem:[%s2832_s1 + $0x310] sm:$0xff]   ;;  %v2359_v27 = vld [vmem:[%s2832_s1 + $0x308] sm:$0xff]  }
  0x55   : >> { %1251 = vmatprep.mubr.bf16.mxu1 %v920_v4 }
  0x56   : >> { %2132 = vmatpush3.bf16.msra.mxu0 %v2306_v28  ;;  %v2360_v28 = vld [vmem:[%s2832_s1 + $0x388] sm:$0xff]  }
  0x57   : >> { %2154 = vmatpush3.bf16.msra.mxu1 %v2307_v29  ;;  %2133 = vmatprep.subr.bf16.mxu0 %v2308_v30  ;;  %v2361_v29 = vld [vmem:[%s2832_s1 + $0x340] sm:$0xff]  }
  0x58   : >> { %2155 = vmatprep.subr.bf16.mxu1 %v2309_v31  ;;  %v2362_v30 = vld [vmem:[%s2832_s1 + $0x3c0] sm:$0xff]   ;;  %v1939_v31 = vld [vmem:[%s2522_s14 + $0xc] sm:$0xf]  ;;  %s2037_s14 = sshll.u32 %s2380_s24, 1  ;;  %s178_s24 = sadd.s32 1, %s2380_s24  }
  0x59   : >> { %s1622_s11 = scalar_lea.vmem %s2418_s20, %s2037_s14  ;;  %p175_p4 = scmp.ge.s32.totalorder %s178_s24, 4  }
  0x5a   : >> { %2134 = vmatpush3.bf16.msra.mxu0 %v2310_v32  ;;  %v1940_v32 = vcombine.low %v1939_v31, %v1939_v31 }
  0x5b   : >> { %2156 = vmatpush3.bf16.msra.mxu1 %v2311_v33  ;;  %2135 = vmatprep.subr.bf16.mxu0 %v2312_v34  ;;  %v2363_v33 = vld [vmem:[%s2832_s1 + $0x300] sm:$0xff]  }
  0x5c   : >> { %2157 = vmatprep.subr.bf16.mxu1 %v2313_v35  ;;  %v2364_v34 = vld [vmem:[%s2832_s1 + $0x380] sm:$0xff]   ;;  %v1268_v35 = vshrl.u32 %v1940_v32, 16 }
  0x5e   : >> { %2136 = vmatpush3.bf16.msra.mxu0 %v2314_v36  ;;  %v1270_v36 = vshll.u32 %v1940_v32, 16 }
  0x5f   : >> { %2158 = vmatpush3.bf16.msra.mxu1 %v2315_v37  ;;  %2137 = vmatprep.subr.bf16.mxu0 %v2316_v38  ;;  %v1277_v38 = vrot.slane %v1268_v35, 1 }
  0x60   : >> { %2159 = vmatprep.subr.bf16.mxu1 %v2317_v39  ;;  %v1272_v37 = vrot.slane %v1270_v36, 1  ;;  %v1278_v39 = vrot.slane %v1270_v36, 2 }
  0x62   : >> { %2138 = vmatpush3.bf16.msra.mxu0 %v2318_v40  ;;  %v1275_v40 = vrot.slane %v1940_v32, 1 }
  0x63   : >> { %2160 = vmatpush3.bf16.msra.mxu1 %v2319_v41  ;;  %2139 = vmatprep.subr.bf16.mxu0 %v2320_v42  ;;  %v1273_v41 = vor.u32 %v1272_v37, %v1268_v35  ;;  %v1279_v42 = vor.u32 %v1278_v39, %v1277_v38 }
  0x64   : >> { %2161 = vmatprep.subr.bf16.mxu1 %v2321_v43 }
  0x66   : >> { %2140 = vmatpush3.bf16.msra.mxu0 %v2322_v44 }
  0x67   : >> { %2162 = vmatpush3.bf16.msra.mxu1 %v2323_v45  ;;  %2141 = vmatprep.subr.bf16.mxu0 %v2324_v46 }
  0x68   : >> { %2163 = vmatprep.subr.bf16.mxu1 %v2325_v47 }
  0x6a   : >> { %2142 = vmatpush3.bf16.msra.mxu0 %v2326_v48 }
  0x6b   : >> { %2164 = vmatpush3.bf16.msra.mxu1 %v2327_v49  ;;  %2143 = vmatprep.subr.bf16.mxu0 %v2328_v50 }
  0x6c   : >> { %2165 = vmatprep.subr.bf16.mxu1 %v2329_v51 }
  0x6e   : >> { %2144 = vmatpush3.bf16.msra.mxu0 %v2330_v53 }
  0x6f   : >> { %2166 = vmatpush3.bf16.msra.mxu1 %v2331_v55  ;;  %2173 = vmatprep.subr.bf16.mxu0 %v2333_v58 }
  0x70   : >> { %2195 = vmatprep.subr.bf16.mxu1 %v2334_v59 }
  0x71   : >> { %1212 = vmatmul.mubr.bf16.vlgmr.msra.gmra.mxu0 %v1840_v52 }
  0x72   : >> { %1252 = vmatmul.mubr.bf16.vlgmr.msra.gmra.mxu1 %v916_v1  ;;  %2174 = vmatpush3.bf16.msra.mxu0 %v2335_v63 }
  0x73   : >> { %2196 = vmatpush3.bf16.msra.mxu1 %v2336_v2  ;;  %2175 = vmatprep.subr.bf16.mxu0 %v2337_v5 }
  0x74   : >> { %2197 = vmatprep.subr.bf16.mxu1 %v2338_v6  ;;  %1570 = vmatprep.mubr.bf16.mxu0 %v1273_v41 }
  0x75   : >> { %1610 = vmatprep.mubr.bf16.mxu1 %v1279_v42 }
  0x76   : >> { %2176 = vmatpush3.bf16.msra.mxu0 %v2339_v7 }
  0x77   : >> { %2198 = vmatpush3.bf16.msra.mxu1 %v2340_v8  ;;  %2177 = vmatprep.subr.bf16.mxu0 %v2341_v9 }
  0x78   : >> { %2199 = vmatprep.subr.bf16.mxu1 %v2342_v10 }
  0x7a   : >> { %2178 = vmatpush3.bf16.msra.mxu0 %v2343_v11 }
  0x7b   : >> { %2200 = vmatpush3.bf16.msra.mxu1 %v2344_v12  ;;  %2179 = vmatprep.subr.bf16.mxu0 %v2345_v13 }
  0x7c   : >> { %2201 = vmatprep.subr.bf16.mxu1 %v2346_v14 }
  0x7e   : >> { %2180 = vmatpush3.bf16.msra.mxu0 %v2347_v15 }
  0x7f   : >> { %2202 = vmatpush3.bf16.msra.mxu1 %v2348_v16  ;;  %2181 = vmatprep.subr.bf16.mxu0 %v2349_v17 }
  0x80   : >> { %2203 = vmatprep.subr.bf16.mxu1 %v2350_v18 }
  0x82   : >> { %2182 = vmatpush3.bf16.msra.mxu0 %v2351_v19 }
  0x83   : >> { %2204 = vmatpush3.bf16.msra.mxu1 %v2352_v20  ;;  %2183 = vmatprep.subr.bf16.mxu0 %v2353_v21 }
  0x84   : >> { %2205 = vmatprep.subr.bf16.mxu1 %v2354_v22 }
  0x86   : >> { %2184 = vmatpush3.bf16.msra.mxu0 %v2355_v23 }
  0x87   : >> { %2206 = vmatpush3.bf16.msra.mxu1 %v2356_v24  ;;  %2185 = vmatprep.subr.bf16.mxu0 %v2357_v25 }
  0x88   : >> { %2207 = vmatprep.subr.bf16.mxu1 %v2358_v26 }
  0x8a   : >> { %2186 = vmatpush3.bf16.msra.mxu0 %v2359_v27 }
  0x8b   : >> { %2208 = vmatpush3.bf16.msra.mxu1 %v2360_v28  ;;  %2187 = vmatprep.subr.bf16.mxu0 %v2361_v29 }
  0x8c   : >> { %2209 = vmatprep.subr.bf16.mxu1 %v2362_v30 }
  0x8e   : >> { %2188 = vmatpush3.bf16.msra.mxu0 %v2363_v33 }
  0x8f   : >> { %2210 = vmatpush3.bf16.msra.mxu1 %v2364_v34 }
  0x91   : >> { %1571 = vmatmul.mubr.bf16.vlgmr.msra.gmra.mxu0 %v1939_v31 }
  0x92   : >> { %1611 = vmatmul.mubr.bf16.vlgmr.msra.gmra.mxu1 %v1275_v40 }
  0xf1   : >> { %v2057_v43 = vpop.f32.mrf.mxu0 }
  0xf2   : >> { %v2079_v44 = vpop.f32.mrf.mxu1 }
  0xf3   : >> { %v2058_v45 = vpop.f32.mrf.mxu0 }
  0xf4   : >> { %v2080_v46 = vpop.f32.mrf.mxu1  ;;  %v2059_v47 = vadd.f32 %v2058_v45, %v2057_v43 }
  0xf5   : >> { %v2081_v48 = vadd.f32 %v2080_v46, %v2079_v44  ;;  %v2060_v49 = vpop.f32.mrf.mxu0 }
  0xf6   : >> { %v2082_v50 = vpop.f32.mrf.mxu1 }
  0xf7   : >> { %v536_v51 = vadd.f32 %v2081_v48, %v2059_v47  ;;  %v2061_v52 = vpop.f32.mrf.mxu0 }
  0xf8   : >> { %v2083_v53 = vpop.f32.mrf.mxu1 }
  0xf9   : >> { %v541_v62 = vadd.f32 %v2413_v0, %v536_v51 }
 0x111   : >> { %v2101_v54 = vpop.f32.mrf.mxu0 }
 0x112   : >> { %v2123_v55 = vpop.f32.mrf.mxu1 }
 0x113   : >> { %v2102_v56 = vpop.f32.mrf.mxu0 }
 0x114   : >> { %v2124_v57 = vpop.f32.mrf.mxu1  ;;  %v2103_v58 = vadd.f32 %v2102_v56, %v2101_v54 }
 0x115   : >> { %v2125_v59 = vadd.f32 %v2124_v57, %v2123_v55  ;;  %v2104_v60 = vpop.f32.mrf.mxu0 }
 0x116   : >> { %v2126_v61 = vpop.f32.mrf.mxu1 }
 0x117   : >> { %v895_v63 = vadd.f32 %v2125_v59, %v2103_v58  ;;  %v2105_v1 = vpop.f32.mrf.mxu0 }
 0x118   : >> { %v2127_v2 = vpop.f32.mrf.mxu1 }
 0x119   : >> { %v900_v3 = vadd.f32 %v895_v63, %v541_v62 }
 0x131   : >> { %v2145_v4 = vpop.f32.mrf.mxu0 }
 0x132   : >> { %v2167_v5 = vpop.f32.mrf.mxu1 }
 0x133   : >> { %v2146_v6 = vpop.f32.mrf.mxu0 }
 0x134   : >> { %v2168_v7 = vpop.f32.mrf.mxu1  ;;  %v2147_v12 = vadd.f32 %v2146_v6, %v2145_v4 }
 0x135   : >> { %v2148_v8 = vpop.f32.mrf.mxu0  ;;  %v2169_v13 = vadd.f32 %v2168_v7, %v2167_v5 }
 0x136   : >> { %v2170_v9 = vpop.f32.mrf.mxu1 }
 0x137   : >> { %v2149_v10 = vpop.f32.mrf.mxu0  ;;  %v1254_v16 = vadd.f32 %v2169_v13, %v2147_v12 }
 0x138   : >> { %v2171_v11 = vpop.f32.mrf.mxu1 }
 0x139   : >> { %v1259_v23 = vadd.f32 %v1254_v16, %v900_v3 }
 0x151   : >> { %v2189_v14 = vpop.f32.mrf.mxu0 }
 0x152   : >> { %v2211_v15 = vpop.f32.mrf.mxu1 }
 0x153   : >> { %v2190_v17 = vpop.f32.mrf.mxu0 }
 0x154   : >> { %v2212_v18 = vpop.f32.mrf.mxu1  ;;  %v2191_v19 = vadd.f32 %v2190_v17, %v2189_v14 }
 0x155   : >> { %v2213_v20 = vadd.f32 %v2212_v18, %v2211_v15  ;;  %v2192_v21 = vpop.f32.mrf.mxu0 }
 0x156   : >> { %v2214_v22 = vpop.f32.mrf.mxu1 }
 0x157   : >> { %v1613_v24 = vadd.f32 %v2213_v20, %v2191_v19  ;;  %v2193_v25 = vpop.f32.mrf.mxu0 }
 0x158   : >> { %v2215_v26 = vpop.f32.mrf.mxu1 }
 0x159   : >> { %v1618_v27 = vadd.f32 %v1613_v24, %v1259_v23 }
 0x15b   : >> { %v1619_v28 = vmax.f32 %v1618_v27, 0.0  ;;  %177 = sbr.rel (!%p175_p4) target bundleno = 15 (0xf), region = 77 }
 0x15d   : >> { %v1620_v29 = vpack.c.bf16 %v1619_v28, %v1619_v28 }
 0x15f   : >> { %1623 = vst [vmem:[%s1622_s11] sm:$0x3] %v1620_v29 }
 0x160 PF: > { %s13_s12 = sadd.s32 1, %s2376_s12  }
 0x161   : > { %p10_p5 = scmp.ge.s32.totalorder %s13_s12, 4  }
 0x163   :  { %12 = sbr.rel (!%p10_p5) target bundleno = 1 (0x1), region = 88 }

// kernel: convnet_forward.9
= control target key start
LH: loop header
LB: loop body
LE: loop exit
PB: predicated region body
PF: predicated region fallthrough
CT: control target
= control target key end

     0   :  { %v61_v0 = vlaneseq  ;;  %v686_v4 = vmov 1966171168   ;;  %vm26_vm0 = vcmask 132096   ;;  %s813_s1 = inlined_call_operand.vmem [shape: bf16[17,2048], index: 1, kind: input, shape index: {}]   ;;  %s814_s0 = inlined_call_operand.vmem [shape: bf16[2,2048], index: 0, kind: input, shape index: {}]   ;;  %s815_s2 = inlined_call_operand.vmem [shape: f32[1,17], index: 2, kind: input, shape index: {}]   ;;  %s816_s3 = inlined_call_operand.vmem [shape: f32[2,17], index: 3, kind: output, shape index: {}]  }
   0x1   :  { %v47_v1 = vld [vmem:[%s813_s1 + $0x80] sm:$0x11]  ;;  %v48_v2 = vld [vmem:[%s813_s1 + $0x88] sm:$0x11]  ;;  %v59_v5 = vunpack.c.l.s4 %v686_v4  ;;  %v49_v20 = vld [vmem:[%s813_s1 + $0x90] sm:$0x11] }
   0x2   :  { %v31_v3 = vld [vmem:[%s813_s1] sm:$0xff]  ;;  %v652_v6 = vcombine.high %v47_v1, %v47_v1  ;;  %v654_v7 = vcombine.high %v48_v2, %v48_v2  ;;  %v651_v8 = vcombine.low %v47_v1, %v47_v1  ;;  %v653_v9 = vcombine.low %v48_v2, %v48_v2  ;;  %v32_v11 = vld [vmem:[%s813_s1 + $0x8] sm:$0xff]  ;;  %v50_v22 = vld [vmem:[%s813_s1 + $0x98] sm:$0x11] }
   0x3   :  { %v39_v10 = vld [vmem:[%s813_s1 + $0x40] sm:$0xff]  ;;  %v40_v12 = vld [vmem:[%s813_s1 + $0x48] sm:$0xff]  ;;  %v60_v17 = vunpack.c.0.s8 %v59_v5  ;;  %v62_v18 = vshrl.u32 %v61_v0, 7  ;;  %v656_v27 = vcombine.high %v49_v20, %v49_v20  ;;  %v658_v28 = vcombine.high %v50_v22, %v50_v22  ;;  %v33_v33 = vld [vmem:[%s813_s1 + $0x10] sm:$0xff] }
   0x4   :  { %v636_v13 = vcombine.high %v31_v3, %v39_v10  ;;  %v638_v14 = vcombine.high %v32_v11, %v40_v12  ;;  %v29_v15 = vld [vmem:[%s814_s0] sm:$0xff]  ;;  %319 = vmatprep.subr.bf16.mxu0 %v652_v6  ;;  %359 = vmatprep.subr.bf16.mxu1 %v654_v7  ;;  %v635_v24 = vcombine.low %v31_v3, %v39_v10  ;;  %v41_v34 = vld [vmem:[%s813_s1 + $0x50] sm:$0xff]  ;;  %v34_v35 = vld [vmem:[%s813_s1 + $0x18] sm:$0xff] }
   0x5   :  { %v57_v16 = vcombine.high %v29_v15, %v29_v15  ;;  %320 = vmatpush1.bf16.xpose.msra.mxu0 %v651_v8  ;;  %360 = vmatpush1.bf16.xpose.msra.mxu1 %v653_v9  ;;  %v728_v19 = vsub.s32 %v60_v17, %v62_v18  ;;  %v637_v25 = vcombine.low %v32_v11, %v40_v12  ;;  %v42_v36 = vld [vmem:[%s813_s1 + $0x58] sm:$0xff]  ;;  %v30_v44 = vld [vmem:[%s814_s0 + $0x8] sm:$0xff]  ;;  %v51_v45 = vld [vmem:[%s813_s1 + $0xa0] sm:$0x11] }
   0x6   :  { %321 = vmatprep.subr.bf16.mxu0 %v636_v13  ;;  %361 = vmatprep.subr.bf16.mxu1 %v638_v14  ;;  %v655_v39 = vcombine.low %v49_v20, %v49_v20  ;;  %v657_v40 = vcombine.low %v50_v22, %v50_v22  ;;  %v640_v41 = vcombine.high %v33_v33, %v41_v34  ;;  %v52_v46 = vld [vmem:[%s813_s1 + $0xa8] sm:$0x11]  ;;  %v35_v54 = vld [vmem:[%s813_s1 + $0x20] sm:$0xff]  ;;  %v53_v2 = vld [vmem:[%s813_s1 + $0xb0] sm:$0x11] }
   0x7   :  { %v64_v21 = vrot.slane %v29_v15, %v728_v19  ;;  %v71_v23 = vrot.slane %v57_v16, %v728_v19  ;;  %v642_v42 = vcombine.high %v34_v35, %v42_v36  ;;  %v113_v47 = vrot.slane %v30_v44, %v728_v19  ;;  %v43_v55 = vld [vmem:[%s813_s1 + $0x60] sm:$0xff]  ;;  %v36_v56 = vld [vmem:[%s813_s1 + $0x28] sm:$0xff]  ;;  %v54_v3 = vld [vmem:[%s813_s1 + $0xb8] sm:$0x11] }
   0x8   :  { %v639_v48 = vcombine.low %v33_v33, %v41_v34  ;;  %v641_v49 = vcombine.low %v34_v35, %v42_v36  ;;  %v660_v50 = vcombine.high %v51_v45, %v51_v45  ;;  %v662_v51 = vcombine.high %v52_v46, %v52_v46  ;;  %v44_v57 = vld [vmem:[%s813_s1 + $0x68] sm:$0xff]  ;;  %v37_v11 = vld [vmem:[%s813_s1 + $0x30] sm:$0xff]  ;;  %v38_v13 = vld [vmem:[%s813_s1 + $0x38] sm:$0xff] }
   0x9   :  { %v72_v26 = vcombine.high %v64_v21, %v64_v21  ;;  %v73_v29 = vcombine.high %v71_v23, %v71_v23  ;;  %v80_v31 = vrot.slane %v64_v21, %v728_v19  ;;  %v121_v52 = vcombine.high %v113_v47, %v113_v47  ;;  %v45_v12 = vld [vmem:[%s813_s1 + $0x70] sm:$0xff]  ;;  %v46_v14 = vld [vmem:[%s813_s1 + $0x78] sm:$0xff] }
   0xa   :  { %v87_v53 = vrot.slane %v71_v23, %v728_v19  ;;  %v659_v60 = vcombine.low %v51_v45, %v51_v45  ;;  %v661_v61 = vcombine.low %v52_v46, %v52_v46  ;;  %v644_v62 = vcombine.high %v35_v54, %v43_v55 }
   0xb   :  { %v94_v30 = vrot.slane %v72_v26, %v728_v19  ;;  %v101_v37 = vrot.slane %v73_v29, %v728_v19  ;;  %v102_v38 = vcombine.high %v80_v31, %v80_v31  ;;  %v143_v58 = vrot.slane %v121_v52, %v728_v19 }
   0xc   :  { %v103_v59 = vcombine.high %v87_v53, %v87_v53  ;;  %v646_v63 = vcombine.high %v36_v56, %v44_v57  ;;  %v106_v0 = vcombine.high %v30_v44, %v30_v44  ;;  %v643_v5 = vcombine.low %v35_v54, %v43_v55 }
   0xd   :  { %322 = vmatpush1.bf16.xpose.msra.mxu0 %v635_v24  ;;  %362 = vmatpush1.bf16.xpose.msra.mxu1 %v637_v25  ;;  %v104_v32 = vcombine.high %v94_v30, %v94_v30  ;;  %v105_v43 = vcombine.high %v101_v37, %v101_v37  ;;  %v153_v1 = vcombine.high %v143_v58, %v143_v58 }
   0xe   :  { %339 = vmatprep.mubr.bf16.mxu0 %v94_v30  ;;  %399 = vmatprep.subr.bf16.mxu0 %v656_v27  ;;  %v120_v4 = vrot.slane %v106_v0, %v728_v19  ;;  %v645_v6 = vcombine.low %v36_v56, %v44_v57  ;;  %v664_v7 = vcombine.high %v53_v2, %v53_v2  ;;  %v634_v27 = vld [vmem:[%s815_s2] ss:$0 sm:$0xff] }
   0xf   :  { %439 = vmatprep.subr.bf16.mxu1 %v658_v28  ;;  %379 = vmatprep.mubr.bf16.mxu1 %v104_v32  ;;  %v666_v8 = vcombine.high %v54_v3, %v54_v3  ;;  %v129_v10 = vrot.slane %v113_v47, %v728_v19  ;;  %v663_v17 = vcombine.low %v53_v2, %v53_v2 }
  0x10   :  { %v122_v9 = vcombine.high %v120_v4, %v120_v4  ;;  %v665_v18 = vcombine.low %v54_v3, %v54_v3  ;;  %v648_v20 = vcombine.high %v37_v11, %v45_v12  ;;  %v650_v21 = vcombine.high %v38_v13, %v46_v14  ;;  %27 = vst.msk [vmem:[%s816_s3] sm:$0x3] %vm26_vm0, %v634_v27 }
  0x11   :  { %v151_v16 = vcombine.high %v129_v10, %v129_v10  ;;  %v647_v23 = vcombine.low %v37_v11, %v45_v12  ;;  %v649_v24 = vcombine.low %v38_v13, %v46_v14  ;;  %v136_v25 = vrot.slane %v120_v4, %v728_v19 }
  0x12   :  { %v150_v15 = vrot.slane %v122_v9, %v728_v19 }
  0x13   :  { %v152_v26 = vcombine.high %v136_v25, %v136_v25 }
  0x14   :  { %340 = vmatmul.mubr.bf16.vlgmr.msra.gmra.mxu0 %v80_v31  ;;  %380 = vmatmul.mubr.bf16.vlgmr.msra.gmra.mxu1 %v102_v38  ;;  %v154_v22 = vcombine.high %v150_v15, %v150_v15 }
  0x15   :  { %400 = vmatpush1.bf16.xpose.msra.mxu0 %v655_v39  ;;  %440 = vmatpush1.bf16.xpose.msra.mxu1 %v657_v40 }
  0x16   :  { %401 = vmatprep.subr.bf16.mxu0 %v640_v41  ;;  %441 = vmatprep.subr.bf16.mxu1 %v642_v42 }
  0x17   :  { %419 = vmatprep.mubr.bf16.mxu0 %v101_v37  ;;  %459 = vmatprep.mubr.bf16.mxu1 %v105_v43 }
  0x1d   :  { %402 = vmatpush1.bf16.xpose.msra.mxu0 %v639_v48  ;;  %442 = vmatpush1.bf16.xpose.msra.mxu1 %v641_v49 }
  0x1e   :  { %479 = vmatprep.subr.bf16.mxu0 %v660_v50  ;;  %519 = vmatprep.subr.bf16.mxu1 %v662_v51 }
  0x24   :  { %420 = vmatmul.mubr.bf16.vlgmr.msra.gmra.mxu0 %v87_v53  ;;  %460 = vmatmul.mubr.bf16.vlgmr.msra.gmra.mxu1 %v103_v59  ;;  %v28_v59 = vld [vmem:[%s816_s3] sm:$0x3] }
  0x25   :  { %480 = vmatpush1.bf16.xpose.msra.mxu0 %v659_v60  ;;  %520 = vmatpush1.bf16.xpose.msra.mxu1 %v661_v61 }
  0x26   :  { %481 = vmatprep.subr.bf16.mxu0 %v644_v62  ;;  %521 = vmatprep.subr.bf16.mxu1 %v646_v63 }
  0x27   :  { %499 = vmatprep.mubr.bf16.mxu0 %v143_v58  ;;  %539 = vmatprep.mubr.bf16.mxu1 %v153_v1 }
  0x2d   :  { %482 = vmatpush1.bf16.xpose.msra.mxu0 %v643_v5  ;;  %522 = vmatpush1.bf16.xpose.msra.mxu1 %v645_v6 }
  0x2e   :  { %559 = vmatprep.subr.bf16.mxu0 %v664_v7  ;;  %599 = vmatprep.subr.bf16.mxu1 %v666_v8 }
  0x34   :  { %500 = vmatmul.mubr.bf16.vlgmr.msra.gmra.mxu0 %v129_v10  ;;  %540 = vmatmul.mubr.bf16.vlgmr.msra.gmra.mxu1 %v151_v16 }
  0x35   :  { %560 = vmatpush1.bf16.xpose.msra.mxu0 %v663_v17  ;;  %600 = vmatpush1.bf16.xpose.msra.mxu1 %v665_v18 }
  0x36   :  { %561 = vmatprep.subr.bf16.mxu0 %v648_v20  ;;  %601 = vmatprep.subr.bf16.mxu1 %v650_v21 }
  0x37   :  { %579 = vmatprep.mubr.bf16.mxu0 %v150_v15  ;;  %619 = vmatprep.mubr.bf16.mxu1 %v154_v22 }
  0x3d   :  { %562 = vmatpush1.bf16.xpose.msra.mxu0 %v647_v23  ;;  %602 = vmatpush1.bf16.xpose.msra.mxu1 %v649_v24 }
  0x44   :  { %580 = vmatmul.mubr.bf16.vlgmr.msra.gmra.mxu0 %v136_v25  ;;  %620 = vmatmul.mubr.bf16.vlgmr.msra.gmra.mxu1 %v152_v26 }
  0xd4   :  { %v341_v28 = vpop.f32.mrf.mxu0  ;;  %v381_v29 = vpop.f32.mrf.mxu1 }
  0xd5   :  { %v382_v47 = vadd.f32 %v381_v29, %v341_v28 }
  0xd6   :  { %v343_v30 = vpop.f32.mrf.mxu0  ;;  %v383_v31 = vpop.f32.mrf.mxu1 }
  0xd8   :  { %v344_v19 = vpop.f32.mrf.mxu0  ;;  %v384_v32 = vpop.f32.mrf.mxu1 }
  0xda   :  { %v345_v33 = vpop.f32.mrf.mxu0  ;;  %v385_v34 = vpop.f32.mrf.mxu1 }
  0xe4   :  { %v421_v35 = vpop.f32.mrf.mxu0  ;;  %v461_v36 = vpop.f32.mrf.mxu1 }
  0xe5   :  { %v422_v50 = vadd.f32 %v421_v35, %v382_v47 }
  0xe6   :  { %v423_v37 = vpop.f32.mrf.mxu0  ;;  %v463_v38 = vpop.f32.mrf.mxu1 }
  0xe7   :  { %v462_v53 = vadd.f32 %v461_v36, %v422_v50 }
  0xe8   :  { %v424_v39 = vpop.f32.mrf.mxu0  ;;  %v464_v40 = vpop.f32.mrf.mxu1 }
  0xea   :  { %v425_v41 = vpop.f32.mrf.mxu0  ;;  %v465_v42 = vpop.f32.mrf.mxu1 }
  0xf4   :  { %v501_v43 = vpop.f32.mrf.mxu0  ;;  %v541_v44 = vpop.f32.mrf.mxu1 }
  0xf5   :  { %v502_v54 = vadd.f32 %v501_v43, %v462_v53 }
  0xf6   :  { %v503_v45 = vpop.f32.mrf.mxu0  ;;  %v543_v46 = vpop.f32.mrf.mxu1 }
  0xf7   :  { %v542_v55 = vadd.f32 %v541_v44, %v502_v54 }
  0xf8   :  { %v504_v48 = vpop.f32.mrf.mxu0  ;;  %v544_v49 = vpop.f32.mrf.mxu1 }
  0xfa   :  { %v505_v51 = vpop.f32.mrf.mxu0  ;;  %v545_v52 = vpop.f32.mrf.mxu1 }
 0x104   :  { %v581_v56 = vpop.f32.mrf.mxu0  ;;  %v621_v57 = vpop.f32.mrf.mxu1 }
 0x105   :  { %v582_v58 = vadd.f32 %v581_v56, %v542_v55 }
 0x106   :  { %v583_v60 = vpop.f32.mrf.mxu0  ;;  %v623_v61 = vpop.f32.mrf.mxu1 }
 0x107   :  { %v622_v62 = vadd.f32 %v621_v57, %v582_v58 }
 0x108   :  { %v584_v63 = vpop.f32.mrf.mxu0  ;;  %v624_v0 = vpop.f32.mrf.mxu1 }
 0x109   :  { %v627_v1 = vadd.f32 %v622_v62, %v28_v59 }
 0x10a   :  { %v585_v2 = vpop.f32.mrf.mxu0  ;;  %v625_v3 = vpop.f32.mrf.mxu1 }
 0x10b   :  { %629 = vst.msk [vmem:[%s816_s3] sm:$0x3] %vm26_vm0, %v627_v1 }

</bundles_post_ra>
